<compile_context>
chip_gen: v5e
topology: v5e:2x2
jax: 0.10.0
libtpu: 0.0.40
codegen_flags: <defaults>
</compile_context>

<pallas_src>
import functools

import jax
import jax.numpy as jnp
from jax import lax
from jax.experimental import pallas as pl
from jax.experimental.pallas import tpu as pltpu

LEAKY_SLOPE = 0.2
BN_EPS = 1e-5
LANES = 128


def _leaky(x):
    return jnp.where(x > 0, x, LEAKY_SLOPE * x)


def _residual_block_kernel(xpad_ref, w1_ref, b1_ref, w2_ref, b2_ref, *rest,
                           H, W, Cp, Cop, d, has_downsample,
                           drop_final_activation):
    """One batch sample per grid step.

    xpad_ref : (H+2, W+2, Cp)    zero-padded NHWC input, channels padded to 128
    w1_ref   : (9, Cp, Cop)      conv1 taps, BN1 scale and 1/d^2 folded in
    w2_ref   : (9, Cop, Cop)     conv2 taps, BN2 scale folded in
    wd_ref   : (Cp, Cop)         1x1 downsample conv, BNd scale and 1/d^2 folded in
    b*_ref   : (1, Cop)          BN biases
    out_ref  : (Hd, Wd, Cop)     lane-dense output block
    ypad_ref : (Hd+2, Wd+2, Cop) persistent VMEM scratch (conv2 "same" padding)
    """
    if has_downsample:
        wd_ref, bd_ref, out_ref, ypad_ref = rest
    else:
        out_ref, ypad_ref = rest

    Hd, Wd = H // d, W // d

    # ---- pooled, shifted input patches -------------------------------------
    # avg_pool commutes with the per-pixel channel matmul, so pool first.
    # Shared strided slices are loaded once and reused by all 9 taps; the
    # 1/d^2 averaging factor is folded into the weights by the wrapper.
    if d > 1:
        S = [[xpad_ref[pl.ds(a, Hd, stride=d), pl.ds(b, Wd, stride=d), :]
              for b in range(d + 2)] for a in range(d + 2)]

        def patch(ky, kx):
            acc = None
            for dy in range(d):
                for dx in range(d):
                    t = S[ky + dy][kx + dx]
                    acc = t if acc is None else acc + t
            return acc
    else:
        def patch(ky, kx):
            return xpad_ref[ky:ky + H, kx:kx + W, :]

    # ---- conv1 (3x3) at pooled resolution: 9 matmuls with K = Cp = 128 ------
    acc1 = jnp.zeros((Hd * Wd, Cop), jnp.float32)
    for ky in range(3):
        for kx in range(3):
            p = patch(ky, kx).reshape(Hd * Wd, Cp)       # tile-aligned merge
            acc1 = acc1 + jnp.dot(p, w1_ref[ky * 3 + kx],
                                  preferred_element_type=jnp.float32)
    # bn1 (scale already in w1) + LeakyReLU(0.2)
    y = _leaky(acc1 + b1_ref[0]).reshape(Hd, Wd, Cop)

    # ---- conv2 (3x3 "same"): pad y through the persistent VMEM scratch ------
    # Zero only the 1-wide border each step (cheap, megacore-safe), then write
    # the interior once.
    zrow = jnp.zeros((1, Wd + 2, Cop), jnp.float32)
    zcol = jnp.zeros((Hd, 1, Cop), jnp.float32)
    ypad_ref[0:1, :, :] = zrow
    ypad_ref[Hd + 1:Hd + 2, :, :] = zrow
    ypad_ref[1:Hd + 1, 0:1, :] = zcol
    ypad_ref[1:Hd + 1, Wd + 1:Wd + 2, :] = zcol
    ypad_ref[1:Hd + 1, 1:Wd + 1, :] = y

    acc2 = jnp.zeros((Hd * Wd, Cop), jnp.float32)
    for ky in range(3):
        for kx in range(3):
            p = ypad_ref[ky:ky + Hd, kx:kx + Wd, :].reshape(Hd * Wd, Cop)
            acc2 = acc2 + jnp.dot(p, w2_ref[ky * 3 + kx],
                                  preferred_element_type=jnp.float32)
    out = acc2 + b2_ref[0]                                # bn2 (scale in w2)

    # ---- identity / downsample branch ---------------------------------------
    if has_downsample:
        # pool first, then the 1x1 conv (they commute) -> d^2 fewer MXU rows
        xc = patch(1, 1).reshape(Hd * Wd, Cp)
        ident = jnp.dot(xc, wd_ref[...],
                        preferred_element_type=jnp.float32) + bd_ref[0]
    else:
        # d == 1 and Cp == Cop here
        ident = xpad_ref[1:1 + H, 1:1 + W, :].reshape(H * W, Cp)

    out = out + ident
    if not drop_final_activation:
        out = _leaky(out)
    out_ref[...] = out.reshape(Hd, Wd, Cop).astype(out_ref.dtype)


def residual_block_forward(x_nchw, params, *, downsample_factor=1,
                           drop_final_activation=False):
    """x_nchw: (N, Cin, H, W) float32, matching PyTorch's layout."""
    d = downsample_factor
    N, Cin, H, W = x_nchw.shape
    Cout = params["w1"].shape[-1]
    if H % d != 0 or W % d != 0:
        raise ValueError("H and W must be divisible by downsample_factor")
    Hd, Wd = H // d, W // d
    has_downsample = (d != 1) or (Cin != Cout)

    # Pad channels to the 128-lane width so every vreg is fully occupied and
    # the output store is lane-dense.
    Cp = ((Cin + LANES - 1) // LANES) * LANES
    Cop = ((Cout + LANES - 1) // LANES) * LANES

    # NCHW -> NHWC, zero-pad H/W by 1 (3x3 "same") and channels to Cp.
    x_nhwc = jnp.transpose(x_nchw, (0, 2, 3, 1)).astype(jnp.float32)
    x_pad = jnp.pad(x_nhwc, ((0, 0), (1, 1), (1, 1), (0, Cp - Cin)))

    inv_pool = 1.0 / (d * d)
    # Fold BN scales (and the avg-pool 1/d^2 where the pool follows the conv)
    # into the conv weight columns; only the biases stay in the kernel.
    w1 = params["w1"] * params["s1"][0][None, None, :] * inv_pool
    w2 = params["w2"] * params["s2"][0][None, None, :]
    w1p = jnp.zeros((9, Cp, Cop), jnp.float32).at[:, :Cin, :Cout].set(w1)
    w2p = jnp.zeros((9, Cop, Cop), jnp.float32).at[:, :Cout, :Cout].set(w2)
    b1p = jnp.zeros((1, Cop), jnp.float32).at[:, :Cout].set(params["b1"])
    b2p = jnp.zeros((1, Cop), jnp.float32).at[:, :Cout].set(params["b2"])

    args = [x_pad, w1p, b1p, w2p, b2p]
    in_specs = [
        pl.BlockSpec((None, H + 2, W + 2, Cp), lambda n: (n, 0, 0, 0)),
        pl.BlockSpec((9, Cp, Cop), lambda n: (0, 0, 0)),   # w1 (resident)
        pl.BlockSpec((1, Cop), lambda n: (0, 0)),          # b1
        pl.BlockSpec((9, Cop, Cop), lambda n: (0, 0, 0)),  # w2 (resident)
        pl.BlockSpec((1, Cop), lambda n: (0, 0)),          # b2
    ]
    if has_downsample:
        wd = params["wd"] * params["sd"][0][None, :] * inv_pool
        wdp = jnp.zeros((Cp, Cop), jnp.float32).at[:Cin, :Cout].set(wd)
        bdp = jnp.zeros((1, Cop), jnp.float32).at[:, :Cout].set(params["bd"])
        args += [wdp, bdp]
        in_specs += [pl.BlockSpec((Cp, Cop), lambda n: (0, 0)),
                     pl.BlockSpec((1, Cop), lambda n: (0, 0))]

    kernel = functools.partial(
        _residual_block_kernel, H=H, W=W, Cp=Cp, Cop=Cop, d=d,
        has_downsample=has_downsample,
        drop_final_activation=drop_final_activation)

    out_nhwc = pl.pallas_call(
        kernel,
        out_shape=jax.ShapeDtypeStruct((N, Hd, Wd, Cop), jnp.float32),
        grid_spec=pltpu.PrefetchScalarGridSpec(
            num_scalar_prefetch=0,
            grid=(N,),
            in_specs=in_specs,
            out_specs=pl.BlockSpec((None, Hd, Wd, Cop),
                                   lambda n: (n, 0, 0, 0)),
            scratch_shapes=[pltpu.VMEM((Hd + 2, Wd + 2, Cop), jnp.float32)],
        ),
        compiler_params=pltpu.CompilerParams(
            dimension_semantics=("parallel",)),
    )(*args)

    # Drop channel padding, NHWC -> NCHW to match PyTorch output layout.
    return jnp.transpose(out_nhwc[..., :Cout], (0, 3, 1, 2))


def _fold_bn(gamma, beta, mean, var):
    scale = gamma / jnp.sqrt(var + BN_EPS)
    bias = beta - mean * scale
    return scale[None, :], bias[None, :]


def make_params(key, in_planes, out_planes):
    ks = jax.random.split(key, 9)
    # conv weights stored as (tap, Cin, Cout) — HWIO flattened over the 3x3 taps.
    w1 = jax.random.normal(ks[0], (9, in_planes, out_planes), jnp.float32) * 0.1
    w2 = jax.random.normal(ks[1], (9, out_planes, out_planes), jnp.float32) * 0.1
    wd = jax.random.normal(ks[2], (in_planes, out_planes), jnp.float32) * 0.1

    def bn(k):
        k1, k2, k3, k4 = jax.random.split(k, 4)
        gamma = jax.random.uniform(k1, (out_planes,), minval=0.5, maxval=1.5)
        beta = jax.random.normal(k2, (out_planes,)) * 0.1
        mean = jax.random.normal(k3, (out_planes,)) * 0.1
        var = jax.random.uniform(k4, (out_planes,), minval=0.5, maxval=1.5)
        return _fold_bn(gamma, beta, mean, var)

    s1, b1 = bn(ks[3])
    s2, b2 = bn(ks[4])
    sd, bd = bn(ks[5])
    return dict(w1=w1, w2=w2, wd=wd, s1=s1, b1=b1, s2=s2, b2=b2, sd=sd, bd=bd)


def reference_forward(x_nchw, params, *, downsample_factor=1,
                      drop_final_activation=False):
    """Plain-JAX reference mirroring the PyTorch forward (eval-mode BN)."""
    d = downsample_factor
    N, Cin, H, W = x_nchw.shape
    Cout = params["w1"].shape[-1]
    x = jnp.transpose(x_nchw, (0, 2, 3, 1)).astype(jnp.float32)
    dn = ("NHWC", "HWIO", "NHWC")

    def pool(t):
        if d == 1:
            return t
        n, h, w, c = t.shape
        return t.reshape(n, h // d, d, w // d, d, c).mean(axis=(2, 4))

    w1 = params["w1"].reshape(3, 3, Cin, Cout)
    w2 = params["w2"].reshape(3, 3, Cout, Cout)
    y = lax.conv_general_dilated(x, w1, (1, 1), ((1, 1), (1, 1)),
                                 dimension_numbers=dn)
    y = pool(y)
    y = _leaky(y * params["s1"][0] + params["b1"][0])
    y = lax.conv_general_dilated(y, w2, (1, 1), ((1, 1), (1, 1)),
                                 dimension_numbers=dn)
    y = y * params["s2"][0] + params["b2"][0]

    if d != 1 or Cin != Cout:
        ident = jnp.einsum("nhwc,co->nhwo", x, params["wd"])
        ident = pool(ident)
        ident = ident * params["sd"][0] + params["bd"][0]
    else:
        ident = x
    out = y + ident
    if not drop_final_activation:
        out = _leaky(out)
    return jnp.transpose(out, (0, 3, 1, 2))


if __name__ == "__main__":
    key = jax.random.PRNGKey(0)
    kx1, kp1, kx2, kp2 = jax.random.split(key, 4)

    # Config 1: downsample branch active (d=2, Cin != Cout).
    N, Cin, Cout, H, W, d = 2, 4, 8, 16, 16, 2
    x = jax.random.normal(kx1, (N, Cin, H, W), jnp.float32)
    params = make_params(kp1, Cin, Cout)
    out = residual_block_forward(x, params, downsample_factor=d,
                                 drop_final_activation=False)
    out = jax.block_until_ready(out)
    ref = reference_forward(x, params, downsample_factor=d,
                            drop_final_activation=False)
    assert out.shape == (N, Cout, H // d, W // d), out.shape
    if not jnp.allclose(out, ref, atol=1e-4, rtol=1e-4):
        raise AssertionError("Pallas output mismatch (downsample config)")

    # Config 2: plain residual (d=1, Cin == Cout), drop_final_activation=True.
    N2, C2, H2, W2 = 2, 8, 16, 16
    x2 = jax.random.normal(kx2, (N2, C2, H2, W2), jnp.float32)
    params2 = make_params(kp2, C2, C2)
    out2 = residual_block_forward(x2, params2, downsample_factor=1,
                                  drop_final_activation=True)
    out2 = jax.block_until_ready(out2)
    ref2 = reference_forward(x2, params2, downsample_factor=1,
                             drop_final_activation=True)
    assert out2.shape == (N2, C2, H2, W2), out2.shape
    if not jnp.allclose(out2, ref2, atol=1e-4, rtol=1e-4):
        raise AssertionError("Pallas output mismatch (identity config)")

    print("KERNEL_OK")
</pallas_src>

<mosaic_0001>
module attributes {stable_mosaic.version = 11 : i64} {
  func.func @_residual_block_kernel(%arg0: i32, %arg1: memref<1x18x18x128xf32, #tpu.memory_space<vmem>>, %arg2: memref<9x128x128xf32, #tpu.memory_space<vmem>>, %arg3: memref<1x128xf32, #tpu.memory_space<vmem>>, %arg4: memref<9x128x128xf32, #tpu.memory_space<vmem>>, %arg5: memref<1x128xf32, #tpu.memory_space<vmem>>, %arg6: memref<128x128xf32, #tpu.memory_space<vmem>>, %arg7: memref<1x128xf32, #tpu.memory_space<vmem>>, %arg8: memref<1x8x8x128xf32, #tpu.memory_space<vmem>>, %arg9: memref<10x10x128xf32, #tpu.memory_space<vmem>>) attributes {dimension_semantics = [#tpu.dimension_semantics<parallel>], iteration_bounds = array<i64: 2>, scalar_prefetch = 0 : i64, scratch_operands = 1 : i64, tpu.core_type = #tpu.core_type<tc>, window_params = [{transform_indices = @transform_0, window_bounds = array<i64: 1, 18, 18, 128>}, {pipeline_mode = #tpu.pipeline_mode<synchronous>, transform_indices = @transform_1, window_bounds = array<i64: 9, 128, 128>}, {pipeline_mode = #tpu.pipeline_mode<synchronous>, transform_indices = @transform_2, window_bounds = array<i64: 1, 128>}, {pipeline_mode = #tpu.pipeline_mode<synchronous>, transform_indices = @transform_3, window_bounds = array<i64: 9, 128, 128>}, {pipeline_mode = #tpu.pipeline_mode<synchronous>, transform_indices = @transform_4, window_bounds = array<i64: 1, 128>}, {pipeline_mode = #tpu.pipeline_mode<synchronous>, transform_indices = @transform_5, window_bounds = array<i64: 128, 128>}, {pipeline_mode = #tpu.pipeline_mode<synchronous>, transform_indices = @transform_6, window_bounds = array<i64: 1, 128>}, {transform_indices = @transform_7, window_bounds = array<i64: 1, 8, 8, 128>}]} {
    %c0 = arith.constant 0 : index
    %c0_0 = arith.constant 0 : index
    %c0_1 = arith.constant 0 : index
    %c0_2 = arith.constant 0 : index
    %0 = tpu.strided_load %arg1[%c0, %c0_0, %c0_1, %c0_2] {strides = array<i32: 1, 2, 2, 1>} : memref<1x18x18x128xf32, #tpu.memory_space<vmem>>, vector<1x8x8x128xf32>
    %1 = vector.shape_cast %0 : vector<1x8x8x128xf32> to vector<8x8x128xf32>
    %c0_3 = arith.constant 0 : index
    %c0_4 = arith.constant 0 : index
    %c1 = arith.constant 1 : index
    %c0_5 = arith.constant 0 : index
    %2 = tpu.strided_load %arg1[%c0_3, %c0_4, %c1, %c0_5] {strides = array<i32: 1, 2, 2, 1>} : memref<1x18x18x128xf32, #tpu.memory_space<vmem>>, vector<1x8x8x128xf32>
    %3 = vector.shape_cast %2 : vector<1x8x8x128xf32> to vector<8x8x128xf32>
    %c0_6 = arith.constant 0 : index
    %c0_7 = arith.constant 0 : index
    %c2 = arith.constant 2 : index
    %c0_8 = arith.constant 0 : index
    %4 = tpu.strided_load %arg1[%c0_6, %c0_7, %c2, %c0_8] {strides = array<i32: 1, 2, 2, 1>} : memref<1x18x18x128xf32, #tpu.memory_space<vmem>>, vector<1x8x8x128xf32>
    %5 = vector.shape_cast %4 : vector<1x8x8x128xf32> to vector<8x8x128xf32>
    %c0_9 = arith.constant 0 : index
    %c0_10 = arith.constant 0 : index
    %c3 = arith.constant 3 : index
    %c0_11 = arith.constant 0 : index
    %6 = tpu.strided_load %arg1[%c0_9, %c0_10, %c3, %c0_11] {strides = array<i32: 1, 2, 2, 1>} : memref<1x18x18x128xf32, #tpu.memory_space<vmem>>, vector<1x8x8x128xf32>
    %7 = vector.shape_cast %6 : vector<1x8x8x128xf32> to vector<8x8x128xf32>
    %c0_12 = arith.constant 0 : index
    %c1_13 = arith.constant 1 : index
    %c0_14 = arith.constant 0 : index
    %c0_15 = arith.constant 0 : index
    %8 = tpu.strided_load %arg1[%c0_12, %c1_13, %c0_14, %c0_15] {strides = array<i32: 1, 2, 2, 1>} : memref<1x18x18x128xf32, #tpu.memory_space<vmem>>, vector<1x8x8x128xf32>
    %9 = vector.shape_cast %8 : vector<1x8x8x128xf32> to vector<8x8x128xf32>
    %c0_16 = arith.constant 0 : index
    %c1_17 = arith.constant 1 : index
    %c1_18 = arith.constant 1 : index
    %c0_19 = arith.constant 0 : index
    %10 = tpu.strided_load %arg1[%c0_16, %c1_17, %c1_18, %c0_19] {strides = array<i32: 1, 2, 2, 1>} : memref<1x18x18x128xf32, #tpu.memory_space<vmem>>, vector<1x8x8x128xf32>
    %11 = vector.shape_cast %10 : vector<1x8x8x128xf32> to vector<8x8x128xf32>
    %c0_20 = arith.constant 0 : index
    %c1_21 = arith.constant 1 : index
    %c2_22 = arith.constant 2 : index
    %c0_23 = arith.constant 0 : index
    %12 = tpu.strided_load %arg1[%c0_20, %c1_21, %c2_22, %c0_23] {strides = array<i32: 1, 2, 2, 1>} : memref<1x18x18x128xf32, #tpu.memory_space<vmem>>, vector<1x8x8x128xf32>
    %13 = vector.shape_cast %12 : vector<1x8x8x128xf32> to vector<8x8x128xf32>
    %c0_24 = arith.constant 0 : index
    %c1_25 = arith.constant 1 : index
    %c3_26 = arith.constant 3 : index
    %c0_27 = arith.constant 0 : index
    %14 = tpu.strided_load %arg1[%c0_24, %c1_25, %c3_26, %c0_27] {strides = array<i32: 1, 2, 2, 1>} : memref<1x18x18x128xf32, #tpu.memory_space<vmem>>, vector<1x8x8x128xf32>
    %15 = vector.shape_cast %14 : vector<1x8x8x128xf32> to vector<8x8x128xf32>
    %c0_28 = arith.constant 0 : index
    %c2_29 = arith.constant 2 : index
    %c0_30 = arith.constant 0 : index
    %c0_31 = arith.constant 0 : index
    %16 = tpu.strided_load %arg1[%c0_28, %c2_29, %c0_30, %c0_31] {strides = array<i32: 1, 2, 2, 1>} : memref<1x18x18x128xf32, #tpu.memory_space<vmem>>, vector<1x8x8x128xf32>
    %17 = vector.shape_cast %16 : vector<1x8x8x128xf32> to vector<8x8x128xf32>
    %c0_32 = arith.constant 0 : index
    %c2_33 = arith.constant 2 : index
    %c1_34 = arith.constant 1 : index
    %c0_35 = arith.constant 0 : index
    %18 = tpu.strided_load %arg1[%c0_32, %c2_33, %c1_34, %c0_35] {strides = array<i32: 1, 2, 2, 1>} : memref<1x18x18x128xf32, #tpu.memory_space<vmem>>, vector<1x8x8x128xf32>
    %19 = vector.shape_cast %18 : vector<1x8x8x128xf32> to vector<8x8x128xf32>
    %c0_36 = arith.constant 0 : index
    %c2_37 = arith.constant 2 : index
    %c2_38 = arith.constant 2 : index
    %c0_39 = arith.constant 0 : index
    %20 = tpu.strided_load %arg1[%c0_36, %c2_37, %c2_38, %c0_39] {strides = array<i32: 1, 2, 2, 1>} : memref<1x18x18x128xf32, #tpu.memory_space<vmem>>, vector<1x8x8x128xf32>
    %21 = vector.shape_cast %20 : vector<1x8x8x128xf32> to vector<8x8x128xf32>
    %c0_40 = arith.constant 0 : index
    %c2_41 = arith.constant 2 : index
    %c3_42 = arith.constant 3 : index
    %c0_43 = arith.constant 0 : index
    %22 = tpu.strided_load %arg1[%c0_40, %c2_41, %c3_42, %c0_43] {strides = array<i32: 1, 2, 2, 1>} : memref<1x18x18x128xf32, #tpu.memory_space<vmem>>, vector<1x8x8x128xf32>
    %23 = vector.shape_cast %22 : vector<1x8x8x128xf32> to vector<8x8x128xf32>
    %c0_44 = arith.constant 0 : index
    %c3_45 = arith.constant 3 : index
    %c0_46 = arith.constant 0 : index
    %c0_47 = arith.constant 0 : index
    %24 = tpu.strided_load %arg1[%c0_44, %c3_45, %c0_46, %c0_47] {strides = array<i32: 1, 2, 2, 1>} : memref<1x18x18x128xf32, #tpu.memory_space<vmem>>, vector<1x8x8x128xf32>
    %25 = vector.shape_cast %24 : vector<1x8x8x128xf32> to vector<8x8x128xf32>
    %c0_48 = arith.constant 0 : index
    %c3_49 = arith.constant 3 : index
    %c1_50 = arith.constant 1 : index
    %c0_51 = arith.constant 0 : index
    %26 = tpu.strided_load %arg1[%c0_48, %c3_49, %c1_50, %c0_51] {strides = array<i32: 1, 2, 2, 1>} : memref<1x18x18x128xf32, #tpu.memory_space<vmem>>, vector<1x8x8x128xf32>
    %27 = vector.shape_cast %26 : vector<1x8x8x128xf32> to vector<8x8x128xf32>
    %c0_52 = arith.constant 0 : index
    %c3_53 = arith.constant 3 : index
    %c2_54 = arith.constant 2 : index
    %c0_55 = arith.constant 0 : index
    %28 = tpu.strided_load %arg1[%c0_52, %c3_53, %c2_54, %c0_55] {strides = array<i32: 1, 2, 2, 1>} : memref<1x18x18x128xf32, #tpu.memory_space<vmem>>, vector<1x8x8x128xf32>
    %29 = vector.shape_cast %28 : vector<1x8x8x128xf32> to vector<8x8x128xf32>
    %c0_56 = arith.constant 0 : index
    %c3_57 = arith.constant 3 : index
    %c3_58 = arith.constant 3 : index
    %c0_59 = arith.constant 0 : index
    %30 = tpu.strided_load %arg1[%c0_56, %c3_57, %c3_58, %c0_59] {strides = array<i32: 1, 2, 2, 1>} : memref<1x18x18x128xf32, #tpu.memory_space<vmem>>, vector<1x8x8x128xf32>
    %31 = vector.shape_cast %30 : vector<1x8x8x128xf32> to vector<8x8x128xf32>
    %cst = arith.constant 0.000000e+00 : f32
    %32 = vector.broadcast %cst : f32 to vector<64x128xf32>
    %33 = arith.addf %1, %3 : vector<8x8x128xf32>
    %34 = arith.addf %33, %9 : vector<8x8x128xf32>
    %35 = arith.addf %34, %11 : vector<8x8x128xf32>
    %36 = vector.shape_cast %35 : vector<8x8x128xf32> to vector<64x128xf32>
    %c0_60 = arith.constant 0 : index
    %c0_61 = arith.constant 0 : index
    %c0_62 = arith.constant 0 : index
    %37 = vector.load %arg2[%c0_60, %c0_61, %c0_62] : memref<9x128x128xf32, #tpu.memory_space<vmem>>, vector<1x128x128xf32>
    %38 = vector.shape_cast %37 : vector<1x128x128xf32> to vector<128x128xf32>
    %cst_63 = arith.constant dense<0.000000e+00> : vector<64x128xf32>
    %39 = tpu.matmul %36, %38, %cst_63 {dimension_numbers = #tpu.dot_dimension_numbers<[1], [0], [0], [1], [0, 0, 1, 1], [], []>} : vector<64x128xf32>, vector<128x128xf32>, vector<64x128xf32> -> vector<64x128xf32>
    %40 = arith.addf %32, %39 : vector<64x128xf32>
    %41 = arith.addf %3, %5 : vector<8x8x128xf32>
    %42 = arith.addf %41, %11 : vector<8x8x128xf32>
    %43 = arith.addf %42, %13 : vector<8x8x128xf32>
    %44 = vector.shape_cast %43 : vector<8x8x128xf32> to vector<64x128xf32>
    %c1_64 = arith.constant 1 : index
    %c0_65 = arith.constant 0 : index
    %c0_66 = arith.constant 0 : index
    %45 = vector.load %arg2[%c1_64, %c0_65, %c0_66] : memref<9x128x128xf32, #tpu.memory_space<vmem>>, vector<1x128x128xf32>
    %46 = vector.shape_cast %45 : vector<1x128x128xf32> to vector<128x128xf32>
    %cst_67 = arith.constant dense<0.000000e+00> : vector<64x128xf32>
    %47 = tpu.matmul %44, %46, %cst_67 {dimension_numbers = #tpu.dot_dimension_numbers<[1], [0], [0], [1], [0, 0, 1, 1], [], []>} : vector<64x128xf32>, vector<128x128xf32>, vector<64x128xf32> -> vector<64x128xf32>
    %48 = arith.addf %40, %47 : vector<64x128xf32>
    %49 = arith.addf %5, %7 : vector<8x8x128xf32>
    %50 = arith.addf %49, %13 : vector<8x8x128xf32>
    %51 = arith.addf %50, %15 : vector<8x8x128xf32>
    %52 = vector.shape_cast %51 : vector<8x8x128xf32> to vector<64x128xf32>
    %c2_68 = arith.constant 2 : index
    %c0_69 = arith.constant 0 : index
    %c0_70 = arith.constant 0 : index
    %53 = vector.load %arg2[%c2_68, %c0_69, %c0_70] : memref<9x128x128xf32, #tpu.memory_space<vmem>>, vector<1x128x128xf32>
    %54 = vector.shape_cast %53 : vector<1x128x128xf32> to vector<128x128xf32>
    %cst_71 = arith.constant dense<0.000000e+00> : vector<64x128xf32>
    %55 = tpu.matmul %52, %54, %cst_71 {dimension_numbers = #tpu.dot_dimension_numbers<[1], [0], [0], [1], [0, 0, 1, 1], [], []>} : vector<64x128xf32>, vector<128x128xf32>, vector<64x128xf32> -> vector<64x128xf32>
    %56 = arith.addf %48, %55 : vector<64x128xf32>
    %57 = arith.addf %9, %11 : vector<8x8x128xf32>
    %58 = arith.addf %57, %17 : vector<8x8x128xf32>
    %59 = arith.addf %58, %19 : vector<8x8x128xf32>
    %60 = vector.shape_cast %59 : vector<8x8x128xf32> to vector<64x128xf32>
    %c3_72 = arith.constant 3 : index
    %c0_73 = arith.constant 0 : index
    %c0_74 = arith.constant 0 : index
    %61 = vector.load %arg2[%c3_72, %c0_73, %c0_74] : memref<9x128x128xf32, #tpu.memory_space<vmem>>, vector<1x128x128xf32>
    %62 = vector.shape_cast %61 : vector<1x128x128xf32> to vector<128x128xf32>
    %cst_75 = arith.constant dense<0.000000e+00> : vector<64x128xf32>
    %63 = tpu.matmul %60, %62, %cst_75 {dimension_numbers = #tpu.dot_dimension_numbers<[1], [0], [0], [1], [0, 0, 1, 1], [], []>} : vector<64x128xf32>, vector<128x128xf32>, vector<64x128xf32> -> vector<64x128xf32>
    %64 = arith.addf %56, %63 : vector<64x128xf32>
    %65 = arith.addf %11, %13 : vector<8x8x128xf32>
    %66 = arith.addf %65, %19 : vector<8x8x128xf32>
    %67 = arith.addf %66, %21 : vector<8x8x128xf32>
    %68 = vector.shape_cast %67 : vector<8x8x128xf32> to vector<64x128xf32>
    %c4 = arith.constant 4 : index
    %c0_76 = arith.constant 0 : index
    %c0_77 = arith.constant 0 : index
    %69 = vector.load %arg2[%c4, %c0_76, %c0_77] : memref<9x128x128xf32, #tpu.memory_space<vmem>>, vector<1x128x128xf32>
    %70 = vector.shape_cast %69 : vector<1x128x128xf32> to vector<128x128xf32>
    %cst_78 = arith.constant dense<0.000000e+00> : vector<64x128xf32>
    %71 = tpu.matmul %68, %70, %cst_78 {dimension_numbers = #tpu.dot_dimension_numbers<[1], [0], [0], [1], [0, 0, 1, 1], [], []>} : vector<64x128xf32>, vector<128x128xf32>, vector<64x128xf32> -> vector<64x128xf32>
    %72 = arith.addf %64, %71 : vector<64x128xf32>
    %73 = arith.addf %13, %15 : vector<8x8x128xf32>
    %74 = arith.addf %73, %21 : vector<8x8x128xf32>
    %75 = arith.addf %74, %23 : vector<8x8x128xf32>
    %76 = vector.shape_cast %75 : vector<8x8x128xf32> to vector<64x128xf32>
    %c5 = arith.constant 5 : index
    %c0_79 = arith.constant 0 : index
    %c0_80 = arith.constant 0 : index
    %77 = vector.load %arg2[%c5, %c0_79, %c0_80] : memref<9x128x128xf32, #tpu.memory_space<vmem>>, vector<1x128x128xf32>
    %78 = vector.shape_cast %77 : vector<1x128x128xf32> to vector<128x128xf32>
    %cst_81 = arith.constant dense<0.000000e+00> : vector<64x128xf32>
    %79 = tpu.matmul %76, %78, %cst_81 {dimension_numbers = #tpu.dot_dimension_numbers<[1], [0], [0], [1], [0, 0, 1, 1], [], []>} : vector<64x128xf32>, vector<128x128xf32>, vector<64x128xf32> -> vector<64x128xf32>
    %80 = arith.addf %72, %79 : vector<64x128xf32>
    %81 = arith.addf %17, %19 : vector<8x8x128xf32>
    %82 = arith.addf %81, %25 : vector<8x8x128xf32>
    %83 = arith.addf %82, %27 : vector<8x8x128xf32>
    %84 = vector.shape_cast %83 : vector<8x8x128xf32> to vector<64x128xf32>
    %c6 = arith.constant 6 : index
    %c0_82 = arith.constant 0 : index
    %c0_83 = arith.constant 0 : index
    %85 = vector.load %arg2[%c6, %c0_82, %c0_83] : memref<9x128x128xf32, #tpu.memory_space<vmem>>, vector<1x128x128xf32>
    %86 = vector.shape_cast %85 : vector<1x128x128xf32> to vector<128x128xf32>
    %cst_84 = arith.constant dense<0.000000e+00> : vector<64x128xf32>
    %87 = tpu.matmul %84, %86, %cst_84 {dimension_numbers = #tpu.dot_dimension_numbers<[1], [0], [0], [1], [0, 0, 1, 1], [], []>} : vector<64x128xf32>, vector<128x128xf32>, vector<64x128xf32> -> vector<64x128xf32>
    %88 = arith.addf %80, %87 : vector<64x128xf32>
    %89 = arith.addf %19, %21 : vector<8x8x128xf32>
    %90 = arith.addf %89, %27 : vector<8x8x128xf32>
    %91 = arith.addf %90, %29 : vector<8x8x128xf32>
    %92 = vector.shape_cast %91 : vector<8x8x128xf32> to vector<64x128xf32>
    %c7 = arith.constant 7 : index
    %c0_85 = arith.constant 0 : index
    %c0_86 = arith.constant 0 : index
    %93 = vector.load %arg2[%c7, %c0_85, %c0_86] : memref<9x128x128xf32, #tpu.memory_space<vmem>>, vector<1x128x128xf32>
    %94 = vector.shape_cast %93 : vector<1x128x128xf32> to vector<128x128xf32>
    %cst_87 = arith.constant dense<0.000000e+00> : vector<64x128xf32>
    %95 = tpu.matmul %92, %94, %cst_87 {dimension_numbers = #tpu.dot_dimension_numbers<[1], [0], [0], [1], [0, 0, 1, 1], [], []>} : vector<64x128xf32>, vector<128x128xf32>, vector<64x128xf32> -> vector<64x128xf32>
    %96 = arith.addf %88, %95 : vector<64x128xf32>
    %97 = arith.addf %21, %23 : vector<8x8x128xf32>
    %98 = arith.addf %97, %29 : vector<8x8x128xf32>
    %99 = arith.addf %98, %31 : vector<8x8x128xf32>
    %100 = vector.shape_cast %99 : vector<8x8x128xf32> to vector<64x128xf32>
    %c8 = arith.constant 8 : index
    %c0_88 = arith.constant 0 : index
    %c0_89 = arith.constant 0 : index
    %101 = vector.load %arg2[%c8, %c0_88, %c0_89] : memref<9x128x128xf32, #tpu.memory_space<vmem>>, vector<1x128x128xf32>
    %102 = vector.shape_cast %101 : vector<1x128x128xf32> to vector<128x128xf32>
    %cst_90 = arith.constant dense<0.000000e+00> : vector<64x128xf32>
    %103 = tpu.matmul %100, %102, %cst_90 {dimension_numbers = #tpu.dot_dimension_numbers<[1], [0], [0], [1], [0, 0, 1, 1], [], []>} : vector<64x128xf32>, vector<128x128xf32>, vector<64x128xf32> -> vector<64x128xf32>
    %104 = arith.addf %96, %103 : vector<64x128xf32>
    %c0_91 = arith.constant 0 : index
    %c0_92 = arith.constant 0 : index
    %105 = vector.load %arg3[%c0_91, %c0_92] : memref<1x128xf32, #tpu.memory_space<vmem>>, vector<1x128xf32>
    %106 = vector.shape_cast %105 : vector<1x128xf32> to vector<128xf32>
    %107 = vector.shape_cast %106 : vector<128xf32> to vector<1x128xf32>
    %108 = vector.broadcast %107 : vector<1x128xf32> to vector<64x128xf32>
    %109 = arith.addf %104, %108 : vector<64x128xf32>
    %cst_93 = arith.constant 0.000000e+00 : f32
    %110 = vector.broadcast %cst_93 : f32 to vector<64x128xf32>
    %111 = arith.cmpf ogt, %109, %110 : vector<64x128xf32>
    %cst_94 = arith.constant 2.000000e-01 : f32
    %112 = vector.broadcast %cst_94 : f32 to vector<64x128xf32>
    %113 = arith.mulf %112, %109 : vector<64x128xf32>
    %114 = arith.select %111, %109, %113 : vector<64x128xi1>, vector<64x128xf32>
    %115 = vector.shape_cast %114 : vector<64x128xf32> to vector<8x8x128xf32>
    %cst_95 = arith.constant 0.000000e+00 : f32
    %116 = vector.broadcast %cst_95 : f32 to vector<1x10x128xf32>
    %cst_96 = arith.constant 0.000000e+00 : f32
    %117 = vector.broadcast %cst_96 : f32 to vector<8x1x128xf32>
    %c0_97 = arith.constant 0 : index
    %c0_98 = arith.constant 0 : index
    %c0_99 = arith.constant 0 : index
    %118 = vector.load %arg9[%c0_97, %c0_98, %c0_99] : memref<10x10x128xf32, #tpu.memory_space<vmem>>, vector<1x10x128xf32>
    tpu.vector_store %arg9[%c0_97, %c0_98, %c0_99], %116 {strides = array<i32>} : memref<10x10x128xf32, #tpu.memory_space<vmem>>, vector<1x10x128xf32>,
    %c9 = arith.constant 9 : index
    %c0_100 = arith.constant 0 : index
    %c0_101 = arith.constant 0 : index
    %119 = vector.load %arg9[%c9, %c0_100, %c0_101] : memref<10x10x128xf32, #tpu.memory_space<vmem>>, vector<1x10x128xf32>
    tpu.vector_store %arg9[%c9, %c0_100, %c0_101], %116 {strides = array<i32>} : memref<10x10x128xf32, #tpu.memory_space<vmem>>, vector<1x10x128xf32>,
    %c1_102 = arith.constant 1 : index
    %c0_103 = arith.constant 0 : index
    %c0_104 = arith.constant 0 : index
    %120 = vector.load %arg9[%c1_102, %c0_103, %c0_104] : memref<10x10x128xf32, #tpu.memory_space<vmem>>, vector<8x1x128xf32>
    tpu.vector_store %arg9[%c1_102, %c0_103, %c0_104], %117 {strides = array<i32>} : memref<10x10x128xf32, #tpu.memory_space<vmem>>, vector<8x1x128xf32>,
    %c1_105 = arith.constant 1 : index
    %c9_106 = arith.constant 9 : index
    %c0_107 = arith.constant 0 : index
    %121 = vector.load %arg9[%c1_105, %c9_106, %c0_107] : memref<10x10x128xf32, #tpu.memory_space<vmem>>, vector<8x1x128xf32>
    tpu.vector_store %arg9[%c1_105, %c9_106, %c0_107], %117 {strides = array<i32>} : memref<10x10x128xf32, #tpu.memory_space<vmem>>, vector<8x1x128xf32>,
    %c1_108 = arith.constant 1 : index
    %c1_109 = arith.constant 1 : index
    %c0_110 = arith.constant 0 : index
    %122 = vector.load %arg9[%c1_108, %c1_109, %c0_110] : memref<10x10x128xf32, #tpu.memory_space<vmem>>, vector<8x8x128xf32>
    tpu.vector_store %arg9[%c1_108, %c1_109, %c0_110], %115 {strides = array<i32>} : memref<10x10x128xf32, #tpu.memory_space<vmem>>, vector<8x8x128xf32>,
    %cst_111 = arith.constant 0.000000e+00 : f32
    %123 = vector.broadcast %cst_111 : f32 to vector<64x128xf32>
    %c0_112 = arith.constant 0 : index
    %c0_113 = arith.constant 0 : index
    %c0_114 = arith.constant 0 : index
    %124 = vector.load %arg9[%c0_112, %c0_113, %c0_114] : memref<10x10x128xf32, #tpu.memory_space<vmem>>, vector<8x8x128xf32>
    %125 = vector.shape_cast %124 : vector<8x8x128xf32> to vector<64x128xf32>
    %c0_115 = arith.constant 0 : index
    %c0_116 = arith.constant 0 : index
    %c0_117 = arith.constant 0 : index
    %126 = vector.load %arg4[%c0_115, %c0_116, %c0_117] : memref<9x128x128xf32, #tpu.memory_space<vmem>>, vector<1x128x128xf32>
    %127 = vector.shape_cast %126 : vector<1x128x128xf32> to vector<128x128xf32>
    %cst_118 = arith.constant dense<0.000000e+00> : vector<64x128xf32>
    %128 = tpu.matmul %125, %127, %cst_118 {dimension_numbers = #tpu.dot_dimension_numbers<[1], [0], [0], [1], [0, 0, 1, 1], [], []>} : vector<64x128xf32>, vector<128x128xf32>, vector<64x128xf32> -> vector<64x128xf32>
    %129 = arith.addf %123, %128 : vector<64x128xf32>
    %c0_119 = arith.constant 0 : index
    %c1_120 = arith.constant 1 : index
    %c0_121 = arith.constant 0 : index
    %130 = vector.load %arg9[%c0_119, %c1_120, %c0_121] : memref<10x10x128xf32, #tpu.memory_space<vmem>>, vector<8x8x128xf32>
    %131 = vector.shape_cast %130 : vector<8x8x128xf32> to vector<64x128xf32>
    %c1_122 = arith.constant 1 : index
    %c0_123 = arith.constant 0 : index
    %c0_124 = arith.constant 0 : index
    %132 = vector.load %arg4[%c1_122, %c0_123, %c0_124] : memref<9x128x128xf32, #tpu.memory_space<vmem>>, vector<1x128x128xf32>
    %133 = vector.shape_cast %132 : vector<1x128x128xf32> to vector<128x128xf32>
    %cst_125 = arith.constant dense<0.000000e+00> : vector<64x128xf32>
    %134 = tpu.matmul %131, %133, %cst_125 {dimension_numbers = #tpu.dot_dimension_numbers<[1], [0], [0], [1], [0, 0, 1, 1], [], []>} : vector<64x128xf32>, vector<128x128xf32>, vector<64x128xf32> -> vector<64x128xf32>
    %135 = arith.addf %129, %134 : vector<64x128xf32>
    %c0_126 = arith.constant 0 : index
    %c2_127 = arith.constant 2 : index
    %c0_128 = arith.constant 0 : index
    %136 = vector.load %arg9[%c0_126, %c2_127, %c0_128] : memref<10x10x128xf32, #tpu.memory_space<vmem>>, vector<8x8x128xf32>
    %137 = vector.shape_cast %136 : vector<8x8x128xf32> to vector<64x128xf32>
    %c2_129 = arith.constant 2 : index
    %c0_130 = arith.constant 0 : index
    %c0_131 = arith.constant 0 : index
    %138 = vector.load %arg4[%c2_129, %c0_130, %c0_131] : memref<9x128x128xf32, #tpu.memory_space<vmem>>, vector<1x128x128xf32>
    %139 = vector.shape_cast %138 : vector<1x128x128xf32> to vector<128x128xf32>
    %cst_132 = arith.constant dense<0.000000e+00> : vector<64x128xf32>
    %140 = tpu.matmul %137, %139, %cst_132 {dimension_numbers = #tpu.dot_dimension_numbers<[1], [0], [0], [1], [0, 0, 1, 1], [], []>} : vector<64x128xf32>, vector<128x128xf32>, vector<64x128xf32> -> vector<64x128xf32>
    %141 = arith.addf %135, %140 : vector<64x128xf32>
    %c1_133 = arith.constant 1 : index
    %c0_134 = arith.constant 0 : index
    %c0_135 = arith.constant 0 : index
    %142 = vector.load %arg9[%c1_133, %c0_134, %c0_135] : memref<10x10x128xf32, #tpu.memory_space<vmem>>, vector<8x8x128xf32>
    %143 = vector.shape_cast %142 : vector<8x8x128xf32> to vector<64x128xf32>
    %c3_136 = arith.constant 3 : index
    %c0_137 = arith.constant 0 : index
    %c0_138 = arith.constant 0 : index
    %144 = vector.load %arg4[%c3_136, %c0_137, %c0_138] : memref<9x128x128xf32, #tpu.memory_space<vmem>>, vector<1x128x128xf32>
    %145 = vector.shape_cast %144 : vector<1x128x128xf32> to vector<128x128xf32>
    %cst_139 = arith.constant dense<0.000000e+00> : vector<64x128xf32>
    %146 = tpu.matmul %143, %145, %cst_139 {dimension_numbers = #tpu.dot_dimension_numbers<[1], [0], [0], [1], [0, 0, 1, 1], [], []>} : vector<64x128xf32>, vector<128x128xf32>, vector<64x128xf32> -> vector<64x128xf32>
    %147 = arith.addf %141, %146 : vector<64x128xf32>
    %c1_140 = arith.constant 1 : index
    %c1_141 = arith.constant 1 : index
    %c0_142 = arith.constant 0 : index
    %148 = vector.load %arg9[%c1_140, %c1_141, %c0_142] : memref<10x10x128xf32, #tpu.memory_space<vmem>>, vector<8x8x128xf32>
    %149 = vector.shape_cast %148 : vector<8x8x128xf32> to vector<64x128xf32>
    %c4_143 = arith.constant 4 : index
    %c0_144 = arith.constant 0 : index
    %c0_145 = arith.constant 0 : index
    %150 = vector.load %arg4[%c4_143, %c0_144, %c0_145] : memref<9x128x128xf32, #tpu.memory_space<vmem>>, vector<1x128x128xf32>
    %151 = vector.shape_cast %150 : vector<1x128x128xf32> to vector<128x128xf32>
    %cst_146 = arith.constant dense<0.000000e+00> : vector<64x128xf32>
    %152 = tpu.matmul %149, %151, %cst_146 {dimension_numbers = #tpu.dot_dimension_numbers<[1], [0], [0], [1], [0, 0, 1, 1], [], []>} : vector<64x128xf32>, vector<128x128xf32>, vector<64x128xf32> -> vector<64x128xf32>
    %153 = arith.addf %147, %152 : vector<64x128xf32>
    %c1_147 = arith.constant 1 : index
    %c2_148 = arith.constant 2 : index
    %c0_149 = arith.constant 0 : index
    %154 = vector.load %arg9[%c1_147, %c2_148, %c0_149] : memref<10x10x128xf32, #tpu.memory_space<vmem>>, vector<8x8x128xf32>
    %155 = vector.shape_cast %154 : vector<8x8x128xf32> to vector<64x128xf32>
    %c5_150 = arith.constant 5 : index
    %c0_151 = arith.constant 0 : index
    %c0_152 = arith.constant 0 : index
    %156 = vector.load %arg4[%c5_150, %c0_151, %c0_152] : memref<9x128x128xf32, #tpu.memory_space<vmem>>, vector<1x128x128xf32>
    %157 = vector.shape_cast %156 : vector<1x128x128xf32> to vector<128x128xf32>
    %cst_153 = arith.constant dense<0.000000e+00> : vector<64x128xf32>
    %158 = tpu.matmul %155, %157, %cst_153 {dimension_numbers = #tpu.dot_dimension_numbers<[1], [0], [0], [1], [0, 0, 1, 1], [], []>} : vector<64x128xf32>, vector<128x128xf32>, vector<64x128xf32> -> vector<64x128xf32>
    %159 = arith.addf %153, %158 : vector<64x128xf32>
    %c2_154 = arith.constant 2 : index
    %c0_155 = arith.constant 0 : index
    %c0_156 = arith.constant 0 : index
    %160 = vector.load %arg9[%c2_154, %c0_155, %c0_156] : memref<10x10x128xf32, #tpu.memory_space<vmem>>, vector<8x8x128xf32>
    %161 = vector.shape_cast %160 : vector<8x8x128xf32> to vector<64x128xf32>
    %c6_157 = arith.constant 6 : index
    %c0_158 = arith.constant 0 : index
    %c0_159 = arith.constant 0 : index
    %162 = vector.load %arg4[%c6_157, %c0_158, %c0_159] : memref<9x128x128xf32, #tpu.memory_space<vmem>>, vector<1x128x128xf32>
    %163 = vector.shape_cast %162 : vector<1x128x128xf32> to vector<128x128xf32>
    %cst_160 = arith.constant dense<0.000000e+00> : vector<64x128xf32>
    %164 = tpu.matmul %161, %163, %cst_160 {dimension_numbers = #tpu.dot_dimension_numbers<[1], [0], [0], [1], [0, 0, 1, 1], [], []>} : vector<64x128xf32>, vector<128x128xf32>, vector<64x128xf32> -> vector<64x128xf32>
    %165 = arith.addf %159, %164 : vector<64x128xf32>
    %c2_161 = arith.constant 2 : index
    %c1_162 = arith.constant 1 : index
    %c0_163 = arith.constant 0 : index
    %166 = vector.load %arg9[%c2_161, %c1_162, %c0_163] : memref<10x10x128xf32, #tpu.memory_space<vmem>>, vector<8x8x128xf32>
    %167 = vector.shape_cast %166 : vector<8x8x128xf32> to vector<64x128xf32>
    %c7_164 = arith.constant 7 : index
    %c0_165 = arith.constant 0 : index
    %c0_166 = arith.constant 0 : index
    %168 = vector.load %arg4[%c7_164, %c0_165, %c0_166] : memref<9x128x128xf32, #tpu.memory_space<vmem>>, vector<1x128x128xf32>
    %169 = vector.shape_cast %168 : vector<1x128x128xf32> to vector<128x128xf32>
    %cst_167 = arith.constant dense<0.000000e+00> : vector<64x128xf32>
    %170 = tpu.matmul %167, %169, %cst_167 {dimension_numbers = #tpu.dot_dimension_numbers<[1], [0], [0], [1], [0, 0, 1, 1], [], []>} : vector<64x128xf32>, vector<128x128xf32>, vector<64x128xf32> -> vector<64x128xf32>
    %171 = arith.addf %165, %170 : vector<64x128xf32>
    %c2_168 = arith.constant 2 : index
    %c2_169 = arith.constant 2 : index
    %c0_170 = arith.constant 0 : index
    %172 = vector.load %arg9[%c2_168, %c2_169, %c0_170] : memref<10x10x128xf32, #tpu.memory_space<vmem>>, vector<8x8x128xf32>
    %173 = vector.shape_cast %172 : vector<8x8x128xf32> to vector<64x128xf32>
    %c8_171 = arith.constant 8 : index
    %c0_172 = arith.constant 0 : index
    %c0_173 = arith.constant 0 : index
    %174 = vector.load %arg4[%c8_171, %c0_172, %c0_173] : memref<9x128x128xf32, #tpu.memory_space<vmem>>, vector<1x128x128xf32>
    %175 = vector.shape_cast %174 : vector<1x128x128xf32> to vector<128x128xf32>
    %cst_174 = arith.constant dense<0.000000e+00> : vector<64x128xf32>
    %176 = tpu.matmul %173, %175, %cst_174 {dimension_numbers = #tpu.dot_dimension_numbers<[1], [0], [0], [1], [0, 0, 1, 1], [], []>} : vector<64x128xf32>, vector<128x128xf32>, vector<64x128xf32> -> vector<64x128xf32>
    %177 = arith.addf %171, %176 : vector<64x128xf32>
    %c0_175 = arith.constant 0 : index
    %c0_176 = arith.constant 0 : index
    %178 = vector.load %arg5[%c0_175, %c0_176] : memref<1x128xf32, #tpu.memory_space<vmem>>, vector<1x128xf32>
    %179 = vector.shape_cast %178 : vector<1x128xf32> to vector<128xf32>
    %180 = vector.shape_cast %179 : vector<128xf32> to vector<1x128xf32>
    %181 = vector.broadcast %180 : vector<1x128xf32> to vector<64x128xf32>
    %182 = arith.addf %177, %181 : vector<64x128xf32>
    %183 = arith.addf %11, %13 : vector<8x8x128xf32>
    %184 = arith.addf %183, %19 : vector<8x8x128xf32>
    %185 = arith.addf %184, %21 : vector<8x8x128xf32>
    %186 = vector.shape_cast %185 : vector<8x8x128xf32> to vector<64x128xf32>
    %c0_177 = arith.constant 0 : index
    %c0_178 = arith.constant 0 : index
    %187 = vector.load %arg6[%c0_177, %c0_178] : memref<128x128xf32, #tpu.memory_space<vmem>>, vector<128x128xf32>
    %cst_179 = arith.constant dense<0.000000e+00> : vector<64x128xf32>
    %188 = tpu.matmul %186, %187, %cst_179 {dimension_numbers = #tpu.dot_dimension_numbers<[1], [0], [0], [1], [0, 0, 1, 1], [], []>} : vector<64x128xf32>, vector<128x128xf32>, vector<64x128xf32> -> vector<64x128xf32>
    %c0_180 = arith.constant 0 : index
    %c0_181 = arith.constant 0 : index
    %189 = vector.load %arg7[%c0_180, %c0_181] : memref<1x128xf32, #tpu.memory_space<vmem>>, vector<1x128xf32>
    %190 = vector.shape_cast %189 : vector<1x128xf32> to vector<128xf32>
    %191 = vector.shape_cast %190 : vector<128xf32> to vector<1x128xf32>
    %192 = vector.broadcast %191 : vector<1x128xf32> to vector<64x128xf32>
    %193 = arith.addf %188, %192 : vector<64x128xf32>
    %194 = arith.addf %182, %193 : vector<64x128xf32>
    %cst_182 = arith.constant 0.000000e+00 : f32
    %195 = vector.broadcast %cst_182 : f32 to vector<64x128xf32>
    %196 = arith.cmpf ogt, %194, %195 : vector<64x128xf32>
    %cst_183 = arith.constant 2.000000e-01 : f32
    %197 = vector.broadcast %cst_183 : f32 to vector<64x128xf32>
    %198 = arith.mulf %197, %194 : vector<64x128xf32>
    %199 = arith.select %196, %194, %198 : vector<64x128xi1>, vector<64x128xf32>
    %200 = vector.shape_cast %199 : vector<64x128xf32> to vector<8x8x128xf32>
    %c0_184 = arith.constant 0 : index
    %c0_185 = arith.constant 0 : index
    %c0_186 = arith.constant 0 : index
    %c0_187 = arith.constant 0 : index
    %201 = vector.load %arg8[%c0_184, %c0_185, %c0_186, %c0_187] : memref<1x8x8x128xf32, #tpu.memory_space<vmem>>, vector<1x8x8x128xf32>
    %202 = vector.shape_cast %201 : vector<1x8x8x128xf32> to vector<8x8x128xf32>
    %203 = vector.shape_cast %200 : vector<8x8x128xf32> to vector<1x8x8x128xf32>
    tpu.vector_store %arg8[%c0_184, %c0_185, %c0_186, %c0_187], %203 {strides = array<i32>} : memref<1x8x8x128xf32, #tpu.memory_space<vmem>>, vector<1x8x8x128xf32>,
    return
  }
  func.func @transform_0(%arg0: i32) -> (i32, i32, i32, i32) {
    %c0_i32 = arith.constant 0 : i32
    %c0_i32_0 = arith.constant 0 : i32
    %c0_i32_1 = arith.constant 0 : i32
    %c0_i32_2 = arith.constant 0 : i32
    return %arg0, %c0_i32, %c0_i32_0, %c0_i32_1 : i32, i32, i32, i32
  }
  func.func @transform_1(%arg0: i32) -> (i32, i32, i32) {
    %c0_i32 = arith.constant 0 : i32
    %c0_i32_0 = arith.constant 0 : i32
    %c0_i32_1 = arith.constant 0 : i32
    %c0_i32_2 = arith.constant 0 : i32
    return %c0_i32, %c0_i32_0, %c0_i32_1 : i32, i32, i32
  }
  func.func @transform_2(%arg0: i32) -> (i32, i32) {
    %c0_i32 = arith.constant 0 : i32
    %c0_i32_0 = arith.constant 0 : i32
    %c0_i32_1 = arith.constant 0 : i32
    return %c0_i32, %c0_i32_0 : i32, i32
  }
  func.func @transform_3(%arg0: i32) -> (i32, i32, i32) {
    %c0_i32 = arith.constant 0 : i32
    %c0_i32_0 = arith.constant 0 : i32
    %c0_i32_1 = arith.constant 0 : i32
    %c0_i32_2 = arith.constant 0 : i32
    return %c0_i32, %c0_i32_0, %c0_i32_1 : i32, i32, i32
  }
  func.func @transform_4(%arg0: i32) -> (i32, i32) {
    %c0_i32 = arith.constant 0 : i32
    %c0_i32_0 = arith.constant 0 : i32
    %c0_i32_1 = arith.constant 0 : i32
    return %c0_i32, %c0_i32_0 : i32, i32
  }
  func.func @transform_5(%arg0: i32) -> (i32, i32) {
    %c0_i32 = arith.constant 0 : i32
    %c0_i32_0 = arith.constant 0 : i32
    %c0_i32_1 = arith.constant 0 : i32
    return %c0_i32, %c0_i32_0 : i32, i32
  }
  func.func @transform_6(%arg0: i32) -> (i32, i32) {
    %c0_i32 = arith.constant 0 : i32
    %c0_i32_0 = arith.constant 0 : i32
    %c0_i32_1 = arith.constant 0 : i32
    return %c0_i32, %c0_i32_0 : i32, i32
  }
  func.func @transform_7(%arg0: i32) -> (i32, i32, i32, i32) {
    %c0_i32 = arith.constant 0 : i32
    %c0_i32_0 = arith.constant 0 : i32
    %c0_i32_1 = arith.constant 0 : i32
    %c0_i32_2 = arith.constant 0 : i32
    return %arg0, %c0_i32, %c0_i32_0, %c0_i32_1 : i32, i32, i32, i32
  }
}

</mosaic_0001>

<bundles_post_ra>
// kernel: tpu_custom_call.1
= control target key start
LH: loop header
LB: loop body
LE: loop exit
PB: predicated region body
PF: predicated region fallthrough
CT: control target
= control target key end

     0   :  { %12 = vsyncpa [#allocation4], 0  ;;  %s4357_s0 = inlined_call_operand.vmem [shape: f32[2,18,18,128], index: 0, kind: input, shape index: {}]   ;;  %s4358_s1 = inlined_call_operand.vmem [shape: f32[9,128,128], index: 1, kind: input, shape index: {}]   ;;  %s4359_s2 = inlined_call_operand.vmem [shape: f32[1,128], index: 2, kind: input, shape index: {}]   ;;  %s4360_s3 = inlined_call_operand.hbm [shape: f32[9,128,128], index: 3, kind: input, shape index: {}]   ;;  %s4361_s4 = inlined_call_operand.vmem [shape: f32[1,128], index: 4, kind: input, shape index: {}]   ;;  %s4362_s5 = inlined_call_operand.vmem [shape: f32[128,128], index: 5, kind: input, shape index: {}]   ;;  %s4363_s6 = inlined_call_operand.vmem [shape: f32[1,128], index: 6, kind: input, shape index: {}]   ;;  %s4364_s7 = inlined_call_operand.hbm [shape: f32[2,8,8,128], index: 7, kind: output, shape index: {}]  }
   0x1   :  { %13 = vsyncpa [#allocation5], 0 }
   0x2   :  { %15 = vsyncpa [#allocation5 + $0x1], 0  ;;  %s2875_s24 = smov 0   ;;  %s2877_s25 = smov 0  }
   0x3   :  { %s2879_s26 = smov 0   ;;  %s2881_s27 = smov 0  }
   0x4 LB: > { %s2896_s28 = sadd.s32 4294967295, %s2827_s27   ;;  %s2354_s29 = sadd.s32 4294967294, %s2827_s27   ;;  %s2827_s27 = sphi %s2881_s27, %s4370_s27   ;;  %s2823_s26 = sphi %s2879_s26, %s4369_s26   ;;  %s2819_s25 = sphi %s2877_s25, %s4368_s25   ;;  %s2815_s24 = sphi %s2875_s24, %s4367_s24  }
   0x5   : > { %s2900_s30 = sadd.s32 1, %s2827_s27   ;;  %s180_s8 = sadd.s32 1, %s2823_s26 }
   0x6   : > { %s177_s9 = ssub.s32 %s2827_s27, %s2900_s30  ;;  %p190_p0 = scmp.ne.s32.totalorder %s2823_s26, %s2819_s25 }
   0x7   : > { %p178_p1 = scmp.eq.s32.totalorder %s177_s9, 0  ;;  %p191_p2 = scmp.eq.s32.totalorder %s2896_s28, 1 }
   0x8   : > { %p196_p3 = scmp.ne.s32.totalorder %s2819_s25, %s2815_s24  ;;  %p197_p4 = scmp.eq.s32.totalorder %s2354_s29, 1 }
   0x9   : > { %s2911_s10 = scalar_select %p178_p1, %s2823_s26, %s180_s8  }
   0xa   : > { %p2913_p5 = por %p191_p2, %p190_p0  ;;  %p2917_p6 = por %p197_p4, %p196_p3 }
   0xb   : > { %p2355_p7 = scmp.ge.s32.totalorder %s2827_s27, 1  ;;  %p204_p8 = scmp.lt.s32.totalorder %s2827_s27, 3 }
   0xc   : > { %p2686_p9 = scmp.eq.s32.totalorder %s2896_s28, 0  ;;  %s221_s15 = sshll.u32 %s4360_s3, 4  ;;  %s222_s15 = int_to_ptr.hbm [resolvable:$true] %s221_s15 }
   0xd   : > { %p205_p10 = pnand %p2355_p7, %p204_p8  ;;  %s2829_s16 = smov [#allocation3]  }
   0xe   : > { %s223_s17 = sshll.u32 %s2829_s16, 4  ;;  %s2830_s18 = smov 128   ;;  %s224_s17 = int_to_ptr.vmem [resolvable:$true] %s223_s17 }
   0xf   : > { %p2678_p11 = pneg %p205_p10  ;;  %s2831_s19 = smov 8  }
  0x10   : > { %256 = sbr.rel (%p205_p10) target bundleno = 604 (0x25c), region = 48 }
  0x11   : > { %p2679_p12 = pnand %p2686_p9, %p2678_p11 }
  0x13   : > { %2681 = dma.hbm_to_vmem [thread:$0]  (!%p2679_p12), %s222_s15, 18432, %s224_s17, [#allocation4], %s2830_s18, %s2830_s18, %s2831_s19  }
  0x15   : > { %2806 = dma.done.wait (%p2686_p9), [#allocation4], 18432  }
  0x16   : > { %2808 = vsyncadd (%p2686_p9), [#allocation4], 4294948864  ;;  %v2504_v0 = vld [vmem:[%s4358_s1 + $0xf8] sm:$0xff]  ;;  %v2503_v3 = vld [vmem:[%s4358_s1 + $0xf0] sm:$0xff]  ;;  %p289_p13 = scmp.lt.s32.totalorder %s2896_s28, 1  ;;  %s286_s21 = sand.u32 1, %s2819_s25  }
  0x17   : > { %v588_v1 = vld [vmem:[%s4358_s1 + $0x78] sm:$0xff]  ;;  %2623 = vmatpush.msra.mxu3 %v2504_v0  ;;  %v587_v4 = vld [vmem:[%s4358_s1 + $0x70] sm:$0xff]  ;;  %v2502_v6 = vld [vmem:[%s4358_s1 + $0xe8] sm:$0xff]  ;;  %630 = vmatpush.msra.mxu0 %v2504_v0  ;;  %s2360_s22 = sshll.u32 %s286_s21, 6  ;;  %s2622_s29 = sshll.u32 %s2896_s28, 6 }
  0x18   : > { %v2520_v2 = vld [vmem:[%s4358_s1 + $0x178] sm:$0xff]  ;;  %671 = vmatpush.msra.mxu1 %v588_v1  ;;  %v2519_v5 = vld [vmem:[%s4358_s1 + $0x170] sm:$0xff]  ;;  %v586_v7 = vld [vmem:[%s4358_s1 + $0x68] sm:$0xff]  ;;  %s2973_s16 = scalar_select %p289_p13, %s2896_s28, 1 }
  0x19   : > { %753 = vmatpush.msra.mxu2 %v2520_v2  ;;  %2624 = vmatpush.msra.mxu3 %v2503_v3  ;;  %v2518_v8 = vld [vmem:[%s4358_s1 + $0x168] sm:$0xff]  ;;  %v2501_v9 = vld [vmem:[%s4358_s1 + $0xe0] sm:$0xff]  ;;  %v2500_v12 = vld [vmem:[%s4358_s1 + $0xd8] sm:$0xff]  ;;  %s4286_s23 = scalar_lea.vmem [#allocation6], %s2360_s22  ;;  %s2172_s9 = scalar_lea.sflag [#allocation5], %s286_s21 }
  0x1a   : > { %672 = vmatpush.msra.mxu1 %v587_v4  ;;  %v585_v10 = vld [vmem:[%s4358_s1 + $0x60] sm:$0xff]  ;;  %631 = vmatpush.msra.mxu0 %v2503_v3  ;;  %v584_v13 = vld [vmem:[%s4358_s1 + $0x58] sm:$0xff]  ;;  %v2499_v15 = vld [vmem:[%s4358_s1 + $0xd0] sm:$0xff]  ;;  %s2671_s15 = smul.u32 432, %s2973_s16  ;;  %s2183_s16 = scalar_lea.hbm %s4364_s7, %s2622_s29 }
  0x1b   : > { %754 = vmatpush.msra.mxu2 %v2519_v5  ;;  %2625 = vmatpush.msra.mxu3 %v2502_v6  ;;  %v2517_v11 = vld [vmem:[%s4358_s1 + $0x160] sm:$0xff]  ;;  %v2516_v14 = vld [vmem:[%s4358_s1 + $0x158] sm:$0xff]  ;;  %v583_v16 = vld [vmem:[%s4358_s1 + $0x50] sm:$0xff]  ;;  %s2184_s28 = sshll.u32 %s4286_s23, 4  ;;  %s2186_s8 = sshll.u32 %s2183_s16, 4  ;;  %s2185_s28 = int_to_ptr.vmem [resolvable:$true] %s2184_s28  ;;  %s2187_s8 = int_to_ptr.hbm [resolvable:$true] %s2186_s8 }
  0x1c   : > { %673 = vmatpush.msra.mxu1 %v586_v7  ;;  %632 = vmatpush.msra.mxu0 %v2502_v6  ;;  %v2515_v17 = vld [vmem:[%s4358_s1 + $0x150] sm:$0xff]  ;;  %v2498_v18 = vld [vmem:[%s4358_s1 + $0xc8] sm:$0xff]  ;;  %v2497_v21 = vld [vmem:[%s4358_s1 + $0xc0] sm:$0xff]  ;;  %s3015_s18 = scalar_lea.vmem %s4357_s0, %s2671_s15  ;;  %s2775_s13 = sshra.s32 %s2187_s8, 4  ;;  %s2776_s13 = int_to_ptr.hbm [resolvable:$true] %s2775_s13 }
  0x1d   : > { %755 = vmatpush.msra.mxu2 %v2518_v8  ;;  %2626 = vmatpush.msra.mxu3 %v2501_v9  ;;  %v582_v19 = vld [vmem:[%s4358_s1 + $0x48] sm:$0xff]  ;;  %v581_v22 = vld [vmem:[%s4358_s1 + $0x40] sm:$0xff]  ;;  %v2496_v24 = vld [vmem:[%s4358_s1 + $0xb8] sm:$0xff]  ;;  %s2777_s14 = scalar_lea.hbm %s2776_s13, 64  ;;  %s2781_s20 = scalar_lea.hbm %s4364_s7, 128 }
  0x1e   : > { %674 = vmatpush.msra.mxu1 %v585_v10  ;;  %633 = vmatpush.msra.mxu0 %v2501_v9  ;;  %v2514_v20 = vld [vmem:[%s4358_s1 + $0x148] sm:$0xff]  ;;  %v2513_v23 = vld [vmem:[%s4358_s1 + $0x140] sm:$0xff]  ;;  %v580_v25 = vld [vmem:[%s4358_s1 + $0x38] sm:$0xff]  ;;  %p2778_p0 = scmp.ne.s32.totalorder %s2776_s13, %s2777_s14  ;;  %p2782_p3 = scmp.lt.s32.totalorder %s2776_s13, %s4364_s7 }
  0x1f   : > { %756 = vmatpush.msra.mxu2 %v2517_v11  ;;  %2627 = vmatpush.msra.mxu3 %v2500_v12  ;;  %v2512_v26 = vld [vmem:[%s4358_s1 + $0x138] sm:$0xff]  ;;  %v2495_v27 = vld [vmem:[%s4358_s1 + $0xb0] sm:$0xff]  ;;  %v3036_v30 = vld [vmem:[%s3015_s18 + $0xc1] ss:$2 sm:$0xff]  ;;  %p2783_p4 = scmp.lt.s32.totalorder %s2781_s20, %s2777_s14 }
  0x20   : > { %675 = vmatpush.msra.mxu1 %v584_v13  ;;  %634 = vmatpush.msra.mxu0 %v2500_v12  ;;  %v579_v28 = vld [vmem:[%s4358_s1 + $0x30] sm:$0xff]  ;;  %v294_v32 = vld [vmem:[%s3015_s18] ss:$2 sm:$0xff]  ;;  %v2369_v33 = vld [vmem:[%s3015_s18 + $0x1] ss:$2 sm:$0xff]  ;;  %p2779_p1 = pnand %p2778_p0, %p2913_p5 }
  0x21   : > { %757 = vmatpush.msra.mxu2 %v2516_v14  ;;  %2628 = vmatpush.msra.mxu3 %v2499_v15  ;;  %v2511_v29 = vld [vmem:[%s4358_s1 + $0x130] sm:$0xff]  ;;  %v2494_v34 = vld [vmem:[%s4358_s1 + $0xa8] sm:$0xff]  ;;  %v2493_v39 = vld [vmem:[%s4358_s1 + $0xa0] sm:$0xff]  ;;  %v549_v43 = vadd.f32 %v2369_v33, %v294_v32  ;;  %p2784_p7 = por %p2783_p4, %p2782_p3 }
  0x22   : > { %676 = vmatpush.msra.mxu1 %v583_v16  ;;  %635 = vmatpush.msra.mxu0 %v2499_v15  ;;  %v3039_v31 = vld [vmem:[%s3015_s18 + $0xc2] ss:$2 sm:$0xff]  ;;  %v2385_v38 = vld [vmem:[%s3015_s18 + $0x3] ss:$2 sm:$0xff]  ;;  %v2492_v44 = vld [vmem:[%s4358_s1 + $0x98] sm:$0xff]  ;;  %p2780_p2 = pneg %p2779_p1 }
  0x23   : > { %758 = vmatpush.msra.mxu2 %v2515_v17  ;;  %2629 = vmatpush.msra.mxu3 %v2498_v18  ;;  %v578_v35 = vld [vmem:[%s4358_s1 + $0x28] sm:$0xff]  ;;  %v577_v40 = vld [vmem:[%s4358_s1 + $0x20] sm:$0xff]  ;;  %v593_v42 = vadd.f32 %v3039_v31, %v3036_v30  ;;  %v576_v48 = vld [vmem:[%s4358_s1 + $0x18] sm:$0xff] }
  0x24   : > { %677 = vmatpush.msra.mxu1 %v582_v19  ;;  %636 = vmatpush.msra.mxu0 %v2498_v18  ;;  %v2377_v36 = vld [vmem:[%s3015_s18 + $0x2] ss:$2 sm:$0xff]  ;;  %v3069_v45 = vld [vmem:[%s3015_s18 + $0xd9] ss:$2 sm:$0xff]  ;;  %v3114_v0 = vld [vmem:[%s3015_s18 + $0xf2] ss:$2 sm:$0xff]  ;;  %p2785_p8 = pnand %p2784_p7, %p2780_p2 }
  0x25   : > { %759 = vmatpush.msra.mxu2 %v2514_v20  ;;  %2630 = vmatpush.msra.mxu3 %v2497_v21  ;;  %v2510_v37 = vld [vmem:[%s4358_s1 + $0x128] sm:$0xff]  ;;  %v2509_v41 = vld [vmem:[%s4358_s1 + $0x120] sm:$0xff]  ;;  %v712_v47 = vadd.f32 %v2385_v38, %v2377_v36  ;;  %v2508_v49 = vld [vmem:[%s4358_s1 + $0x118] sm:$0xff]  ;;  %v589_v54 = vadd.f32 %v2377_v36, %v2369_v33  ;;  %v601_v58 = vadd.f32 %v3069_v45, %v593_v42 }
  0x26   : > { %678 = vmatpush.msra.mxu1 %v581_v22  ;;  %637 = vmatpush.msra.mxu0 %v2497_v21  ;;  %v3072_v46 = vld [vmem:[%s3015_s18 + $0x18] ss:$2 sm:$0xff]  ;;  %v2491_v51 = vld [vmem:[%s4358_s1 + $0x90] sm:$0xff]  ;;  %v2490_v55 = vld [vmem:[%s4358_s1 + $0x88] sm:$0xff] }
  0x27   : > { %760 = vmatpush.msra.mxu2 %v2513_v23  ;;  %2631 = vmatpush.msra.mxu3 %v2496_v24  ;;  %v3081_v50 = vld [vmem:[%s3015_s18 + $0x1a] ss:$2 sm:$0xff]  ;;  %v575_v52 = vld [vmem:[%s4358_s1 + $0x10] sm:$0xff]  ;;  %v557_v59 = vadd.f32 %v3072_v46, %v549_v43  ;;  %v3104_v60 = vld [vmem:[%s3015_s18 + $0x19] ss:$2 sm:$0xff] }
  0x28   : > { %679 = vmatpush.msra.mxu1 %v580_v25  ;;  %638 = vmatpush.msra.mxu0 %v2496_v24  ;;  %v2507_v53 = vld [vmem:[%s4358_s1 + $0x110] sm:$0xff]  ;;  %v574_v56 = vld [vmem:[%s4358_s1 + $0x8] sm:$0xff]  ;;  %v720_v62 = vadd.f32 %v3081_v50, %v712_v47  ;;  %v597_v4 = vadd.f32 %v3104_v60, %v589_v54  ;;  %v2489_v7 = vld [vmem:[%s4358_s1 + $0x80] sm:$0xff] }
  0x29   : > { %761 = vmatpush.msra.mxu2 %v2512_v26  ;;  %2632 = vmatpush.msra.mxu3 %v2495_v27  ;;  %v3099_v57 = vld [vmem:[%s3015_s18 + $0xda] ss:$2 sm:$0xff]  ;;  %v3107_v61 = vld [vmem:[%s3015_s18 + $0x1b] ss:$2 sm:$0xff]  ;;  %v565_v10 = vadd.f32 %v3104_v60, %v557_v59  ;;  %v3149_v20 = vld [vmem:[%s3015_s18 + $0x4a] ss:$2 sm:$0xff] }
  0x2a   : > { %680 = vmatpush.msra.mxu1 %v579_v28  ;;  %639 = vmatpush.msra.mxu0 %v2495_v27  ;;  %v3111_v63 = vld [vmem:[%s3015_s18 + $0xf1] ss:$2 sm:$0xff]  ;;  %v2362_v1 = vld [vmem:[%s3015_s18 + $0x30] ss:$2 sm:$0xff]  ;;  %v2506_v3 = vld [vmem:[%s4358_s1 + $0x108] sm:$0xff]  ;;  %v609_v9 = vadd.f32 %v3099_v57, %v601_v58  ;;  %v728_v12 = vadd.f32 %v3107_v61, %v720_v62  ;;  %v605_v19 = vadd.f32 %v3081_v50, %v597_v4 }
  0x2b   : > { %762 = vmatpush.msra.mxu2 %v2511_v29  ;;  %2633 = vmatpush.msra.mxu3 %v2494_v34  ;;  %v2370_v2 = vld [vmem:[%s3015_s18 + $0x31] ss:$2 sm:$0xff]  ;;  %v2378_v5 = vld [vmem:[%s3015_s18 + $0x32] ss:$2 sm:$0xff]  ;;  %v594_v13 = vadd.f32 %v3114_v0, %v3111_v63  ;;  %v2534_v25 = vld [vmem:[%s4358_s1 + $0x1e8] sm:$0xff] }
  0x2c   : > { %681 = vmatpush.msra.mxu1 %v578_v35  ;;  %640 = vmatpush.msra.mxu0 %v2494_v34  ;;  %v2386_v6 = vld [vmem:[%s3015_s18 + $0x33] ss:$2 sm:$0xff]  ;;  %v550_v14 = vadd.f32 %v2370_v2, %v2362_v1  ;;  %v3142_v16 = vld [vmem:[%s3015_s18 + $0x48] ss:$2 sm:$0xff]  ;;  %v590_v24 = vadd.f32 %v2378_v5, %v2370_v2 }
  0x2d   : > { %763 = vmatpush.msra.mxu2 %v2510_v37  ;;  %2634 = vmatpush.msra.mxu3 %v2493_v39  ;;  %v573_v8 = vld [vmem:[%s4358_s1] sm:$0xff]  ;;  %v3139_v15 = vld [vmem:[%s3015_s18 + $0x109] ss:$2 sm:$0xff]  ;;  %v713_v17 = vadd.f32 %v2386_v6, %v2378_v5  ;;  %v2536_v18 = vld [vmem:[%s4358_s1 + $0x1f8] sm:$0xff] }
  0x2e   : > { %682 = vmatpush.msra.mxu1 %v577_v40  ;;  %641 = vmatpush.msra.mxu0 %v2493_v39  ;;  %v2505_v11 = vld [vmem:[%s4358_s1 + $0x100] sm:$0xff]  ;;  %v2535_v21 = vld [vmem:[%s4358_s1 + $0x1f0] sm:$0xff]  ;;  %v602_v26 = vadd.f32 %v3139_v15, %v594_v13  ;;  %v558_v27 = vadd.f32 %v3142_v16, %v550_v14  ;;  %v2552_v28 = vld [vmem:[%s4358_s1 + $0x278] sm:$0xff] }
  0x2f   : > { %764 = vmatpush.msra.mxu2 %v2509_v41  ;;  %2635 = vmatpush.msra.mxu3 %v2492_v44  ;;  %v3155_v22 = vld [vmem:[%s3015_s18 + $0x10a] ss:$2 sm:$0xff]  ;;  %v3158_v23 = vld [vmem:[%s3015_s18 + $0x49] ss:$2 sm:$0xff]  ;;  %v721_v34 = vadd.f32 %v3149_v20, %v713_v17  ;;  %v2533_v42 = vld [vmem:[%s4358_s1 + $0x1e0] sm:$0xff] }
  0x30   : > { %683 = vmatpush.msra.mxu1 %v576_v48  ;;  %642 = vmatpush.msra.mxu0 %v2492_v44  ;;  %v3169_v29 = vld [vmem:[%s3015_s18 + $0x121] ss:$2 sm:$0xff]  ;;  %v3172_v32 = vld [vmem:[%s3015_s18 + $0x122] ss:$2 sm:$0xff]  ;;  %v598_v40 = vadd.f32 %v3158_v23, %v590_v24  ;;  %v610_v43 = vadd.f32 %v3155_v22, %v602_v26  ;;  %v566_v44 = vadd.f32 %v3158_v23, %v558_v27  ;;  %v2532_v54 = vld [vmem:[%s4358_s1 + $0x1d8] sm:$0xff] }
  0x31   : > { %765 = vmatpush.msra.mxu2 %v2508_v49  ;;  %2636 = vmatpush.msra.mxu3 %v2491_v51  ;;  %v3175_v33 = vld [vmem:[%s3015_s18 + $0x4b] ss:$2 sm:$0xff]  ;;  %v2363_v35 = vld [vmem:[%s3015_s18 + $0x60] ss:$2 sm:$0xff]  ;;  %v595_v41 = vadd.f32 %v3172_v32, %v3169_v29  ;;  %v3243_v13 = vld [vmem:[%s3015_s18 + $0x7b] ss:$2 sm:$0xff] }
  0x32   : > { %684 = vmatpush.msra.mxu1 %v575_v52  ;;  %643 = vmatpush.msra.mxu0 %v2491_v51  ;;  %v2371_v36 = vld [vmem:[%s3015_s18 + $0x61] ss:$2 sm:$0xff]  ;;  %v2551_v37 = vld [vmem:[%s4358_s1 + $0x270] sm:$0xff]  ;;  %v729_v51 = vadd.f32 %v3175_v33, %v721_v34  ;;  %v3201_v52 = vld [vmem:[%s3015_s18 + $0x78] ss:$2 sm:$0xff]  ;;  %v606_v59 = vadd.f32 %v3149_v20, %v598_v40 }
  0x33   : > { %766 = vmatpush.msra.mxu2 %v2507_v53  ;;  %2637 = vmatpush.msra.mxu3 %v2490_v55  ;;  %v2379_v38 = vld [vmem:[%s3015_s18 + $0x62] ss:$2 sm:$0xff]  ;;  %v2387_v39 = vld [vmem:[%s3015_s18 + $0x63] ss:$2 sm:$0xff]  ;;  %v551_v49 = vadd.f32 %v2371_v36, %v2363_v35  ;;  %v2548_v6 = vld [vmem:[%s4358_s1 + $0x258] sm:$0xff] }
  0x34   : > { %685 = vmatpush.msra.mxu1 %v574_v56  ;;  %644 = vmatpush.msra.mxu0 %v2490_v55  ;;  %v2550_v47 = vld [vmem:[%s4358_s1 + $0x268] sm:$0xff]  ;;  %v3197_v48 = vld [vmem:[%s3015_s18 + $0x139] ss:$2 sm:$0xff]  ;;  %v714_v53 = vadd.f32 %v2387_v39, %v2379_v38  ;;  %v2531_v55 = vld [vmem:[%s4358_s1 + $0x1d0] sm:$0xff] }
  0x35   : > { %767 = vmatpush.msra.mxu2 %v2506_v3  ;;  %2638 = vmatpush.msra.mxu3 %v2489_v7  ;;  %v3210_v56 = vld [vmem:[%s3015_s18 + $0x7a] ss:$2 sm:$0xff]  ;;  %v603_v1 = vadd.f32 %v3197_v48, %v595_v41  ;;  %v3221_v2 = vld [vmem:[%s3015_s18 + $0x79] ss:$2 sm:$0xff]  ;;  %v591_v3 = vadd.f32 %v2379_v38, %v2371_v36  ;;  %v559_v5 = vadd.f32 %v3201_v52, %v551_v49  ;;  %v2583_v34 = vld [vmem:[%s4358_s1 + $0x370] sm:$0xff] }
  0x36   : > { %686 = vmatpush.msra.mxu1 %v573_v8  ;;  %658 = vmatmul.f32.vlgmr.msra.gmra.mxu3 %v609_v9  ;;  %v2549_v58 = vld [vmem:[%s4358_s1 + $0x260] sm:$0xff]  ;;  %v2530_v4 = vld [vmem:[%s4358_s1 + $0x1c8] sm:$0xff]  ;;  %v2584_v8 = vld [vmem:[%s4358_s1 + $0x378] sm:$0xff]  ;;  %v722_v9 = vadd.f32 %v3210_v56, %v714_v53 }
  0x37   : > { %768 = vmatpush.msra.mxu2 %v2505_v11  ;;  %687 = vmatmul.f32.vlgmr.msra.gmra.mxu1 %v565_v10  ;;  %v3217_v62 = vld [vmem:[%s3015_s18 + $0x13a] ss:$2 sm:$0xff]  ;;  %v2388_v17 = vld [vmem:[%s3015_s18 + $0x93] ss:$2 sm:$0xff]  ;;  %v567_v26 = vadd.f32 %v3221_v2, %v559_v5  ;;  %v3278_v41 = vld [vmem:[%s3015_s18 + $0xaa] ss:$2 sm:$0xff] }
  0x38   : > { %769 = vmatmul.f32.vlgmr.msra.gmra.mxu2 %v728_v12  ;;  %843 = vmatpush.msrb.mxu3 %v2536_v18  ;;  %v3238_v10 = vld [vmem:[%s3015_s18 + $0x152] ss:$2 sm:$0xff]  ;;  %v2372_v12 = vld [vmem:[%s3015_s18 + $0x91] ss:$2 sm:$0xff]  ;;  %v611_v18 = vadd.f32 %v3217_v62, %v603_v1  ;;  %v730_v36 = vadd.f32 %v3243_v13, %v722_v9  ;;  %v2526_v53 = vld [vmem:[%s4358_s1 + $0x1a8] sm:$0xff] }
  0x39   : > { %645 = vmatpush.msra.mxu0 %v2489_v7  ;;  %v3231_v7 = vld [vmem:[%s3015_s18 + $0x151] ss:$2 sm:$0xff]  ;;  %v2364_v11 = vld [vmem:[%s3015_s18 + $0x90] ss:$2 sm:$0xff]  ;;  %1113 = vmatpush.msrb.mxu2 %v2584_v8  ;;  %v2565_v5 = vld [vmem:[%s4358_s1 + $0x2e0] sm:$0xff] }
  0x3a   : > { %646 = vmatmul.f32.vlgmr.msra.gmra.mxu0 %v605_v19  ;;  %844 = vmatpush.msrb.mxu3 %v2535_v21  ;;  %v2380_v14 = vld [vmem:[%s3015_s18 + $0x92] ss:$2 sm:$0xff]  ;;  %v599_v21 = vadd.f32 %v3221_v2, %v591_v3  ;;  %v596_v27 = vadd.f32 %v3238_v10, %v3231_v7  ;;  %v3305_v1 = vld [vmem:[%s3015_s18 + $0xa9] ss:$2 sm:$0xff] }
  0x3b   : > { %933 = vmatpush.msrb.mxu0 %v2552_v28  ;;  %v2547_v19 = vld [vmem:[%s4358_s1 + $0x250] sm:$0xff]  ;;  %v2568_v24 = vld [vmem:[%s4358_s1 + $0x2f8] sm:$0xff]  ;;  %v552_v28 = vadd.f32 %v2372_v12, %v2364_v11  ;;  %v715_v39 = vadd.f32 %v2388_v17, %v2380_v14  ;;  %1114 = vmatpush.msrb.mxu2 %v2583_v34  ;;  %v592_v49 = vadd.f32 %v2380_v14, %v2372_v12  ;;  %v2581_v9 = vld [vmem:[%s4358_s1 + $0x360] sm:$0xff] }
  0x3c   : > { %845 = vmatpush.msrb.mxu3 %v2534_v25  ;;  %v2529_v25 = vld [vmem:[%s4358_s1 + $0x1c0] sm:$0xff]  ;;  %1023 = vmatpush.msrb.mxu1 %v2568_v24  ;;  %v2567_v35 = vld [vmem:[%s4358_s1 + $0x2f0] sm:$0xff]  ;;  %v2528_v40 = vld [vmem:[%s4358_s1 + $0x1b8] sm:$0xff]  ;;  %v802_v11 = vadd.f32 %v3104_v60, %v3072_v46 }
  0x3d   : > { %934 = vmatpush.msrb.mxu0 %v2551_v37  ;;  %v3269_v37 = vld [vmem:[%s3015_s18 + $0x169] ss:$2 sm:$0xff]  ;;  %v3272_v38 = vld [vmem:[%s3015_s18 + $0xa8] ss:$2 sm:$0xff]  ;;  %v723_v3 = vadd.f32 %v3278_v41, %v715_v39  ;;  %v2544_v12 = vld [vmem:[%s4358_s1 + $0x238] sm:$0xff]  ;;  %v600_v14 = vadd.f32 %v3305_v1, %v592_v49 }
  0x3e   : > { %846 = vmatpush.msrb.mxu3 %v2533_v42  ;;  %1024 = vmatpush.msrb.mxu1 %v2567_v35  ;;  %v2582_v42 = vld [vmem:[%s4358_s1 + $0x368] sm:$0xff]  ;;  %v2564_v17 = vld [vmem:[%s4358_s1 + $0x2d8] sm:$0xff] }
  0x3f   : > { %935 = vmatpush.msrb.mxu0 %v2550_v47  ;;  %661 = vmatmul.f32.gmra.mxu3 %v610_v43  ;;  %v2527_v43 = vld [vmem:[%s4358_s1 + $0x1b0] sm:$0xff]  ;;  %v607_v47 = vadd.f32 %v3210_v56, %v599_v21  ;;  %v2580_v24 = vld [vmem:[%s4358_s1 + $0x358] sm:$0xff]  ;;  %v608_v35 = vadd.f32 %v3278_v41, %v600_v14  ;;  %v2522_v39 = vld [vmem:[%s4358_s1 + $0x188] sm:$0xff] }
  0x40   : > { %690 = vmatmul.f32.gmra.mxu1 %v566_v44  ;;  %772 = vmatmul.f32.gmra.mxu2 %v729_v51  ;;  %v2546_v44 = vld [vmem:[%s4358_s1 + $0x248] sm:$0xff]  ;;  %v2524_v34 = vld [vmem:[%s4358_s1 + $0x198] sm:$0xff] }
  0x41   : > { %847 = vmatpush.msrb.mxu3 %v2532_v54  ;;  %936 = vmatpush.msrb.mxu0 %v2549_v58  ;;  %v2566_v51 = vld [vmem:[%s4358_s1 + $0x2e8] sm:$0xff]  ;;  %v2545_v54 = vld [vmem:[%s4358_s1 + $0x240] sm:$0xff]  ;;  %v604_v58 = vadd.f32 %v3269_v37, %v596_v27  ;;  %v2366_v49 = vld [vmem:[%s3015_s18 + $0xf0] ss:$2 sm:$0xff] }
  0x42   : > { %649 = vmatmul.f32.gmra.mxu0 %v606_v59  ;;  %1115 = vmatpush.msrb.mxu2 %v2582_v42  ;;  %v560_v59 = vadd.f32 %v3272_v38, %v552_v28  ;;  %v2389_v8 = vld [vmem:[%s3015_s18 + $0xc3] ss:$2 sm:$0xff]  ;;  %v3343_v28 = vld [vmem:[%s3015_s18 + $0x30] ss:$2 sm:$0xff] }
  0x43   : > { %848 = vmatpush.msrb.mxu3 %v2531_v55  ;;  %937 = vmatpush.msrb.mxu0 %v2548_v6  ;;  %v3300_v55 = vld [vmem:[%s3015_s18 + $0x16a] ss:$2 sm:$0xff]  ;;  %v3313_v6 = vld [vmem:[%s3015_s18 + $0xab] ss:$2 sm:$0xff]  ;;  %v716_v27 = vadd.f32 %v2389_v8, %v3039_v31  ;;  %v2521_v8 = vld [vmem:[%s4358_s1 + $0x180] sm:$0xff] }
  0x44   : > { %1025 = vmatpush.msrb.mxu1 %v2566_v51  ;;  %v612_v46 = vadd.f32 %v3300_v55, %v604_v58  ;;  %1116 = vmatpush.msrb.mxu2 %v2581_v9  ;;  %v2563_v31 = vld [vmem:[%s4358_s1 + $0x2d0] sm:$0xff]  ;;  %v2562_v58 = vld [vmem:[%s4358_s1 + $0x2c8] sm:$0xff] }
  0x45   : > { %849 = vmatpush.msrb.mxu3 %v2530_v4  ;;  %938 = vmatpush.msrb.mxu0 %v2547_v19  ;;  %v2365_v4 = vld [vmem:[%s3015_s18 + $0xc0] ss:$2 sm:$0xff]  ;;  %v568_v19 = vadd.f32 %v3305_v1, %v560_v59  ;;  %v2579_v51 = vld [vmem:[%s4358_s1 + $0x350] sm:$0xff] }
  0x46   : > { %v553_v21 = vadd.f32 %v3036_v30, %v2365_v4  ;;  %1026 = vmatpush.msrb.mxu1 %v2565_v5  ;;  %v2543_v30 = vld [vmem:[%s4358_s1 + $0x230] sm:$0xff]  ;;  %1117 = vmatpush.msrb.mxu2 %v2580_v24  ;;  %v2541_v59 = vld [vmem:[%s4358_s1 + $0x220] sm:$0xff]  ;;  %v892_v4 = vadd.f32 %v3081_v50, %v3104_v60  ;;  %v2578_v5 = vld [vmem:[%s4358_s1 + $0x348] sm:$0xff] }
  0x47   : > { %850 = vmatpush.msrb.mxu3 %v2529_v25  ;;  %939 = vmatpush.msrb.mxu0 %v2546_v44  ;;  %v731_v25 = vadd.f32 %v3313_v6, %v723_v3  ;;  %v724_v44 = vadd.f32 %v3099_v57, %v716_v27  ;;  %v803_v3 = vadd.f32 %v3158_v23, %v3142_v16  ;;  %v2561_v60 = vld [vmem:[%s4358_s1 + $0x2c0] sm:$0xff]  ;;  %v3402_v14 = vld [vmem:[%s3015_s18 + $0x108] ss:$2 sm:$0xff] }
  0x48   : > { %664 = vmatmul.f32.gmra.mxu3 %v611_v18  ;;  %693 = vmatmul.f32.gmra.mxu1 %v567_v26  ;;  %v2525_v18 = vld [vmem:[%s4358_s1 + $0x1a0] sm:$0xff]  ;;  %v2599_v27 = vld [vmem:[%s4358_s1 + $0x3f0] sm:$0xff] }
  0x49   : > { %775 = vmatmul.f32.gmra.mxu2 %v730_v36  ;;  %851 = vmatpush.msrb.mxu3 %v2528_v40  ;;  %v3339_v26 = vld [vmem:[%s3015_s18 + $0xd8] ss:$2 sm:$0xff]  ;;  %v2523_v36 = vld [vmem:[%s4358_s1 + $0x190] sm:$0xff]  ;;  %v2542_v40 = vld [vmem:[%s4358_s1 + $0x228] sm:$0xff] }
  0x4a   : > { %652 = vmatmul.f32.gmra.mxu0 %v607_v47  ;;  %1027 = vmatpush.msrb.mxu1 %v2564_v17  ;;  %v561_v42 = vadd.f32 %v3339_v26, %v553_v21  ;;  %v3368_v47 = vld [vmem:[%s3015_s18 + $0x31] ss:$2 sm:$0xff]  ;;  %v2577_v24 = vld [vmem:[%s4358_s1 + $0x340] sm:$0xff] }
  0x4b   : > { %852 = vmatpush.msrb.mxu3 %v2527_v43  ;;  %940 = vmatpush.msrb.mxu0 %v2545_v54  ;;  %v810_v43 = vadd.f32 %v3343_v28, %v802_v11  ;;  %v2390_v54 = vld [vmem:[%s3015_s18 + $0xf3] ss:$2 sm:$0xff]  ;;  %v900_v21 = vadd.f32 %v3368_v47, %v892_v4 }
  0x4c   : > { %1028 = vmatpush.msrb.mxu1 %v2563_v31  ;;  %v569_v9 = vadd.f32 %v3069_v45, %v561_v42  ;;  %1118 = vmatpush.msrb.mxu2 %v2579_v51  ;;  %v717_v17 = vadd.f32 %v2390_v54, %v3114_v0  ;;  %v2539_v0 = vld [vmem:[%s4358_s1 + $0x210] sm:$0xff]  ;;  %v2598_v51 = vld [vmem:[%s4358_s1 + $0x3e8] sm:$0xff]  ;;  %v804_v54 = vadd.f32 %v3221_v2, %v3201_v52 }
  0x4d   : > { %853 = vmatpush.msrb.mxu3 %v2526_v53  ;;  %941 = vmatpush.msrb.mxu0 %v2544_v12  ;;  %v3375_v53 = vld [vmem:[%s3015_s18 + $0xdb] ss:$2 sm:$0xff]  ;;  %v818_v11 = vadd.f32 %v3368_v47, %v810_v43  ;;  %v554_v12 = vadd.f32 %v3111_v63, %v2366_v49  ;;  %v3444_v42 = vld [vmem:[%s3015_s18 + $0x10b] ss:$2 sm:$0xff] }
  0x4e   : > { %v732_v16 = vadd.f32 %v3375_v53, %v724_v44  ;;  %1029 = vmatpush.msrb.mxu1 %v2562_v58  ;;  %v2540_v63 = vld [vmem:[%s4358_s1 + $0x218] sm:$0xff]  ;;  %1119 = vmatpush.msrb.mxu2 %v2578_v5  ;;  %v725_v31 = vadd.f32 %v3155_v22, %v717_v17  ;;  %v2391_v43 = vld [vmem:[%s3015_s18 + $0x123] ss:$2 sm:$0xff] }
  0x4f   : > { %854 = vmatpush.msrb.mxu3 %v2525_v18  ;;  %942 = vmatpush.msrb.mxu0 %v2543_v30  ;;  %v3406_v18 = vld [vmem:[%s3015_s18 + $0x60] ss:$2 sm:$0xff]  ;;  %v2559_v44 = vld [vmem:[%s4358_s1 + $0x2b0] sm:$0xff] }
  0x50   : > { %667 = vmatmul.f32.gmra.mxu3 %v612_v46  ;;  %696 = vmatmul.f32.gmra.mxu1 %v568_v19  ;;  %v3409_v46 = vld [vmem:[%s3015_s18 + $0x32] ss:$2 sm:$0xff]  ;;  %v811_v30 = vadd.f32 %v3406_v18, %v803_v3 }
  0x51   : > { %778 = vmatmul.f32.gmra.mxu2 %v731_v25  ;;  %855 = vmatpush.msrb.mxu3 %v2524_v34  ;;  %v2600_v19 = vld [vmem:[%s4358_s1 + $0x3f8] sm:$0xff]  ;;  %v2538_v25 = vld [vmem:[%s4358_s1 + $0x208] sm:$0xff]  ;;  %v562_v34 = vadd.f32 %v3402_v14, %v554_v12  ;;  %v3451_v49 = vadd.f32 %v3409_v46, %v900_v21  ;;  %v2575_v58 = vld [vmem:[%s4358_s1 + $0x330] sm:$0xff]  ;;  %v718_v12 = vadd.f32 %v2391_v43, %v3172_v32 }
  0x52   : > { %655 = vmatmul.f32.gmra.mxu0 %v608_v35  ;;  %1030 = vmatpush.msrb.mxu1 %v2561_v60  ;;  %v2560_v35 = vld [vmem:[%s4358_s1 + $0x2b8] sm:$0xff]  ;;  %v2537_v3 = vld [vmem:[%s4358_s1 + $0x200] sm:$0xff]  ;;  %v2615_v32 = vld [vmem:[%s4358_s1 + $0x470] sm:$0xff] }
  0x53   : > { %856 = vmatpush.msrb.mxu3 %v2523_v36  ;;  %943 = vmatpush.msrb.mxu0 %v2542_v40  ;;  %v3437_v36 = vld [vmem:[%s3015_s18 + $0x61] ss:$2 sm:$0xff]  ;;  %v2576_v40 = vld [vmem:[%s4358_s1 + $0x338] sm:$0xff]  ;;  %v570_v4 = vadd.f32 %v3139_v15, %v562_v34 }
  0x54   : > { %1120 = vmatpush.msrb.mxu2 %v2577_v24  ;;  %1031 = vmatpush.msrb.mxu1 %v2560_v35  ;;  %v819_v5 = vadd.f32 %v3437_v36, %v811_v30  ;;  %v3480_v60 = vld [vmem:[%s3015_s18 + $0x90] ss:$2 sm:$0xff]  ;;  %v2597_v17 = vld [vmem:[%s4358_s1 + $0x3e0] sm:$0xff]  ;;  %v2614_v43 = vld [vmem:[%s4358_s1 + $0x468] sm:$0xff] }
  0x55   : > { %857 = vmatpush.msrb.mxu3 %v2522_v39  ;;  %944 = vmatpush.msrb.mxu0 %v2541_v59  ;;  %v2367_v39 = vld [vmem:[%s3015_s18 + $0x120] ss:$2 sm:$0xff]  ;;  %v3463_v59 = vadd.f32 %v3099_v57, %v3069_v45  ;;  %v812_v21 = vadd.f32 %v3480_v60, %v804_v54  ;;  %v2596_v30 = vld [vmem:[%s4358_s1 + $0x3d8] sm:$0xff]  ;;  %v894_v54 = vadd.f32 %v3210_v56, %v3221_v2  ;;  %v2555_v2 = vld [vmem:[%s4358_s1 + $0x290] sm:$0xff] }
  0x56   : > { %v555_v52 = vadd.f32 %v3169_v29, %v2367_v39  ;;  %1121 = vmatpush.msrb.mxu2 %v2576_v40  ;;  %1032 = vmatpush.msrb.mxu1 %v2559_v44  ;;  %v2616_v29 = vld [vmem:[%s4358_s1 + $0x478] sm:$0xff]  ;;  %v2557_v24 = vld [vmem:[%s4358_s1 + $0x2a0] sm:$0xff]  ;;  %v2595_v44 = vld [vmem:[%s4358_s1 + $0x3d0] sm:$0xff] }
  0x57   : > { %858 = vmatpush.msrb.mxu3 %v2521_v8  ;;  %945 = vmatpush.msrb.mxu0 %v2540_v63  ;;  %v2558_v8 = vld [vmem:[%s4358_s1 + $0x2a8] sm:$0xff]  ;;  %v3494_v63 = vld [vmem:[%s3015_s18 + $0x91] ss:$2 sm:$0xff]  ;;  %v2368_v35 = vld [vmem:[%s3015_s18 + $0x150] ss:$2 sm:$0xff] }
  0x58   : > { %699 = vmatmul.f32.gmra.mxu1 %v569_v9  ;;  %859 = vmatmul.f32.vlgmr.msrb.gmra.mxu3 %v818_v11  ;;  %v733_v9 = vadd.f32 %v3444_v42, %v725_v31  ;;  %v3476_v11 = vld [vmem:[%s3015_s18 + $0x138] ss:$2 sm:$0xff]  ;;  %v2392_v39 = vld [vmem:[%s3015_s18 + $0x153] ss:$2 sm:$0xff] }
  0x59   : > { %781 = vmatmul.f32.gmra.mxu2 %v732_v16  ;;  %1203 = vmatpush.msra.mxu3 %v2600_v19  ;;  %v893_v16 = vadd.f32 %v3149_v20, %v3158_v23  ;;  %v2574_v23 = vld [vmem:[%s4358_s1 + $0x328] sm:$0xff]  ;;  %v563_v19 = vadd.f32 %v3476_v11, %v555_v52  ;;  %v2573_v31 = vld [vmem:[%s4358_s1 + $0x320] sm:$0xff]  ;;  %v2556_v40 = vld [vmem:[%s4358_s1 + $0x298] sm:$0xff] }
  0x5a   : > { %946 = vmatpush.msrb.mxu0 %v2539_v0  ;;  %1122 = vmatpush.msrb.mxu2 %v2575_v58  ;;  %v3501_v0 = vld [vmem:[%s3015_s18 + $0x13b] ss:$2 sm:$0xff]  ;;  %v3536_v58 = vadd.f32 %v3155_v22, %v3139_v15 }
  0x5b   : > { %1204 = vmatpush.msra.mxu3 %v2599_v27  ;;  %1033 = vmatpush.msrb.mxu1 %v2558_v8  ;;  %v3510_v27 = vld [vmem:[%s3015_s18 + $0x62] ss:$2 sm:$0xff]  ;;  %v901_v34 = vadd.f32 %v3437_v36, %v893_v16  ;;  %v2572_v52 = vld [vmem:[%s4358_s1 + $0x318] sm:$0xff] }
  0x5c   : > { %947 = vmatpush.msrb.mxu0 %v2538_v25  ;;  %v726_v25 = vadd.f32 %v3217_v62, %v718_v12  ;;  %1123 = vmatpush.msrb.mxu2 %v2574_v23  ;;  %v719_v12 = vadd.f32 %v2392_v39, %v3238_v10  ;;  %v2613_v16 = vld [vmem:[%s4358_s1 + $0x460] sm:$0xff]  ;;  %v2571_v23 = vld [vmem:[%s4358_s1 + $0x310] sm:$0xff] }
  0x5d   : > { %1205 = vmatpush.msra.mxu3 %v2598_v51  ;;  %1034 = vmatpush.msrb.mxu1 %v2557_v24  ;;  %v805_v51 = vadd.f32 %v3305_v1, %v3272_v38  ;;  %v3549_v8 = vadd.f32 %v3510_v27, %v901_v34  ;;  %v3578_v24 = vld [vmem:[%s3015_s18 + $0xc1] ss:$2 sm:$0xff]  ;;  %v2612_v34 = vld [vmem:[%s4358_s1 + $0x458] sm:$0xff] }
  0x5e   : > { %948 = vmatpush.msrb.mxu0 %v2537_v3  ;;  %v571_v3 = vadd.f32 %v3197_v48, %v563_v19  ;;  %v734_v38 = vadd.f32 %v3501_v0, %v726_v25  ;;  %1124 = vmatpush.msrb.mxu2 %v2573_v31  ;;  %v2554_v19 = vld [vmem:[%s4358_s1 + $0x288] sm:$0xff]  ;;  %v902_v25 = vadd.f32 %v3494_v63, %v894_v54  ;;  %v2553_v39 = vld [vmem:[%s4358_s1 + $0x280] sm:$0xff] }
  0x5f   : > { %949 = vmatmul.f32.vlgmr.msrb.gmra.mxu0 %v3451_v49  ;;  %1206 = vmatpush.msra.mxu3 %v2597_v17  ;;  %v3566_v17 = vld [vmem:[%s3015_s18 + $0x16b] ss:$2 sm:$0xff]  ;;  %v3608_v54 = vadd.f32 %v3217_v62, %v3197_v48 }
  0x60   : > { %702 = vmatmul.f32.gmra.mxu1 %v570_v4  ;;  %862 = vmatmul.f32.gmra.mxu3 %v819_v5  ;;  %v820_v4 = vadd.f32 %v3494_v63, %v812_v21  ;;  %v556_v5 = vadd.f32 %v3231_v7, %v2368_v35  ;;  %v3556_v7 = vld [vmem:[%s3015_s18 + $0xc0] ss:$2 sm:$0xff]  ;;  %v727_v21 = vadd.f32 %v3300_v55, %v719_v12 }
  0x61   : > { %784 = vmatmul.f32.gmra.mxu2 %v733_v9  ;;  %1293 = vmatpush.msra.mxu0 %v2616_v29  ;;  %v3552_v9 = vld [vmem:[%s3015_s18 + $0x168] ss:$2 sm:$0xff] }
  0x62   : > { %1207 = vmatpush.msra.mxu3 %v2596_v30  ;;  %1035 = vmatpush.msrb.mxu1 %v2556_v40  ;;  %v2594_v29 = vld [vmem:[%s4358_s1 + $0x3c8] sm:$0xff]  ;;  %v564_v10 = vadd.f32 %v3552_v9, %v556_v5  ;;  %v2593_v30 = vld [vmem:[%s4358_s1 + $0x3c0] sm:$0xff]  ;;  %v982_v40 = vadd.f32 %v3107_v61, %v3081_v50  ;;  %v3622_v5 = vld [vmem:[%s3015_s18 + $0xf0] ss:$2 sm:$0xff] }
  0x63   : > { %1294 = vmatpush.msra.mxu0 %v2615_v32  ;;  %1125 = vmatpush.msrb.mxu2 %v2572_v52  ;;  %v813_v32 = vadd.f32 %v3556_v7, %v805_v51  ;;  %v3588_v35 = vld [vmem:[%s3015_s18 + $0x92] ss:$2 sm:$0xff]  ;;  %v2570_v31 = vld [vmem:[%s4358_s1 + $0x308] sm:$0xff]  ;;  %v1072_v52 = vadd.f32 %v3368_v47, %v3343_v28 }
  0x64   : > { %1208 = vmatpush.msra.mxu3 %v2595_v44  ;;  %1036 = vmatpush.msrb.mxu1 %v2555_v2  ;;  %v806_v44 = vadd.f32 %v3069_v45, %v3339_v26  ;;  %v2592_v51 = vld [vmem:[%s4358_s1 + $0x3b8] sm:$0xff]  ;;  %v572_v50 = vadd.f32 %v3269_v37, %v564_v10  ;;  %v895_v45 = vadd.f32 %v3278_v41, %v3305_v1  ;;  %v2457_v2 = vld [vmem:[%s3015_s18 + $0x48] ss:$2 sm:$0xff] }
  0x65   : > { %1295 = vmatpush.msra.mxu0 %v2614_v43  ;;  %1126 = vmatpush.msrb.mxu2 %v2571_v23  ;;  %v2611_v43 = vld [vmem:[%s4358_s1 + $0x450] sm:$0xff]  ;;  %v821_v61 = vadd.f32 %v3578_v24, %v813_v32  ;;  %v735_v26 = vadd.f32 %v3566_v17, %v727_v21  ;;  %v2610_v1 = vld [vmem:[%s4358_s1 + $0x448] sm:$0xff]  ;;  %v990_v12 = vadd.f32 %v3409_v46, %v982_v40  ;;  %v2609_v23 = vld [vmem:[%s4358_s1 + $0x440] sm:$0xff] }
  0x66   : > { %1209 = vmatpush.msra.mxu3 %v2594_v29  ;;  %1037 = vmatpush.msrb.mxu1 %v2554_v19  ;;  %v814_v28 = vadd.f32 %v3622_v5, %v806_v44  ;;  %v903_v29 = vadd.f32 %v3578_v24, %v895_v45  ;;  %v3641_v10 = vld [vmem:[%s3015_s18 + $0x33] ss:$2 sm:$0xff]  ;;  %v1080_v32 = vadd.f32 %v2457_v2, %v1072_v52  ;;  %v2590_v19 = vld [vmem:[%s4358_s1 + $0x3a8] sm:$0xff] }
  0x67   : > { %952 = vmatmul.f32.gmra.mxu0 %v3549_v8  ;;  %1127 = vmatpush.msrb.mxu2 %v2570_v31  ;;  %v3651_v21 = vadd.f32 %v3300_v55, %v3269_v37  ;;  %v2608_v31 = vld [vmem:[%s4358_s1 + $0x438] sm:$0xff]  ;;  %v807_v44 = vadd.f32 %v3139_v15, %v3402_v14  ;;  %v2607_v15 = vld [vmem:[%s4358_s1 + $0x430] sm:$0xff] }
  0x68   : > { %705 = vmatmul.f32.gmra.mxu1 %v571_v3  ;;  %865 = vmatmul.f32.gmra.mxu3 %v820_v4  ;;  %v2569_v3 = vld [vmem:[%s4358_s1 + $0x300] sm:$0xff]  ;;  %v3619_v4 = vadd.f32 %v3588_v35, %v902_v25  ;;  %v2588_v14 = vld [vmem:[%s4358_s1 + $0x398] sm:$0xff] }
  0x69   : > { %787 = vmatmul.f32.gmra.mxu2 %v734_v38  ;;  %1296 = vmatpush.msra.mxu0 %v2613_v16  ;;  %v2591_v38 = vld [vmem:[%s4358_s1 + $0x3b0] sm:$0xff] }
  0x6a   : > { %1210 = vmatpush.msra.mxu3 %v2593_v30  ;;  %1038 = vmatpush.msrb.mxu1 %v2553_v39  ;;  %v3635_v16 = vld [vmem:[%s3015_s18 + $0xf1] ss:$2 sm:$0xff]  ;;  %v3654_v25 = vld [vmem:[%s3015_s18 + $0xc2] ss:$2 sm:$0xff]  ;;  %v983_v30 = vadd.f32 %v3175_v33, %v3149_v20 }
  0x6b   : > { %1297 = vmatpush.msra.mxu0 %v2612_v34  ;;  %1128 = vmatpush.msrb.mxu2 %v2569_v3  ;;  %v3657_v34 = vld [vmem:[%s3015_s18 + $0x49] ss:$2 sm:$0xff]  ;;  %v2589_v39 = vld [vmem:[%s4358_s1 + $0x3a0] sm:$0xff]  ;;  %v822_v40 = vadd.f32 %v3635_v16, %v814_v28  ;;  %v3672_v20 = vadd.f32 %v3654_v25, %v903_v29 }
  0x6c   : > { %1211 = vmatpush.msra.mxu3 %v2592_v51  ;;  %v1088_v33 = vadd.f32 %v3657_v34, %v1080_v32  ;;  %v3676_v51 = vld [vmem:[%s3015_s18 + $0x120] ss:$2 sm:$0xff]  ;;  %v3688_v3 = vld [vmem:[%s3015_s18 + $0x121] ss:$2 sm:$0xff] }
  0x6d   : > { %1298 = vmatpush.msra.mxu0 %v2611_v43  ;;  %v998_v43 = vadd.f32 %v3641_v10, %v990_v12  ;;  %v815_v45 = vadd.f32 %v3676_v51, %v807_v44  ;;  %v3696_v52 = vld [vmem:[%s3015_s18 + $0x63] ss:$2 sm:$0xff]  ;;  %v3705_v12 = vld [vmem:[%s3015_s18 + $0xf2] ss:$2 sm:$0xff] }
  0x6e   : > { %1212 = vmatpush.msra.mxu3 %v2591_v38  ;;  %v2587_v38 = vld [vmem:[%s4358_s1 + $0x390] sm:$0xff]  ;;  %v3708_v28 = vld [vmem:[%s3015_s18 + $0x79] ss:$2 sm:$0xff]  ;;  %v2586_v32 = vld [vmem:[%s4358_s1 + $0x388] sm:$0xff] }
  0x6f   : > { %955 = vmatmul.f32.gmra.mxu0 %v3619_v4  ;;  %v2605_v29 = vld [vmem:[%s4358_s1 + $0x420] sm:$0xff] }
  0x70   : > { %708 = vmatmul.f32.gmra.mxu1 %v572_v50  ;;  %868 = vmatmul.f32.gmra.mxu3 %v821_v61  ;;  %v1073_v50 = vadd.f32 %v3437_v36, %v3406_v18  ;;  %v2458_v61 = vld [vmem:[%s3015_s18 + $0x78] ss:$2 sm:$0xff]  ;;  %v991_v18 = vadd.f32 %v3510_v27, %v983_v30  ;;  %v808_v30 = vadd.f32 %v3197_v48, %v3476_v11 }
  0x71   : > { %790 = vmatmul.f32.gmra.mxu2 %v735_v26  ;;  %1299 = vmatpush.msra.mxu0 %v2610_v1  ;;  %v904_v26 = vadd.f32 %v3635_v16, %v3463_v59  ;;  %v2606_v1 = vld [vmem:[%s4358_s1 + $0x428] sm:$0xff]  ;;  %v984_v59 = vadd.f32 %v3243_v13, %v3210_v56  ;;  %v2604_v48 = vld [vmem:[%s4358_s1 + $0x418] sm:$0xff]  ;;  %v2585_v11 = vld [vmem:[%s4358_s1 + $0x380] sm:$0xff] }
  0x72   : > { %1213 = vmatpush.msra.mxu3 %v2590_v19  ;;  %v1081_v2 = vadd.f32 %v2458_v61, %v1073_v50  ;;  %v999_v19 = vadd.f32 %v3696_v52, %v991_v18  ;;  %v3747_v50 = vld [vmem:[%s3015_s18 + $0x93] ss:$2 sm:$0xff]  ;;  %v2602_v18 = vld [vmem:[%s4358_s1 + $0x408] sm:$0xff] }
  0x73   : > { %1300 = vmatpush.msra.mxu0 %v2609_v23  ;;  %v823_v23 = vadd.f32 %v3688_v3, %v815_v45  ;;  %v3723_v56 = vadd.f32 %v3705_v12, %v904_v26  ;;  %v992_v44 = vadd.f32 %v3588_v35, %v984_v59  ;;  %v3756_v45 = vld [vmem:[%s3015_s18 + $0xa9] ss:$2 sm:$0xff] }
  0x74   : > { %1214 = vmatpush.msra.mxu3 %v2589_v39  ;;  %v1089_v13 = vadd.f32 %v3708_v28, %v1081_v2  ;;  %v1074_v39 = vadd.f32 %v3494_v63, %v3480_v60  ;;  %v3742_v60 = vld [vmem:[%s3015_s18 + $0x151] ss:$2 sm:$0xff] }
  0x75   : > { %1301 = vmatpush.msra.mxu0 %v2608_v31  ;;  %v3727_v31 = vld [vmem:[%s3015_s18 + $0x150] ss:$2 sm:$0xff]  ;;  %v1000_v2 = vadd.f32 %v3747_v50, %v992_v44 }
  0x76   : > { %1215 = vmatpush.msra.mxu3 %v2588_v14  ;;  %v3753_v14 = vld [vmem:[%s3015_s18 + $0x122] ss:$2 sm:$0xff] }
  0x77   : > { %958 = vmatmul.f32.gmra.mxu0 %v3672_v20 }
  0x78   : > { %871 = vmatmul.f32.gmra.mxu3 %v822_v40  ;;  %1039 = vmatmul.f32.vlgmr.msrb.gmra.mxu1 %v998_v43  ;;  %v2459_v40 = vld [vmem:[%s3015_s18 + $0xa8] ss:$2 sm:$0xff]  ;;  %v816_v43 = vadd.f32 %v3727_v31, %v808_v30 }
  0x79   : > { %1129 = vmatmul.f32.vlgmr.msrb.gmra.mxu2 %v1088_v33  ;;  %1302 = vmatpush.msra.mxu0 %v2607_v15  ;;  %v905_v33 = vadd.f32 %v3688_v3, %v3536_v58  ;;  %v1082_v61 = vadd.f32 %v2459_v40, %v1074_v39  ;;  %v2603_v15 = vld [vmem:[%s4358_s1 + $0x410] sm:$0xff]  ;;  %v985_v58 = vadd.f32 %v3313_v6, %v3278_v41  ;;  %v2460_v6 = vld [vmem:[%s3015_s18 + $0xd8] ss:$2 sm:$0xff]  ;;  %v3795_v39 = vld [vmem:[%s3015_s18 + $0xd9] ss:$2 sm:$0xff] }
  0x7a   : > { %1216 = vmatpush.msra.mxu3 %v2587_v38  ;;  %v824_v26 = vadd.f32 %v3742_v60, %v816_v43  ;;  %v1075_v41 = vadd.f32 %v3578_v24, %v3556_v7  ;;  %v906_v7 = vadd.f32 %v3742_v60, %v3608_v54  ;;  %v986_v40 = vadd.f32 %v3375_v53, %v3099_v57  ;;  %v2473_v53 = vld [vmem:[%s3015_s18 + $0x4a] ss:$2 sm:$0xff] }
  0x7b   : > { %1303 = vmatpush.msra.mxu0 %v2606_v1  ;;  %v809_v1 = vadd.f32 %v3269_v37, %v3552_v9  ;;  %v3768_v38 = vadd.f32 %v3753_v14, %v905_v33  ;;  %v1090_v59 = vadd.f32 %v3756_v45, %v1082_v61  ;;  %v2601_v37 = vld [vmem:[%s4358_s1 + $0x400] sm:$0xff]  ;;  %v1076_v33 = vadd.f32 %v3635_v16, %v3622_v5  ;;  %v2461_v61 = vld [vmem:[%s3015_s18 + $0x108] ss:$2 sm:$0xff]  ;;  %v3823_v5 = vld [vmem:[%s3015_s18 + $0x109] ss:$2 sm:$0xff] }
  0x7c   : > { %1217 = vmatpush.msra.mxu3 %v2586_v32  ;;  %v993_v32 = vadd.f32 %v3654_v25, %v985_v58  ;;  %v1083_v30 = vadd.f32 %v2460_v6, %v1075_v41 }
  0x7d   : > { %1304 = vmatpush.msra.mxu0 %v2605_v29  ;;  %v3772_v29 = vld [vmem:[%s3015_s18 + $0x180] ss:$2 sm:$0xff]  ;;  %v1084_v58 = vadd.f32 %v2461_v61, %v1076_v33  ;;  %v1078_v33 = vadd.f32 %v3742_v60, %v3727_v31  ;;  %v989_v31 = vadd.f32 %v3566_v17, %v3300_v55 }
  0x7e   : > { %1218 = vmatpush.msra.mxu3 %v2585_v11  ;;  %v817_v9 = vadd.f32 %v3772_v29, %v809_v1  ;;  %v1091_v44 = vadd.f32 %v3795_v39, %v1083_v30  ;;  %v2481_v30 = vld [vmem:[%s3015_s18 + $0x4b] ss:$2 sm:$0xff]  ;;  %v2463_v61 = vld [vmem:[%s3015_s18 + $0x168] ss:$2 sm:$0xff] }
  0x7f   : > { %961 = vmatmul.f32.gmra.mxu0 %v3723_v56  ;;  %v1092_v6 = vadd.f32 %v3823_v5, %v1084_v58 }
  0x80   : > { %874 = vmatmul.f32.gmra.mxu3 %v823_v23  ;;  %1042 = vmatmul.f32.gmra.mxu1 %v999_v19  ;;  %v3784_v23 = vld [vmem:[%s3015_s18 + $0x181] ss:$2 sm:$0xff] }
  0x81   : > { %1132 = vmatmul.f32.gmra.mxu2 %v1089_v13  ;;  %1305 = vmatpush.msra.mxu0 %v2604_v48  ;;  %v3789_v19 = vld [vmem:[%s3015_s18 + $0xc3] ss:$2 sm:$0xff]  ;;  %v3792_v13 = vld [vmem:[%s3015_s18 + $0x152] ss:$2 sm:$0xff]  ;;  %v1162_v48 = vadd.f32 %v3409_v46, %v3368_v47  ;;  %v825_v11 = vadd.f32 %v3784_v23, %v817_v9  ;;  %v994_v47 = vadd.f32 %v3705_v12, %v986_v40 }
  0x82   : > { %v1001_v54 = vadd.f32 %v3789_v19, %v993_v32  ;;  %v3804_v43 = vadd.f32 %v3792_v13, %v906_v7  ;;  %v2474_v32 = vld [vmem:[%s3015_s18 + $0x7a] ss:$2 sm:$0xff]  ;;  %v3847_v7 = vld [vmem:[%s3015_s18 + $0x139] ss:$2 sm:$0xff] }
  0x83   : > { %1306 = vmatpush.msra.mxu0 %v2603_v15  ;;  %v1170_v57 = vadd.f32 %v3657_v34, %v1162_v48  ;;  %v907_v15 = vadd.f32 %v3784_v23, %v3651_v21  ;;  %v987_v34 = vadd.f32 %v3444_v42, %v3155_v22  ;;  %v1252_v21 = vadd.f32 %v3641_v10, %v3409_v46  ;;  %v2462_v42 = vld [vmem:[%s3015_s18 + $0x138] ss:$2 sm:$0xff]  ;;  %v3843_v46 = vld [vmem:[%s3015_s18 + $0x123] ss:$2 sm:$0xff] }
  0x84   : > { %v1077_v22 = vadd.f32 %v3688_v3, %v3676_v51  ;;  %v988_v51 = vadd.f32 %v3501_v0, %v3217_v62  ;;  %v1164_v48 = vadd.f32 %v3588_v35, %v3494_v63  ;;  %v3864_v63 = vld [vmem:[%s3015_s18 + $0x153] ss:$2 sm:$0xff] }
  0x85   : > { %1307 = vmatpush.msra.mxu0 %v2602_v18  ;;  %v3817_v18 = vld [vmem:[%s3015_s18 + $0xf3] ss:$2 sm:$0xff]  ;;  %v1178_v1 = vadd.f32 %v2473_v53, %v1170_v57  ;;  %v1260_v9 = vadd.f32 %v2473_v53, %v1252_v21  ;;  %v2464_v21 = vld [vmem:[%s3015_s18 + $0x198] ss:$2 sm:$0xff] }
  0x86   : > { %v1085_v10 = vadd.f32 %v2462_v42, %v1077_v22  ;;  %v996_v62 = vadd.f32 %v3792_v13, %v988_v51  ;;  %v1172_v0 = vadd.f32 %v3756_v45, %v1164_v48  ;;  %v2482_v53 = vld [vmem:[%s3015_s18 + $0x7b] ss:$2 sm:$0xff]  ;;  %v1165_v45 = vadd.f32 %v3654_v25, %v3578_v24  ;;  %v2483_v42 = vld [vmem:[%s3015_s18 + $0xab] ss:$2 sm:$0xff] }
  0x87   : > { %964 = vmatmul.f32.gmra.mxu0 %v3768_v38  ;;  %v3882_v24 = vld [vmem:[%s3015_s18 + $0x183] ss:$2 sm:$0xff] }
  0x88   : > { %877 = vmatmul.f32.gmra.mxu3 %v824_v26  ;;  %1045 = vmatmul.f32.gmra.mxu1 %v1000_v2  ;;  %v3820_v26 = vld [vmem:[%s3015_s18 + $0x182] ss:$2 sm:$0xff]  ;;  %v1002_v2 = vadd.f32 %v3817_v18, %v994_v47  ;;  %v2471_v47 = vld [vmem:[%s3015_s18 + $0x169] ss:$2 sm:$0xff]  ;;  %v1173_v17 = vadd.f32 %v3795_v39, %v1165_v45  ;;  %v2472_v22 = vld [vmem:[%s3015_s18 + $0x199] ss:$2 sm:$0xff]  ;;  %v1255_v39 = vadd.f32 %v3789_v19, %v3654_v25 }
  0x89   : > { %1135 = vmatmul.f32.gmra.mxu2 %v1090_v59  ;;  %1308 = vmatpush.msra.mxu0 %v2601_v37  ;;  %v1163_v59 = vadd.f32 %v3510_v27, %v3437_v36  ;;  %v3833_v41 = vadd.f32 %v3820_v26, %v907_v15  ;;  %v995_v37 = vadd.f32 %v3753_v14, %v987_v34  ;;  %v1431_v45 = vld [vmem:[#allocation3 + $0x78] sm:$0xff] }
  0x8a   : > { %v1004_v15 = vadd.f32 %v3864_v63, %v996_v62  ;;  %v1254_v34 = vadd.f32 %v3747_v50, %v3588_v35  ;;  %v997_v55 = vadd.f32 %v3820_v26, %v989_v31  ;;  %v2476_v35 = vld [vmem:[%s3015_s18 + $0xda] ss:$2 sm:$0xff]  ;;  %v1256_v25 = vadd.f32 %v3817_v18, %v3705_v12  ;;  %v2486_v31 = vld [vmem:[%s3015_s18 + $0x13b] ss:$2 sm:$0xff]  ;;  %1498 = vmatpush.msra.mxu2 %v1431_v45 }
  0x8b   : > { %v1171_v36 = vadd.f32 %v3708_v28, %v1163_v59  ;;  %v1003_v40 = vadd.f32 %v3843_v46, %v995_v37  ;;  %v1079_v59 = vadd.f32 %v3784_v23, %v3772_v29  ;;  %v1181_v37 = vadd.f32 %v2476_v35, %v1173_v17  ;;  %v2487_v17 = vld [vmem:[%s3015_s18 + $0x16b] ss:$2 sm:$0xff] }
  0x8c   : > { %v1005_v29 = vadd.f32 %v3882_v24, %v997_v55  ;;  %v1263_v51 = vadd.f32 %v2476_v35, %v1255_v39  ;;  %v1257_v18 = vadd.f32 %v3843_v46, %v3753_v14  ;;  %v1258_v46 = vadd.f32 %v3864_v63, %v3792_v13  ;;  %v2488_v39 = vld [vmem:[%s3015_s18 + $0x19b] ss:$2 sm:$0xff] }
  0x8d   : > { %v1179_v28 = vadd.f32 %v2474_v32, %v1171_v36  ;;  %v1166_v36 = vadd.f32 %v3705_v12, %v3635_v16  ;;  %v1167_v16 = vadd.f32 %v3753_v14, %v3688_v3  ;;  %v1168_v12 = vadd.f32 %v3792_v13, %v3742_v60 }
  0x8e   : > { %v1169_v14 = vadd.f32 %v3820_v26, %v3784_v23  ;;  %v1259_v63 = vadd.f32 %v3882_v24, %v3820_v26 }
  0x8f   : > { %967 = vmatmul.f32.gmra.mxu0 %v3804_v43 }
  0x90   : > { %880 = vmatmul.f32.gmra.mxu3 %v825_v11  ;;  %1048 = vmatmul.f32.gmra.mxu1 %v1001_v54  ;;  %v1253_v11 = vadd.f32 %v3696_v52, %v3510_v27  ;;  %v1093_v54 = vadd.f32 %v3847_v7, %v1085_v10  ;;  %v1086_v27 = vadd.f32 %v2463_v61, %v1078_v33  ;;  %v2475_v52 = vld [vmem:[%s3015_s18 + $0xaa] ss:$2 sm:$0xff]  ;;  %v2485_v61 = vld [vmem:[%s3015_s18 + $0x10b] ss:$2 sm:$0xff] }
  0x91   : > { %1138 = vmatmul.f32.gmra.mxu2 %v1091_v44  ;;  %v1268_v44 = vadd.f32 %v2481_v30, %v1260_v9  ;;  %v1180_v58 = vadd.f32 %v2475_v52, %v1172_v0  ;;  %v1262_v50 = vadd.f32 %v2475_v52, %v1254_v34  ;;  %v2477_v30 = vld [vmem:[%s3015_s18 + $0x10a] ss:$2 sm:$0xff] }
  0x92   : > { %v1261_v57 = vadd.f32 %v2474_v32, %v1253_v11  ;;  %v1174_v32 = vadd.f32 %v3823_v5, %v1166_v36  ;;  %v1175_v5 = vadd.f32 %v3847_v7, %v1167_v16  ;;  %v1456_v34 = vld [vmem:[#allocation3 + $0xf8] sm:$0xff] }
  0x93   : > { %v1270_v10 = vadd.f32 %v2483_v42, %v1262_v50  ;;  %1457 = vmatpush.msra.mxu1 %v1456_v34  ;;  %v1429_v42 = vld [vmem:[#allocation3 + $0x68] sm:$0xff] }
  0x97   : > { %970 = vmatmul.f32.gmra.mxu0 %v3833_v41 }
  0x98   : > { %1051 = vmatmul.f32.gmra.mxu1 %v1002_v2  ;;  %1219 = vmatmul.f32.vlgmr.msra.gmra.mxu3 %v1178_v1  ;;  %v1094_v2 = vadd.f32 %v2471_v47, %v1086_v27  ;;  %v1269_v1 = vadd.f32 %v2482_v53, %v1261_v57  ;;  %v1176_v27 = vadd.f32 %v2471_v47, %v1168_v12  ;;  %v2479_v57 = vld [vmem:[%s3015_s18 + $0x16a] ss:$2 sm:$0xff] }
  0x99   : > { %1141 = vmatmul.f32.gmra.mxu2 %v1092_v6  ;;  %v1087_v6 = vadd.f32 %v2464_v21, %v1079_v59  ;;  %v2480_v59 = vld [vmem:[%s3015_s18 + $0x19a] ss:$2 sm:$0xff]  ;;  %v1266_v21 = vadd.f32 %v2479_v57, %v1258_v46 }
  0x9a   : > { %v1184_v60 = vadd.f32 %v2479_v57, %v1176_v27  ;;  %v1267_v36 = vadd.f32 %v2480_v59, %v1259_v63  ;;  %v1449_v27 = vld [vmem:[#allocation3 + $0xc0] sm:$0xff]  ;;  %v1423_v57 = vld [vmem:[#allocation3 + $0x38] sm:$0xff]  ;;  %v1558_v63 = vld [vmem:[#allocation3 + $0x150] sm:$0xff] }
  0x9b   : > { %v1095_v9 = vadd.f32 %v2472_v22, %v1087_v6  ;;  %v1274_v50 = vadd.f32 %v2487_v17, %v1266_v21  ;;  %v1447_v21 = vld [vmem:[#allocation3 + $0xb0] sm:$0xff]  ;;  %v1421_v17 = vld [vmem:[#allocation3 + $0x28] sm:$0xff] }
  0x9c   : > { %v1275_v24 = vadd.f32 %v2488_v39, %v1267_v36  ;;  %v1556_v39 = vld [vmem:[#allocation3 + $0x140] sm:$0xff] }
  0x9f   : > { %1309 = vmatmul.f32.vlgmr.msra.gmra.mxu0 %v1268_v44  ;;  %v1264_v44 = vadd.f32 %v2477_v30, %v1256_v25 }
  0xa0   : > { %1054 = vmatmul.f32.gmra.mxu1 %v1003_v40  ;;  %1222 = vmatmul.f32.gmra.mxu3 %v1179_v28  ;;  %v2484_v40 = vld [vmem:[%s3015_s18 + $0xdb] ss:$2 sm:$0xff]  ;;  %v1182_v28 = vadd.f32 %v2477_v30, %v1174_v32 }
  0xa1   : > { %1144 = vmatmul.f32.gmra.mxu2 %v1093_v54  ;;  %v1271_v19 = vadd.f32 %v2484_v40, %v1263_v51  ;;  %v2478_v54 = vld [vmem:[%s3015_s18 + $0x13a] ss:$2 sm:$0xff]  ;;  %v1272_v0 = vadd.f32 %v2485_v61, %v1264_v44 }
  0xa2   : > { %v1183_v62 = vadd.f32 %v2478_v54, %v1175_v5  ;;  %v1265_v53 = vadd.f32 %v2478_v54, %v1257_v18  ;;  %v1453_v30 = vld [vmem:[#allocation3 + $0xe0] sm:$0xff]  ;;  %v1427_v51 = vld [vmem:[#allocation3 + $0x58] sm:$0xff]  ;;  %v1451_v5 = vld [vmem:[#allocation3 + $0xd0] sm:$0xff] }
  0xa3   : > { %v1452_v40 = vld [vmem:[#allocation3 + $0xd8] sm:$0xff]  ;;  %v1425_v54 = vld [vmem:[#allocation3 + $0x48] sm:$0xff]  ;;  %v1424_v61 = vld [vmem:[#allocation3 + $0x40] sm:$0xff] }
  0xa4   : > { %v1273_v47 = vadd.f32 %v2486_v31, %v1265_v53  ;;  %v1450_v44 = vld [vmem:[#allocation3 + $0xc8] sm:$0xff]  ;;  %v1562_v53 = vld [vmem:[#allocation3 + $0x170] sm:$0xff]  ;;  %v1448_v31 = vld [vmem:[#allocation3 + $0xb8] sm:$0xff] }
  0xa7   : > { %1312 = vmatmul.f32.gmra.mxu0 %v1269_v1  ;;  %v1177_v1 = vadd.f32 %v2472_v22, %v1169_v14  ;;  %v1455_v22 = vld [vmem:[#allocation3 + $0xf0] sm:$0xff]  ;;  %v1637_v14 = vld [vmem:[#allocation3 + $0x1f8] sm:$0xff] }
  0xa8   : > { %1057 = vmatmul.f32.gmra.mxu1 %v1004_v15  ;;  %1225 = vmatmul.f32.gmra.mxu3 %v1180_v58 }
  0xa9   : > { %1147 = vmatmul.f32.gmra.mxu2 %v1094_v2  ;;  %v1430_v2 = vld [vmem:[#allocation3 + $0x70] sm:$0xff]  ;;  %v1185_v13 = vadd.f32 %v2480_v59, %v1177_v1  ;;  %1458 = vmatpush.msra.mxu1 %v1455_v22  ;;  %v1559_v59 = vld [vmem:[#allocation3 + $0x158] sm:$0xff]  ;;  %v1420_v22 = vld [vmem:[#allocation3 + $0x20] sm:$0xff] }
  0xaa   : > { %1499 = vmatpush.msra.mxu2 %v1430_v2  ;;  %1638 = vmatpush.msrb.mxu0 %v1637_v14  ;;  %v1560_v2 = vld [vmem:[#allocation3 + $0x160] sm:$0xff]  ;;  %v1442_v14 = vld [vmem:[#allocation3 + $0x88] sm:$0xff] }
  0xac   : > { %1500 = vmatpush.msra.mxu2 %v1429_v42  ;;  %v1635_v42 = vld [vmem:[#allocation3 + $0x1e8] sm:$0xff] }
  0xaf   : > { %1315 = vmatmul.f32.gmra.mxu0 %v1270_v10 }
  0xb0   : > { %1060 = vmatmul.f32.gmra.mxu1 %v1005_v29  ;;  %1228 = vmatmul.f32.gmra.mxu3 %v1181_v37  ;;  %v1454_v29 = vld [vmem:[#allocation3 + $0xe8] sm:$0xff]  ;;  %v1428_v37 = vld [vmem:[#allocation3 + $0x60] sm:$0xff] }
  0xb1   : > { %1150 = vmatmul.f32.gmra.mxu2 %v1095_v9  ;;  %1459 = vmatpush.msra.mxu1 %v1454_v29  ;;  %v1557_v29 = vld [vmem:[#allocation3 + $0x148] sm:$0xff] }
  0xb2   : > { %1501 = vmatpush.msra.mxu2 %v1428_v37 }
  0xb3   : > { %1460 = vmatpush.msra.mxu1 %v1453_v30  ;;  %v1445_v30 = vld [vmem:[#allocation3 + $0xa0] sm:$0xff] }
  0xb4   : > { %v3899_v48 = vpop.f32.mrf.mxu1  ;;  %1502 = vmatpush.msra.mxu2 %v1427_v51 }
  0xb5   : > { %1461 = vmatpush.msra.mxu1 %v1452_v40 }
  0xb7   : > { %v3901_v11 = vpop.f32.mrf.mxu0  ;;  %1318 = vmatmul.f32.gmra.mxu0 %v1271_v19  ;;  %1462 = vmatpush.msra.mxu1 %v1451_v5  ;;  %v1633_v5 = vld [vmem:[#allocation3 + $0x1d8] sm:$0xff] }
  0xb8   : > { %1231 = vmatmul.f32.gmra.mxu3 %v1182_v28  ;;  %v1426_v28 = vld [vmem:[#allocation3 + $0x50] sm:$0xff] }
  0xb9   : > { %v3905_v33 = vpop.f32.mrf.mxu3  ;;  %1503 = vmatpush.msra.mxu2 %v1426_v28  ;;  %1463 = vmatpush.msra.mxu1 %v1450_v44  ;;  %v1555_v28 = vld [vmem:[#allocation3 + $0x138] sm:$0xff]  ;;  %v2832_v44 = vmov 0.0  }
  0xba   : > { %1378 = vst [vmem:[#allocation2] sm:$0xff] %v2832_v44 }
  0xbb   : > { %v3908_v3 = vpop.f32.mrf.mxu2  ;;  %1504 = vmatpush.msra.mxu2 %v1425_v54  ;;  %1464 = vmatpush.msra.mxu1 %v1449_v27  ;;  %v1444_v54 = vld [vmem:[#allocation3 + $0x98] sm:$0xff]  ;;  %v1632_v27 = vld [vmem:[#allocation3 + $0x1d0] sm:$0xff]  ;;  %1379 = vst [vmem:[#allocation2 + $0x8] sm:$0x3] %v2832_v44 }
  0xbc   : > { %1381 = vst [vmem:[#allocation2 + $0x90] sm:$0xff] %v2832_v44 }
  0xbd   : > { %v3916_v52 = vpop.f32.mrf.mxu1  ;;  %1505 = vmatpush.msra.mxu2 %v1424_v61  ;;  %1465 = vmatpush.msra.mxu1 %v1448_v31  ;;  %v1419_v61 = vld [vmem:[#allocation3 + $0x18] sm:$0xff]  ;;  %v1631_v31 = vld [vmem:[#allocation3 + $0x1c8] sm:$0xff]  ;;  %1382 = vst [vmem:[#allocation2 + $0x98] sm:$0x3] %v2832_v44 }
  0xbe   : > { %1384 = vst [vmem:[#allocation2 + $0x10] sm:$0x1] %v2832_v44 }
  0xbf   : > { %v3914_v7 = vpop.f32.mrf.mxu0  ;;  %1321 = vmatmul.f32.gmra.mxu0 %v1272_v0  ;;  %v1563_v0 = vld [vmem:[#allocation3 + $0x178] sm:$0xff]  ;;  %1506 = vmatpush.msra.mxu2 %v1423_v57  ;;  %v1418_v57 = vld [vmem:[#allocation3 + $0x10] sm:$0xff]  ;;  %1385 = vst [vmem:[#allocation2 + $0x20] sm:$0x1] %v2832_v44 }
  0xc0   : > { %1234 = vmatmul.f32.gmra.mxu3 %v1183_v62  ;;  %1466 = vmatpush.msra.mxu1 %v1447_v21  ;;  %1386 = vst [vmem:[#allocation2 + $0x30] sm:$0x1] %v2832_v44  ;;  %v1441_v21 = vld [vmem:[#allocation3 + $0x80] sm:$0xff] }
  0xc1   : > { %1564 = vmatpush.msrb.mxu3 %v1563_v0  ;;  %v1554_v0 = vld [vmem:[#allocation3 + $0x130] sm:$0xff]  ;;  %1387 = vst [vmem:[#allocation2 + $0x40] sm:$0x1] %v2832_v44 }
  0xc2   : > { %v3920_v15 = vpop.f32.mrf.mxu3  ;;  %1388 = vst [vmem:[#allocation2 + $0x50] sm:$0x1] %v2832_v44 }
  0xc3   : > { %v3922_v58 = vpop.f32.mrf.mxu2  ;;  %1565 = vmatpush.msrb.mxu3 %v1562_v53  ;;  %v1553_v53 = vld [vmem:[#allocation3 + $0x128] sm:$0xff]  ;;  %1389 = vst [vmem:[#allocation2 + $0x60] sm:$0x1] %v2832_v44 }
  0xc4   : > { %1390 = vst [vmem:[#allocation2 + $0x70] sm:$0x1] %v2832_v44 }
  0xc5   : > { %v3932_v23 = vpop.f32.mrf.mxu1  ;;  %1391 = vst [vmem:[#allocation2 + $0x80] sm:$0x1] %v2832_v44 }
  0xc6   : > { %1392 = vst [vmem:[#allocation2 + $0x19] sm:$0x1] %v2832_v44 }
  0xc7   : > { %1324 = vmatmul.f32.gmra.mxu0 %v1273_v47  ;;  %v3929_v55 = vpop.f32.mrf.mxu0  ;;  %v1561_v47 = vld [vmem:[#allocation3 + $0x168] sm:$0xff]  ;;  %1393 = vst [vmem:[#allocation2 + $0x29] sm:$0x1] %v2832_v44 }
  0xc8   : > { %1237 = vmatmul.f32.gmra.mxu3 %v1184_v60  ;;  %v1422_v60 = vld [vmem:[#allocation3 + $0x30] sm:$0xff]  ;;  %1394 = vst [vmem:[#allocation2 + $0x39] sm:$0x1] %v2832_v44 }
  0xc9   : > { %1507 = vmatpush.msra.mxu2 %v1422_v60  ;;  %1566 = vmatpush.msrb.mxu3 %v1561_v47  ;;  %v1443_v60 = vld [vmem:[#allocation3 + $0x90] sm:$0xff]  ;;  %1395 = vst [vmem:[#allocation2 + $0x49] sm:$0x1] %v2832_v44 }
  0xca   : > { %1396 = vst [vmem:[#allocation2 + $0x59] sm:$0x1] %v2832_v44 }
  0xcb   : > { %v3934_v6 = vpop.f32.mrf.mxu3  ;;  %1567 = vmatpush.msrb.mxu3 %v1560_v2  ;;  %1508 = vmatpush.msra.mxu2 %v1421_v17  ;;  %v1552_v2 = vld [vmem:[#allocation3 + $0x120] sm:$0xff]  ;;  %1397 = vst [vmem:[#allocation2 + $0x69] sm:$0x1] %v2832_v44 }
  0xcc   : > { %v3938_v35 = vpop.f32.mrf.mxu2  ;;  %1398 = vst [vmem:[#allocation2 + $0x79] sm:$0x1] %v2832_v44 }
  0xcd   : > { %v3945_v26 = vpop.f32.mrf.mxu1  ;;  %1568 = vmatpush.msrb.mxu3 %v1559_v59  ;;  %1509 = vmatpush.msra.mxu2 %v1420_v22  ;;  %v1630_v59 = vld [vmem:[#allocation3 + $0x1c0] sm:$0xff]  ;;  %1399 = vst [vmem:[#allocation2 + $0x89] sm:$0x1] %v2832_v44 }
  0xce   : > { %v1432_v22 = vld [vmem:[#allocation2 + $0x1] sm:$0xff] }
  0xcf   : > { %1327 = vmatmul.f32.gmra.mxu0 %v1274_v50  ;;  %v3943_v10 = vpop.f32.mrf.mxu0  ;;  %v1446_v50 = vld [vmem:[#allocation3 + $0xa8] sm:$0xff]  ;;  %1569 = vmatpush.msrb.mxu3 %v1558_v63  ;;  %v1551_v63 = vld [vmem:[#allocation3 + $0x118] sm:$0xff] }
  0xd0   : > { %1240 = vmatmul.f32.gmra.mxu3 %v1185_v13  ;;  %v1636_v13 = vld [vmem:[#allocation3 + $0x1f0] sm:$0xff]  ;;  %1467 = vmatpush.msra.mxu1 %v1446_v50  ;;  %v1629_v50 = vld [vmem:[#allocation3 + $0x1b8] sm:$0xff] }
  0xd1   : > { %1639 = vmatpush.msrb.mxu0 %v1636_v13  ;;  %1570 = vmatpush.msrb.mxu3 %v1557_v29  ;;  %v1417_v29 = vld [vmem:[#allocation3 + $0x8] sm:$0xff] }
  0xd2   : > { %1468 = vmatpush.msra.mxu1 %v1445_v30  ;;  %1510 = vmatpush.msra.mxu2 %v1419_v61  ;;  %v1416_v30 = vld [vmem:[#allocation3] sm:$0xff] }
  0xd3   : > { %v3941_v9 = vpop.f32.mrf.mxu3  ;;  %1640 = vmatpush.msrb.mxu0 %v1635_v42  ;;  %1571 = vmatpush.msrb.mxu3 %v1556_v39  ;;  %v1550_v39 = vld [vmem:[#allocation3 + $0x110] sm:$0xff]  ;;  %v1548_v61 = vld [vmem:[#allocation3 + $0x100] sm:$0xff] }
  0xd4   : > { %v3947_v32 = vpop.f32.mrf.mxu2  ;;  %1469 = vmatpush.msra.mxu1 %v1444_v54  ;;  %1511 = vmatpush.msra.mxu2 %v1418_v57 }
  0xd5   : > { %v3953_v19 = vpop.f32.mrf.mxu1  ;;  %1572 = vmatpush.msrb.mxu3 %v1555_v28  ;;  %v1549_v28 = vld [vmem:[#allocation3 + $0x108] sm:$0xff] }
  0xd6   : > { %1470 = vmatpush.msra.mxu1 %v1443_v60  ;;  %1512 = vmatpush.msra.mxu2 %v1417_v29  ;;  %v1624_v60 = vld [vmem:[#allocation3 + $0x190] sm:$0xff]  ;;  %v1711_v29 = vld [vmem:[#allocation3 + $0x278] sm:$0xff] }
  0xd7   : > { %1330 = vmatmul.f32.gmra.mxu0 %v1275_v24  ;;  %v1634_v24 = vld [vmem:[#allocation3 + $0x1e0] sm:$0xff]  ;;  %1573 = vmatpush.msrb.mxu3 %v1554_v0 }
  0xd8   : > { %1641 = vmatpush.msrb.mxu0 %v1634_v24  ;;  %1471 = vmatpush.msra.mxu1 %v1442_v14  ;;  %v1628_v24 = vld [vmem:[#allocation3 + $0x1b0] sm:$0xff]  ;;  %v1626_v0 = vld [vmem:[#allocation3 + $0x1a0] sm:$0xff] }
  0xd9   : > { %1574 = vmatpush.msrb.mxu3 %v1553_v53  ;;  %1513 = vmatpush.msra.mxu2 %v1416_v30  ;;  %v1625_v53 = vld [vmem:[#allocation3 + $0x198] sm:$0xff] }
  0xda   : > { %1642 = vmatpush.msrb.mxu0 %v1633_v5  ;;  %1472 = vmatpush.msra.mxu1 %v1441_v21  ;;  %v1627_v5 = vld [vmem:[#allocation3 + $0x1a8] sm:$0xff]  ;;  %v689_v21 = vadd.f32 %v3899_v48, %v3901_v11  ;;  %v692_v48 = vadd.f32 %v3916_v52, %v3914_v7  ;;  %v695_v52 = vadd.f32 %v3932_v23, %v3929_v55 }
  0xdb   : > { %v3949_v16 = vpop.f32.mrf.mxu3  ;;  %1575 = vmatpush.msrb.mxu3 %v1552_v2  ;;  %1473 = vmatmul.f32.vlgmr.msra.gmra.mxu1 %v1432_v22  ;;  %v1623_v2 = vld [vmem:[#allocation3 + $0x188] sm:$0xff]  ;;  %v1785_v22 = vld [vmem:[#allocation3 + $0x2f8] sm:$0xff] }
  0xdc   : > { %v3951_v25 = vpop.f32.mrf.mxu0  ;;  %v3955_v62 = vpop.f32.mrf.mxu2  ;;  %1643 = vmatpush.msrb.mxu0 %v1632_v27  ;;  %1514 = vmatmul.f32.vlgmr.msra.gmra.mxu2 %v2832_v44  ;;  %v1539_v27 = vld [vmem:[#allocation2 + $0x2] sm:$0xff] }
  0xdd   : > { %v3961_v46 = vpop.f32.mrf.mxu1  ;;  %1576 = vmatpush.msrb.mxu3 %v1551_v63  ;;  %v1622_v63 = vld [vmem:[#allocation3 + $0x180] sm:$0xff]  ;;  %1786 = vmatpush.msrb.mxu2 %v1785_v22 }
  0xde   : > { %1644 = vmatpush.msrb.mxu0 %v1631_v31  ;;  %1712 = vmatpush.msrb.mxu1 %v1711_v29  ;;  %v4032_v29 = vld [vmem:[%s4359_s2] ss:$0 sm:$0xff] }
  0xdf   : > { %1577 = vmatpush.msrb.mxu3 %v1550_v39  ;;  %v1784_v39 = vld [vmem:[#allocation3 + $0x2f0] sm:$0xff] }
  0xe0   : > { %1645 = vmatpush.msrb.mxu0 %v1630_v59  ;;  %1787 = vmatpush.msrb.mxu2 %v1784_v39  ;;  %v1708_v39 = vld [vmem:[#allocation3 + $0x260] sm:$0xff] }
  0xe1   : > { %1578 = vmatpush.msrb.mxu3 %v1549_v28 }
  0xe2   : > { %1646 = vmatpush.msrb.mxu0 %v1629_v50 }
  0xe3   : > { %v3957_v12 = vpop.f32.mrf.mxu3  ;;  %1579 = vmatpush.msrb.mxu3 %v1548_v61 }
  0xe4   : > { %v3959_v18 = vpop.f32.mrf.mxu0  ;;  %v3963_v45 = vpop.f32.mrf.mxu2  ;;  %1647 = vmatpush.msrb.mxu0 %v1628_v24  ;;  %1580 = vmatmul.f32.vlgmr.msrb.gmra.mxu3 %v1539_v27  ;;  %v794_v24 = vadd.f32 %v3908_v3, %v689_v21  ;;  %v1783_v27 = vld [vmem:[#allocation3 + $0x2e8] sm:$0xff]  ;;  %v1782_v3 = vld [vmem:[#allocation3 + $0x2e0] sm:$0xff] }
  0xe5   : > { %v3969_v37 = vpop.f32.mrf.mxu1  ;;  %1788 = vmatpush.msrb.mxu2 %v1783_v27 }
  0xe6   : > { %1648 = vmatpush.msrb.mxu0 %v1627_v5  ;;  %v884_v30 = vadd.f32 %v3949_v16, %v794_v24  ;;  %v1781_v24 = vld [vmem:[#allocation3 + $0x2d8] sm:$0xff] }
  0xe7   : > { %1789 = vmatpush.msrb.mxu2 %v1782_v3 }
  0xe8   : > { %1649 = vmatpush.msrb.mxu0 %v1626_v0  ;;  %v974_v11 = vadd.f32 %v3951_v25, %v884_v30  ;;  %v1710_v0 = vld [vmem:[#allocation3 + $0x270] sm:$0xff]  ;;  %v1707_v30 = vld [vmem:[#allocation3 + $0x258] sm:$0xff] }
  0xe9   : > { %1713 = vmatpush.msrb.mxu1 %v1710_v0  ;;  %1790 = vmatpush.msrb.mxu2 %v1781_v24 }
  0xea   : > { %1650 = vmatpush.msrb.mxu0 %v1625_v53  ;;  %v1709_v53 = vld [vmem:[#allocation3 + $0x268] sm:$0xff] }
  0xeb   : > { %v3965_v34 = vpop.f32.mrf.mxu3  ;;  %1714 = vmatpush.msrb.mxu1 %v1709_v53  ;;  %v698_v53 = vadd.f32 %v3945_v26, %v3943_v10  ;;  %v1860_v10 = vld [vmem:[#allocation3 + $0x378] sm:$0xff] }
  0xec   : > { %v3967_v1 = vpop.f32.mrf.mxu0  ;;  %v3973_v51 = vpop.f32.mrf.mxu2  ;;  %1651 = vmatpush.msrb.mxu0 %v1624_v60  ;;  %v795_v60 = vadd.f32 %v3922_v58, %v692_v48  ;;  %v796_v48 = vadd.f32 %v3938_v35, %v695_v52  ;;  %v1778_v52 = vld [vmem:[#allocation3 + $0x2c0] sm:$0xff]  ;;  %1861 = vmatpush.msra.mxu3 %v1860_v10  ;;  %v1855_v10 = vld [vmem:[#allocation3 + $0x350] sm:$0xff] }
  0xed   : > { %v3986_v17 = vpop.f32.mrf.mxu1  ;;  %1715 = vmatpush.msrb.mxu1 %v1708_v39  ;;  %v797_v26 = vadd.f32 %v3947_v32, %v698_v53  ;;  %v1776_v53 = vld [vmem:[#allocation3 + $0x2b0] sm:$0xff] }
  0xee   : > { %1652 = vmatpush.msrb.mxu0 %v1623_v2  ;;  %v885_v16 = vadd.f32 %v3957_v12, %v795_v60 }
  0xef   : > { %1716 = vmatpush.msrb.mxu1 %v1707_v30 }
  0xf0   : > { %1653 = vmatpush.msrb.mxu0 %v1622_v63  ;;  %v975_v58 = vadd.f32 %v3959_v18, %v885_v16  ;;  %v1706_v16 = vld [vmem:[#allocation3 + $0x250] sm:$0xff] }
  0xf1   : > { %1717 = vmatpush.msrb.mxu1 %v1706_v16 }
  0xf3   : > { %v3971_v36 = vpop.f32.mrf.mxu3 }
  0xf4   : > { %v3975_v40 = vpop.f32.mrf.mxu0  ;;  %v3992_v42 = vpop.f32.mrf.mxu2 }
  0xf5   : > { %v1040_v31 = vpop.f32.mrf.mxu1 }
  0xf6   : > { %v1064_v2 = vadd.f32 %v1040_v31, %v974_v11  ;;  %v886_v11 = vadd.f32 %v3965_v34, %v796_v48  ;;  %v1779_v34 = vld [vmem:[#allocation3 + $0x2c8] sm:$0xff] }
  0xf8   : > { %v976_v35 = vadd.f32 %v3967_v1, %v886_v11 }
  0xfb   : > { %v3982_v47 = vpop.f32.mrf.mxu3 }
  0xfc   : > { %v3989_v13 = vpop.f32.mrf.mxu0  ;;  %v1130_v14 = vpop.f32.mrf.mxu2 }
  0xfd   : > { %v1043_v44 = vpop.f32.mrf.mxu1  ;;  %v1154_v21 = vadd.f32 %v1130_v14, %v1064_v2  ;;  %v1780_v14 = vld [vmem:[#allocation3 + $0x2d0] sm:$0xff] }
  0xfe   : > { %v1065_v55 = vadd.f32 %v1043_v44, %v975_v58  ;;  %1791 = vmatpush.msrb.mxu2 %v1780_v14  ;;  %v1859_v58 = vld [vmem:[#allocation3 + $0x370] sm:$0xff] }
  0xff   : > { %1862 = vmatpush.msra.mxu3 %v1859_v58 }
 0x100   : > { %1792 = vmatpush.msrb.mxu2 %v1779_v34  ;;  %v1702_v34 = vld [vmem:[#allocation3 + $0x230] sm:$0xff] }
 0x102   : > { %1793 = vmatpush.msrb.mxu2 %v1778_v52 }
 0x103   : > { %v3998_v54 = vpop.f32.mrf.mxu3 }
 0x104   : > { %v4004_v57 = vpop.f32.mrf.mxu0  ;;  %v1133_v28 = vpop.f32.mrf.mxu2 }
 0x105   : > { %v1046_v63 = vpop.f32.mrf.mxu1  ;;  %v1155_v0 = vadd.f32 %v1133_v28, %v1065_v55  ;;  %v1705_v28 = vld [vmem:[#allocation3 + $0x248] sm:$0xff]  ;;  %v1704_v55 = vld [vmem:[#allocation3 + $0x240] sm:$0xff] }
 0x106   : > { %1718 = vmatpush.msrb.mxu1 %v1705_v28  ;;  %v1933_v28 = vld [vmem:[#allocation3 + $0x3f0] sm:$0xff] }
 0x108   : > { %1719 = vmatpush.msrb.mxu1 %v1704_v55  ;;  %v1774_v55 = vld [vmem:[#allocation3 + $0x2a0] sm:$0xff] }
 0x10b   : > { %v4010_v59 = vpop.f32.mrf.mxu3 }
 0x10c   : > { %v4014_v50 = vpop.f32.mrf.mxu0  ;;  %v1136_v22 = vpop.f32.mrf.mxu2 }
 0x10d   : > { %v1049_v60 = vpop.f32.mrf.mxu1 }
 0x113   : > { %v4018_v5 = vpop.f32.mrf.mxu3 }
 0x114   : > { %v4023_v61 = vpop.f32.mrf.mxu0 }
 0x11b   : > { %v1220_v7 = vpop.f32.mrf.mxu3 }
 0x11c   : > { %v1244_v25 = vadd.f32 %v1220_v7, %v1154_v21  ;;  %v1310_v31 = vpop.f32.mrf.mxu0  ;;  %v1139_v21 = vpop.f32.mrf.mxu2 }
 0x11e   : > { %v1334_v12 = vadd.f32 %v1310_v31, %v1244_v25  ;;  %v1066_v25 = vadd.f32 %v1046_v63, %v976_v35  ;;  %v887_v31 = vadd.f32 %v3971_v36, %v797_v26  ;;  %v1857_v35 = vld [vmem:[#allocation3 + $0x360] sm:$0xff] }
 0x120   : > { %v1346_v23 = vadd.f32 %v4032_v29, %v1334_v12  ;;  %v1156_v39 = vadd.f32 %v1136_v22, %v1066_v25  ;;  %v1858_v12 = vld [vmem:[#allocation3 + $0x368] sm:$0xff]  ;;  %v977_v11 = vadd.f32 %v3975_v40, %v887_v31  ;;  %v1777_v22 = vld [vmem:[#allocation3 + $0x2b8] sm:$0xff] }
 0x121   : > { %1863 = vmatpush.msra.mxu3 %v1858_v12  ;;  %1794 = vmatpush.msrb.mxu2 %v1777_v22  ;;  %v1856_v40 = vld [vmem:[#allocation3 + $0x358] sm:$0xff]  ;;  %v1854_v12 = vld [vmem:[#allocation3 + $0x348] sm:$0xff] }
 0x122   : > { %vm1354_vm0 = vcmp.gt.f32.partialorder %v1346_v23, 0.0  ;;  %v1362_v18 = vmul.f32 0.2, %v1346_v23 }
 0x123   : > { %v1223_v27 = vpop.f32.mrf.mxu3  ;;  %1864 = vmatpush.msra.mxu3 %v1857_v35  ;;  %1795 = vmatpush.msrb.mxu2 %v1776_v53  ;;  %v1929_v35 = vld [vmem:[#allocation3 + $0x3d0] sm:$0xff] }
 0x124   : > { %v1245_v3 = vadd.f32 %v1223_v27, %v1155_v0  ;;  %v4040_v2 = vsel %vm1354_vm0, %v1346_v23, %v1362_v18  ;;  %v1313_v44 = vpop.f32.mrf.mxu0  ;;  %v701_v23 = vadd.f32 %v3953_v19, %v3905_v33  ;;  %v1703_v0 = vld [vmem:[#allocation3 + $0x238] sm:$0xff]  ;;  %v1052_v18 = vpop.f32.mrf.mxu1  ;;  %v1067_v19 = vadd.f32 %v1049_v60, %v977_v11  ;;  %v1932_v60 = vld [vmem:[#allocation3 + $0x3e8] sm:$0xff] }
 0x125   : > { %1400 = vst [vmem:[#allocation2 + $0x11] sm:$0xff] %v4040_v2  ;;  %1476 = vmatmul.f32.gmra.mxu1 %v4040_v2  ;;  %1865 = vmatpush.msra.mxu3 %v1856_v40  ;;  %v1930_v11 = vld [vmem:[#allocation3 + $0x3d8] sm:$0xff] }
 0x126   : > { %v1335_v7 = vadd.f32 %v1313_v44, %v1245_v3  ;;  %v1934_v3 = vld [vmem:[#allocation3 + $0x3f8] sm:$0xff]  ;;  %v798_v33 = vadd.f32 %v3955_v62, %v701_v23  ;;  %v1142_v44 = vpop.f32.mrf.mxu2  ;;  %v1157_v52 = vadd.f32 %v1139_v21, %v1067_v19  ;;  %1720 = vmatpush.msrb.mxu1 %v1703_v0  ;;  %v704_v21 = vadd.f32 %v3961_v46, %v3920_v15  ;;  %v1700_v23 = vld [vmem:[#allocation3 + $0x220] sm:$0xff] }
 0x127   : > { %1935 = vmatpush.msra.mxu0 %v1934_v3  ;;  %1866 = vmatpush.msra.mxu3 %v1855_v10  ;;  %v1699_v0 = vld [vmem:[#allocation3 + $0x218] sm:$0xff]  ;;  %v1928_v10 = vld [vmem:[#allocation3 + $0x3c8] sm:$0xff] }
 0x128   : > { %v1347_v1 = vadd.f32 %v4032_v29, %v1335_v7  ;;  %v888_v7 = vadd.f32 %v3982_v47, %v798_v33  ;;  %1721 = vmatpush.msrb.mxu1 %v1702_v34  ;;  %v1701_v47 = vld [vmem:[#allocation3 + $0x228] sm:$0xff]  ;;  %v799_v15 = vadd.f32 %v3963_v45, %v704_v21  ;;  %v1852_v3 = vld [vmem:[#allocation3 + $0x338] sm:$0xff] }
 0x129   : > { %1936 = vmatpush.msra.mxu0 %v1933_v28  ;;  %1867 = vmatpush.msra.mxu3 %v1854_v12 }
 0x12a   : > { %vm1355_vm1 = vcmp.gt.f32.partialorder %v1347_v1, 0.0  ;;  %v1363_v24 = vmul.f32 0.2, %v1347_v1  ;;  %1722 = vmatpush.msrb.mxu1 %v1701_v47  ;;  %v1697_v47 = vld [vmem:[#allocation3 + $0x208] sm:$0xff] }
 0x12b   : > { %v1226_v30 = vpop.f32.mrf.mxu3  ;;  %1937 = vmatpush.msra.mxu0 %v1932_v60  ;;  %v1772_v60 = vld [vmem:[#allocation3 + $0x290] sm:$0xff] }
 0x12c   : > { %v1246_v14 = vadd.f32 %v1226_v30, %v1156_v39  ;;  %v4048_v48 = vsel %vm1355_vm1, %v1347_v1, %v1363_v24  ;;  %v1409_v32 = vld [vmem:[#allocation2 + $0x10] sm:$0xff]  ;;  %v1316_v36 = vpop.f32.mrf.mxu0  ;;  %v978_v39 = vadd.f32 %v3989_v13, %v888_v7  ;;  %v1775_v30 = vld [vmem:[#allocation3 + $0x2a8] sm:$0xff]  ;;  %v1853_v13 = vld [vmem:[#allocation3 + $0x340] sm:$0xff]  ;;  %1723 = vmatpush.msrb.mxu1 %v1700_v23 }
 0x12d   : > { %v4050_v63 = vld [vmem:[#allocation2 + $0x12] sm:$0xff]  ;;  %1401 = vst [vmem:[#allocation2 + $0x21] sm:$0xff] %v4048_v48  ;;  %1517 = vmatmul.f32.gmra.mxu2 %v1409_v32  ;;  %1654 = vmatmul.f32.vlgmr.msrb.gmra.mxu0 %v1409_v32 }
 0x12e   : > { %1583 = vmatmul.f32.gmra.mxu3 %v4050_v63  ;;  %v1336_v27 = vadd.f32 %v1316_v36, %v1246_v14  ;;  %1479 = vmatmul.f32.gmra.mxu1 %v4048_v48  ;;  %v1931_v14 = vld [vmem:[#allocation3 + $0x3e0] sm:$0xff]  ;;  %v1068_v46 = vadd.f32 %v1052_v18, %v978_v39  ;;  %v1055_v36 = vpop.f32.mrf.mxu1  ;;  %v1145_v33 = vpop.f32.mrf.mxu2 }
 0x12f   : > { %1796 = vmatpush.msrb.mxu2 %v1775_v30  ;;  %1938 = vmatpush.msra.mxu0 %v1931_v14  ;;  %v1849_v39 = vld [vmem:[#allocation3 + $0x320] sm:$0xff]  ;;  %v1926_v14 = vld [vmem:[#allocation3 + $0x3b8] sm:$0xff] }
 0x130   : > { %v1348_v16 = vadd.f32 %v4032_v29, %v1336_v27  ;;  %v889_v27 = vadd.f32 %v3998_v54, %v799_v15  ;;  %v1158_v53 = vadd.f32 %v1142_v44, %v1068_v46  ;;  %1868 = vmatpush.msra.mxu3 %v1853_v13  ;;  %1724 = vmatpush.msrb.mxu1 %v1699_v0  ;;  %v1851_v54 = vld [vmem:[#allocation3 + $0x330] sm:$0xff]  ;;  %v1848_v46 = vld [vmem:[#allocation3 + $0x318] sm:$0xff] }
 0x131   : > { %1797 = vmatpush.msrb.mxu2 %v1774_v55  ;;  %1939 = vmatpush.msra.mxu0 %v1930_v11  ;;  %v707_v44 = vadd.f32 %v3969_v37, %v3934_v6  ;;  %v710_v0 = vadd.f32 %v3986_v17, %v3941_v9  ;;  %v2085_v17 = vld [vmem:[%s4362_s5 + $0x78] sm:$0xff] }
 0x132   : > { %vm1356_vm2 = vcmp.gt.f32.partialorder %v1348_v16, 0.0  ;;  %v1364_v26 = vmul.f32 0.2, %v1348_v16  ;;  %1869 = vmatpush.msra.mxu3 %v1852_v3  ;;  %v979_v28 = vadd.f32 %v4004_v57, %v889_v27  ;;  %v1927_v57 = vld [vmem:[#allocation3 + $0x3c0] sm:$0xff] }
 0x133   : > { %v1229_v62 = vpop.f32.mrf.mxu3  ;;  %1940 = vmatpush.msra.mxu0 %v1929_v35  ;;  %v800_v6 = vadd.f32 %v3973_v51, %v707_v44  ;;  %v1770_v3 = vld [vmem:[#allocation3 + $0x280] sm:$0xff] }
 0x134   : > { %v1247_v25 = vadd.f32 %v1229_v62, %v1157_v52  ;;  %v4061_v1 = vsel %vm1356_vm2, %v1348_v16, %v1364_v26  ;;  %v4063_v58 = vld [vmem:[#allocation2 + $0x20] sm:$0xff]  ;;  %v1319_v24 = vpop.f32.mrf.mxu0  ;;  %v1773_v52 = vld [vmem:[#allocation3 + $0x298] sm:$0xff]  ;;  %v1698_v26 = vld [vmem:[#allocation3 + $0x210] sm:$0xff]  ;;  %v1069_v37 = vadd.f32 %v1055_v36, %v979_v28  ;;  %1870 = vmatpush.msra.mxu3 %v1851_v54 }
 0x135   : > { %v4065_v31 = vld [vmem:[#allocation2 + $0x22] sm:$0xff]  ;;  %1402 = vst [vmem:[#allocation2 + $0x31] sm:$0xff] %v4061_v1  ;;  %1520 = vmatmul.f32.gmra.mxu2 %v4063_v58  ;;  %1657 = vmatmul.f32.gmra.mxu0 %v4063_v58  ;;  %v890_v30 = vadd.f32 %v4010_v59, %v800_v6 }
 0x136   : > { %1586 = vmatmul.f32.gmra.mxu3 %v4065_v31  ;;  %v1337_v32 = vadd.f32 %v1319_v24, %v1247_v25  ;;  %1482 = vmatmul.f32.gmra.mxu1 %v4061_v1  ;;  %v1850_v25 = vld [vmem:[#allocation3 + $0x328] sm:$0xff]  ;;  %v1159_v12 = vadd.f32 %v1145_v33, %v1069_v37  ;;  %v1058_v55 = vpop.f32.mrf.mxu1  ;;  %v1148_v13 = vpop.f32.mrf.mxu2  ;;  %v1847_v33 = vld [vmem:[#allocation3 + $0x310] sm:$0xff]  ;;  %v1923_v44 = vld [vmem:[#allocation3 + $0x3a0] sm:$0xff] }
 0x137   : > { %1798 = vmatpush.msrb.mxu2 %v1773_v52  ;;  %1941 = vmatpush.msra.mxu0 %v1928_v10  ;;  %v1771_v24 = vld [vmem:[#allocation3 + $0x288] sm:$0xff]  ;;  %v980_v27 = vadd.f32 %v4014_v50, %v890_v30  ;;  %v4113_v50 = vld [vmem:[#allocation3 + $0x478] sm:$0xff]  ;;  %v2007_v30 = vld [vmem:[#allocation3 + $0x470] sm:$0xff] }
 0x138   : > { %v1349_v22 = vadd.f32 %v4032_v29, %v1337_v32  ;;  %1725 = vmatpush.msrb.mxu1 %v1698_v26  ;;  %1871 = vmatpush.msra.mxu3 %v1850_v25  ;;  %v1696_v32 = vld [vmem:[#allocation3 + $0x200] sm:$0xff]  ;;  %v1846_v54 = vld [vmem:[#allocation3 + $0x308] sm:$0xff]  ;;  %v1922_v37 = vld [vmem:[#allocation3 + $0x398] sm:$0xff] }
 0x139   : > { %1799 = vmatpush.msrb.mxu2 %v1772_v60  ;;  %1942 = vmatpush.msra.mxu0 %v1927_v57  ;;  %v1070_v9 = vadd.f32 %v1058_v55, %v980_v27 }
 0x13a   : > { %vm1357_vm3 = vcmp.gt.f32.partialorder %v1349_v22, 0.0  ;;  %v1365_v45 = vmul.f32 0.2, %v1349_v22  ;;  %1726 = vmatpush.msrb.mxu1 %v1697_v47  ;;  %1872 = vmatpush.msra.mxu3 %v1849_v39 }
 0x13b   : > { %v1232_v18 = vpop.f32.mrf.mxu3  ;;  %1800 = vmatpush.msrb.mxu2 %v1771_v24  ;;  %1943 = vmatpush.msra.mxu0 %v1926_v14  ;;  %v1921_v24 = vld [vmem:[#allocation3 + $0x390] sm:$0xff]  ;;  %v2006_v14 = vld [vmem:[#allocation3 + $0x468] sm:$0xff] }
 0x13c   : > { %v1248_v19 = vadd.f32 %v1232_v18, %v1158_v53  ;;  %v4078_v40 = vsel %vm1357_vm3, %v1349_v22, %v1365_v45  ;;  %v4080_v16 = vld [vmem:[#allocation2 + $0x30] sm:$0xff]  ;;  %v1322_v7 = vpop.f32.mrf.mxu0  ;;  %1727 = vmatpush.msrb.mxu1 %v1696_v32  ;;  %v1924_v45 = vld [vmem:[#allocation3 + $0x3a8] sm:$0xff]  ;;  %v801_v18 = vadd.f32 %v3992_v42, %v710_v0  ;;  %1873 = vmatpush.msra.mxu3 %v1848_v46  ;;  %v2082_v32 = vld [vmem:[%s4362_s5 + $0x60] sm:$0xff] }
 0x13d   : > { %v4082_v34 = vld [vmem:[#allocation2 + $0x32] sm:$0xff]  ;;  %1403 = vst [vmem:[#allocation2 + $0x41] sm:$0xff] %v4078_v40  ;;  %1523 = vmatmul.f32.gmra.mxu2 %v4080_v16  ;;  %1660 = vmatmul.f32.gmra.mxu0 %v4080_v16 }
 0x13e   : > { %1589 = vmatmul.f32.gmra.mxu3 %v4082_v34  ;;  %v1338_v62 = vadd.f32 %v1322_v7, %v1248_v19  ;;  %1485 = vmatmul.f32.gmra.mxu1 %v4078_v40  ;;  %v1925_v22 = vld [vmem:[#allocation3 + $0x3b0] sm:$0xff]  ;;  %v891_v28 = vadd.f32 %v4018_v5, %v801_v18  ;;  %v1160_v7 = vadd.f32 %v1148_v13, %v1070_v9  ;;  %v1061_v60 = vpop.f32.mrf.mxu1  ;;  %v2004_v18 = vld [vmem:[#allocation3 + $0x458] sm:$0xff] }
 0x13f   : > { %1944 = vmatpush.msra.mxu0 %v1925_v22  ;;  %1801 = vmatpush.msrb.mxu2 %v1770_v3  ;;  %v2084_v42 = vld [vmem:[%s4362_s5 + $0x70] sm:$0xff] }
 0x140   : > { %v1350_v21 = vadd.f32 %v4032_v29, %v1338_v62  ;;  %2639 = vmatpush.msra.mxu1 %v4113_v50  ;;  %1874 = vmatpush.msra.mxu3 %v1847_v33  ;;  %v1845_v62 = vld [vmem:[#allocation3 + $0x300] sm:$0xff]  ;;  %v981_v57 = vadd.f32 %v4023_v61, %v891_v28  ;;  %v2080_v9 = vld [vmem:[%s4362_s5 + $0x50] sm:$0xff] }
 0x141   : > { %1945 = vmatpush.msra.mxu0 %v1924_v45  ;;  %2090 = vmatpush.msra.mxu2 %v2085_v17  ;;  %v2005_v33 = vld [vmem:[#allocation3 + $0x460] sm:$0xff]  ;;  %v2081_v45 = vld [vmem:[%s4362_s5 + $0x58] sm:$0xff] }
 0x142   : > { %vm1358_vm4 = vcmp.gt.f32.partialorder %v1350_v21, 0.0  ;;  %v1366_v51 = vmul.f32 0.2, %v1350_v21  ;;  %1875 = vmatpush.msra.mxu3 %v1846_v54  ;;  %v1071_v61 = vadd.f32 %v1061_v60, %v981_v57  ;;  %2640 = vmatpush.msra.mxu1 %v2007_v30  ;;  %v1998_v60 = vld [vmem:[#allocation3 + $0x428] sm:$0xff]  ;;  %v1996_v57 = vld [vmem:[#allocation3 + $0x418] sm:$0xff] }
 0x143   : > { %v1235_v23 = vpop.f32.mrf.mxu3  ;;  %1946 = vmatpush.msra.mxu0 %v1923_v44  ;;  %2091 = vmatpush.msra.mxu2 %v2084_v42 }
 0x144   : > { %v1249_v15 = vadd.f32 %v1235_v23, %v1159_v12  ;;  %v4095_v11 = vsel %vm1358_vm4, %v1350_v21, %v1366_v51  ;;  %v4097_v36 = vld [vmem:[#allocation2 + $0x40] sm:$0xff]  ;;  %v1325_v53 = vpop.f32.mrf.mxu0  ;;  %v1151_v21 = vpop.f32.mrf.mxu2  ;;  %v2083_v12 = vld [vmem:[%s4362_s5 + $0x68] sm:$0xff]  ;;  %1876 = vmatpush.msra.mxu3 %v1845_v62  ;;  %2641 = vmatpush.msra.mxu1 %v2006_v14  ;;  %v2076_v62 = vld [vmem:[%s4362_s5 + $0x30] sm:$0xff] }
 0x145   : > { %v4099_v59 = vld [vmem:[#allocation2 + $0x42] sm:$0xff]  ;;  %1404 = vst [vmem:[#allocation2 + $0x51] sm:$0xff] %v4095_v11  ;;  %1526 = vmatmul.f32.gmra.mxu2 %v4097_v36  ;;  %1663 = vmatmul.f32.gmra.mxu0 %v4097_v36  ;;  %v1161_v23 = vadd.f32 %v1151_v21, %v1071_v61  ;;  %v1995_v21 = vld [vmem:[#allocation3 + $0x410] sm:$0xff] }
 0x146   : > { %1592 = vmatmul.f32.gmra.mxu3 %v4099_v59  ;;  %v1339_v35 = vadd.f32 %v1325_v53, %v1249_v15  ;;  %1488 = vmatmul.f32.gmra.mxu1 %v4095_v11  ;;  %v1920_v51 = vld [vmem:[#allocation3 + $0x388] sm:$0xff]  ;;  %v1919_v53 = vld [vmem:[#allocation3 + $0x380] sm:$0xff] }
 0x147   : > { %1947 = vmatpush.msra.mxu0 %v1922_v37  ;;  %2092 = vmatpush.msra.mxu2 %v2083_v12  ;;  %v2074_v37 = vld [vmem:[%s4362_s5 + $0x20] sm:$0xff] }
 0x148   : > { %v1351_v19 = vadd.f32 %v4032_v29, %v1339_v35  ;;  %2655 = vmatpush.msrb.mxu3 %v2085_v17  ;;  %2642 = vmatpush.msra.mxu1 %v2005_v33 }
 0x149   : > { %1948 = vmatpush.msra.mxu0 %v1921_v24  ;;  %2093 = vmatpush.msra.mxu2 %v2082_v32  ;;  %v1993_v24 = vld [vmem:[#allocation3 + $0x400] sm:$0xff] }
 0x14a   : > { %vm1359_vm5 = vcmp.gt.f32.partialorder %v1351_v19, 0.0  ;;  %v1367_v52 = vmul.f32 0.2, %v1351_v19  ;;  %2656 = vmatpush.msrb.mxu3 %v2084_v42  ;;  %2643 = vmatpush.msra.mxu1 %v2004_v18  ;;  %v2078_v42 = vld [vmem:[%s4362_s5 + $0x40] sm:$0xff] }
 0x14b   : > { %v1238_v10 = vpop.f32.mrf.mxu3  ;;  %1949 = vmatpush.msra.mxu0 %v1920_v51  ;;  %2094 = vmatpush.msra.mxu2 %v2081_v45 }
 0x14c   : > { %v1250_v26 = vadd.f32 %v1238_v10, %v1160_v7  ;;  %v4121_v25 = vsel %vm1359_vm5, %v1351_v19, %v1367_v52  ;;  %v4123_v6 = vld [vmem:[#allocation2 + $0x50] sm:$0xff]  ;;  %v1328_v47 = vpop.f32.mrf.mxu0  ;;  %2657 = vmatpush.msrb.mxu3 %v2083_v12  ;;  %v2002_v7 = vld [vmem:[#allocation3 + $0x448] sm:$0xff]  ;;  %v2077_v10 = vld [vmem:[%s4362_s5 + $0x38] sm:$0xff] }
 0x14d   : > { %v4125_v5 = vld [vmem:[#allocation2 + $0x52] sm:$0xff]  ;;  %1405 = vst [vmem:[#allocation2 + $0x61] sm:$0xff] %v4121_v25  ;;  %1529 = vmatmul.f32.gmra.mxu2 %v4123_v6  ;;  %1666 = vmatmul.f32.gmra.mxu0 %v4123_v6 }
 0x14e   : > { %1595 = vmatmul.f32.gmra.mxu3 %v4125_v5  ;;  %v1340_v39 = vadd.f32 %v1328_v47, %v1250_v26  ;;  %1491 = vmatmul.f32.gmra.mxu1 %v4121_v25  ;;  %v2000_v26 = vld [vmem:[#allocation3 + $0x438] sm:$0xff]  ;;  %v2072_v47 = vld [vmem:[%s4362_s5 + $0x10] sm:$0xff] }
 0x14f   : > { %1950 = vmatpush.msra.mxu0 %v1919_v53  ;;  %2095 = vmatpush.msra.mxu2 %v2080_v9 }
 0x150   : > { %v1352_v55 = vadd.f32 %v4032_v29, %v1340_v39  ;;  %2658 = vmatpush.msrb.mxu3 %v2082_v32  ;;  %v2070_v39 = vld [vmem:[%s4362_s5] sm:$0xff] }
 0x151   : > { %2009 = vmatpush.msrb.mxu0 %v4113_v50  ;;  %v2079_v50 = vld [vmem:[%s4362_s5 + $0x48] sm:$0xff] }
 0x152   : > { %vm1360_vm6 = vcmp.gt.f32.partialorder %v1352_v55, 0.0  ;;  %v1368_v15 = vmul.f32 0.2, %v1352_v55  ;;  %2096 = vmatpush.msra.mxu2 %v2079_v50  ;;  %2659 = vmatpush.msrb.mxu3 %v2081_v45 }
 0x153   : > { %v1241_v46 = vpop.f32.mrf.mxu3  ;;  %2010 = vmatpush.msrb.mxu0 %v2007_v30 }
 0x154   : > { %v1251_v13 = vadd.f32 %v1241_v46, %v1161_v23  ;;  %v4140_v22 = vsel %vm1360_vm6, %v1352_v55, %v1368_v15  ;;  %v4142_v0 = vld [vmem:[#allocation2 + $0x60] sm:$0xff]  ;;  %v1331_v3 = vpop.f32.mrf.mxu0  ;;  %2097 = vmatpush.msra.mxu2 %v2078_v42  ;;  %2660 = vmatpush.msrb.mxu3 %v2080_v9  ;;  %v1991_v9 = vld [vmem:[#allocation2 + $0x92] sm:$0xff] }
 0x155   : > { %v4144_v27 = vld [vmem:[#allocation2 + $0x62] sm:$0xff]  ;;  %1406 = vst [vmem:[#allocation2 + $0x71] sm:$0xff] %v4140_v22  ;;  %1532 = vmatmul.f32.gmra.mxu2 %v4142_v0  ;;  %1669 = vmatmul.f32.gmra.mxu0 %v4142_v0 }
 0x156   : > { %1598 = vmatmul.f32.gmra.mxu3 %v4144_v27  ;;  %v1341_v35 = vadd.f32 %v1331_v3, %v1251_v13  ;;  %1494 = vmatmul.f32.gmra.mxu1 %v4140_v22 }
 0x157   : > { %2011 = vmatpush.msrb.mxu0 %v2006_v14  ;;  %2661 = vmatpush.msrb.mxu3 %v2079_v50  ;;  %v2730_v14 = vld [vmem:[#allocation2] sm:$0xff] }
 0x158   : > { %v1353_v17 = vadd.f32 %v4032_v29, %v1341_v35  ;;  %v2003_v29 = vld [vmem:[#allocation3 + $0x450] sm:$0xff]  ;;  %2098 = vmatpush.msra.mxu2 %v2077_v10 }
 0x159   : > { %2644 = vmatpush.msra.mxu1 %v2003_v29  ;;  %2012 = vmatpush.msrb.mxu0 %v2005_v33 }
 0x15a   : > { %vm1361_vm7 = vcmp.gt.f32.partialorder %v1353_v17, 0.0  ;;  %v1369_v19 = vmul.f32 0.2, %v1353_v17  ;;  %2662 = vmatpush.msrb.mxu3 %v2078_v42  ;;  %2099 = vmatpush.msra.mxu2 %v2076_v62 }
 0x15b   : > { %2645 = vmatpush.msra.mxu1 %v2002_v7  ;;  %2013 = vmatpush.msrb.mxu0 %v2004_v18 }
 0x15c   : > { %v4159_v54 = vsel %vm1361_vm7, %v1353_v17, %v1369_v19  ;;  %v4161_v44 = vld [vmem:[#allocation2 + $0x70] sm:$0xff]  ;;  %2663 = vmatpush.msrb.mxu3 %v2077_v10 }
 0x15d   : > { %v4163_v28 = vld [vmem:[#allocation2 + $0x72] sm:$0xff]  ;;  %1407 = vst [vmem:[#allocation2 + $0x81] sm:$0xff] %v4159_v54  ;;  %1535 = vmatmul.f32.gmra.mxu2 %v4161_v44  ;;  %1672 = vmatmul.f32.gmra.mxu0 %v4161_v44 }
 0x15e   : > { %1601 = vmatmul.f32.gmra.mxu3 %v4163_v28  ;;  %1728 = vmatmul.f32.vlgmr.msrb.gmra.mxu1 %v4040_v2  ;;  %v2001_v2 = vld [vmem:[#allocation3 + $0x440] sm:$0xff] }
 0x15f   : > { %2014 = vmatpush.msrb.mxu0 %v2003_v29  ;;  %2646 = vmatpush.msra.mxu1 %v2001_v2 }
 0x160   : > { %2664 = vmatpush.msrb.mxu3 %v2076_v62 }
 0x161   : > { %2015 = vmatpush.msrb.mxu0 %v2002_v7  ;;  %2647 = vmatpush.msra.mxu1 %v2000_v26 }
 0x163   : > { %2016 = vmatpush.msrb.mxu0 %v2001_v2 }
 0x164   : > { %v4176_v52 = vld [vmem:[#allocation2 + $0x80] sm:$0xff] }
 0x165   : > { %1802 = vmatmul.f32.vlgmr.msrb.gmra.mxu2 %v4050_v63  ;;  %1675 = vmatmul.f32.gmra.mxu0 %v4176_v52  ;;  %v1999_v63 = vld [vmem:[#allocation3 + $0x430] sm:$0xff] }
 0x166   : > { %1877 = vmatmul.f32.vlgmr.msra.gmra.mxu3 %v4063_v58  ;;  %1731 = vmatmul.f32.gmra.mxu1 %v4048_v48  ;;  %v2075_v58 = vld [vmem:[%s4362_s5 + $0x28] sm:$0xff] }
 0x167   : > { %2017 = vmatpush.msrb.mxu0 %v2000_v26  ;;  %2648 = vmatpush.msra.mxu1 %v1999_v63  ;;  %v1581_v12 = vpop.f32.mrf.mxu3 }
 0x168   : > { %2100 = vmatpush.msra.mxu2 %v2075_v58  ;;  %2665 = vmatpush.msrb.mxu3 %v2075_v58 }
 0x169   : > { %2018 = vmatpush.msrb.mxu0 %v1999_v63  ;;  %2649 = vmatpush.msra.mxu1 %v1998_v60 }
 0x16a   : > { %2101 = vmatpush.msra.mxu2 %v2074_v37  ;;  %2666 = vmatpush.msrb.mxu3 %v2074_v37 }
 0x16b   : > { %2019 = vmatpush.msrb.mxu0 %v1998_v60 }
 0x16d   : > { %1805 = vmatmul.f32.gmra.mxu2 %v4065_v31  ;;  %1951 = vmatmul.f32.vlgmr.msra.gmra.mxu0 %v4048_v48  ;;  %v1997_v48 = vld [vmem:[#allocation3 + $0x420] sm:$0xff] }
 0x16e   : > { %1880 = vmatmul.f32.gmra.mxu3 %v4080_v16  ;;  %1734 = vmatmul.f32.gmra.mxu1 %v4061_v1  ;;  %v2073_v16 = vld [vmem:[%s4362_s5 + $0x18] sm:$0xff] }
 0x16f   : > { %2650 = vmatpush.msra.mxu1 %v1997_v48  ;;  %2102 = vmatpush.msra.mxu2 %v2073_v16 }
 0x170   : > { %2020 = vmatpush.msrb.mxu0 %v1997_v48  ;;  %2667 = vmatpush.msrb.mxu3 %v2073_v16 }
 0x171   : > { %2651 = vmatpush.msra.mxu1 %v1996_v57  ;;  %2103 = vmatpush.msra.mxu2 %v2072_v47 }
 0x172   : > { %2021 = vmatpush.msrb.mxu0 %v1996_v57  ;;  %2668 = vmatpush.msrb.mxu3 %v2072_v47 }
 0x173   : > { %2652 = vmatpush.msra.mxu1 %v1995_v21 }
 0x174   : > { %2022 = vmatpush.msrb.mxu0 %v1995_v21 }
 0x175   : > { %1808 = vmatmul.f32.gmra.mxu2 %v4082_v34  ;;  %1954 = vmatmul.f32.gmra.mxu0 %v4061_v1  ;;  %v1994_v1 = vld [vmem:[#allocation3 + $0x408] sm:$0xff] }
 0x176   : > { %1883 = vmatmul.f32.gmra.mxu3 %v4097_v36  ;;  %1737 = vmatmul.f32.gmra.mxu1 %v4078_v40  ;;  %v2071_v36 = vld [vmem:[%s4362_s5 + $0x8] sm:$0xff] }
 0x177   : > { %2104 = vmatpush.msra.mxu2 %v2071_v36  ;;  %2653 = vmatpush.msra.mxu1 %v1994_v1 }
 0x178   : > { %2023 = vmatpush.msrb.mxu0 %v1994_v1  ;;  %2669 = vmatpush.msrb.mxu3 %v2071_v36 }
 0x179   : > { %2105 = vmatpush.msra.mxu2 %v2070_v39  ;;  %2654 = vmatpush.msra.mxu1 %v1993_v24 }
 0x17a   : > { %2024 = vmatpush.msrb.mxu0 %v1993_v24  ;;  %2670 = vmatpush.msrb.mxu3 %v2070_v39 }
 0x17d   : > { %1811 = vmatmul.f32.gmra.mxu2 %v4099_v59  ;;  %1957 = vmatmul.f32.gmra.mxu0 %v4078_v40  ;;  %v1474_v40 = vpop.f32.mrf.mxu1 }
 0x17e   : > { %1886 = vmatmul.f32.gmra.mxu3 %v4123_v6  ;;  %1740 = vmatmul.f32.gmra.mxu1 %v4095_v11  ;;  %v1515_v6 = vpop.f32.mrf.mxu2 }
 0x17f   : > { %v1516_v30 = vadd.f32 %v1515_v6, %v1474_v40 }
 0x181   : > { %v1605_v61 = vadd.f32 %v1581_v12, %v1516_v30 }
 0x185   : > { %1814 = vmatmul.f32.gmra.mxu2 %v4125_v5  ;;  %1960 = vmatmul.f32.gmra.mxu0 %v4095_v11  ;;  %v1768_v11 = vld [vmem:[#allocation2 + $0x82] sm:$0xff] }
 0x186   : > { %1889 = vmatmul.f32.gmra.mxu3 %v4142_v0  ;;  %1743 = vmatmul.f32.gmra.mxu1 %v4121_v25 }
 0x18d   : > { %1817 = vmatmul.f32.gmra.mxu2 %v4144_v27  ;;  %1963 = vmatmul.f32.gmra.mxu0 %v4121_v25  ;;  %v1917_v25 = vld [vmem:[#allocation2 + $0x91] sm:$0xff] }
 0x18e   : > { %1892 = vmatmul.f32.gmra.mxu3 %v4161_v44  ;;  %1746 = vmatmul.f32.gmra.mxu1 %v4140_v22 }
 0x195   : > { %1820 = vmatmul.f32.gmra.mxu2 %v4163_v28  ;;  %1966 = vmatmul.f32.gmra.mxu0 %v4140_v22 }
 0x196   : > { %1895 = vmatmul.f32.gmra.mxu3 %v4176_v52  ;;  %1749 = vmatmul.f32.gmra.mxu1 %v4159_v54 }
 0x19d   : > { %1823 = vmatmul.f32.gmra.mxu2 %v1768_v11  ;;  %1969 = vmatmul.f32.gmra.mxu0 %v4159_v54 }
 0x19e   : > { %1898 = vmatmul.f32.gmra.mxu3 %v2730_v14  ;;  %2031 = vmatmul.f32.vlgmr.msra.gmra.mxu1 %v4099_v59 }
 0x1a2   : > { %v1477_v32 = vpop.f32.mrf.mxu1 }
 0x1a5   : > { %2106 = vmatmul.f32.vlgmr.msra.gmra.mxu2 %v3451_v49  ;;  %1972 = vmatmul.f32.gmra.mxu0 %v1917_v25 }
 0x1a6   : > { %2124 = vmatmul.f32.vlgmr.msrb.gmra.mxu3 %v3804_v43  ;;  %2034 = vmatmul.f32.gmra.mxu1 %v4125_v5 }
 0x1aa   : > { %v1655_v55 = vpop.f32.mrf.mxu0 }
 0x1ab   : > { %v1480_v51 = vpop.f32.mrf.mxu1  ;;  %v1679_v23 = vadd.f32 %v1655_v55, %v1605_v61 }
 0x1ad   : > { %2109 = vmatmul.f32.gmra.mxu2 %v3549_v8  ;;  %2025 = vmatmul.f32.vlgmr.msrb.gmra.mxu0 %v4065_v31 }
 0x1ae   : > { %2127 = vmatmul.f32.gmra.mxu3 %v3833_v41  ;;  %2037 = vmatmul.f32.gmra.mxu1 %v4144_v27 }
 0x1b0   : > { %v1518_v59 = vpop.f32.mrf.mxu2 }
 0x1b1   : > { %v1584_v15 = vpop.f32.mrf.mxu3  ;;  %v1519_v46 = vadd.f32 %v1518_v59, %v1477_v32 }
 0x1b2   : > { %v1658_v13 = vpop.f32.mrf.mxu0 }
 0x1b3   : > { %v1606_v49 = vadd.f32 %v1584_v15, %v1519_v46  ;;  %v1483_v43 = vpop.f32.mrf.mxu1 }
 0x1b5   : > { %v1680_v22 = vadd.f32 %v1658_v13, %v1606_v49  ;;  %2112 = vmatmul.f32.gmra.mxu2 %v3619_v4  ;;  %2028 = vmatmul.f32.gmra.mxu0 %v4082_v34 }
 0x1b6   : > { %2040 = vmatmul.f32.gmra.mxu1 %v4163_v28 }
 0x1b8   : > { %v1521_v8 = vpop.f32.mrf.mxu2 }
 0x1b9   : > { %v1587_v5 = vpop.f32.mrf.mxu3  ;;  %v1522_v41 = vadd.f32 %v1521_v8, %v1480_v51 }
 0x1ba   : > { %v1661_v31 = vpop.f32.mrf.mxu0 }
 0x1bb   : > { %v1607_v0 = vadd.f32 %v1587_v5, %v1522_v41  ;;  %v1486_v53 = vpop.f32.mrf.mxu1 }
 0x1bd   : > { %v1681_v27 = vadd.f32 %v1661_v31, %v1607_v0  ;;  %2115 = vmatmul.f32.gmra.mxu2 %v3672_v20 }
 0x1be   : > { %2043 = vmatmul.f32.gmra.mxu1 %v1768_v11 }
 0x1c0   : > { %v1524_v3 = vpop.f32.mrf.mxu2 }
 0x1c1   : > { %v1590_v35 = vpop.f32.mrf.mxu3  ;;  %v1525_v33 = vadd.f32 %v1524_v3, %v1483_v43 }
 0x1c2   : > { %v1664_v18 = vpop.f32.mrf.mxu0 }
 0x1c3   : > { %v1608_v45 = vadd.f32 %v1590_v35, %v1525_v33  ;;  %v1489_v4 = vpop.f32.mrf.mxu1 }
 0x1c5   : > { %v1682_v34 = vadd.f32 %v1664_v18, %v1608_v45  ;;  %2118 = vmatmul.f32.gmra.mxu2 %v3723_v56 }
 0x1c6   : > { %2046 = vmatmul.f32.gmra.mxu1 %v1991_v9 }
 0x1c8   : > { %v1527_v17 = vpop.f32.mrf.mxu2 }
 0x1c9   : > { %v1593_v19 = vpop.f32.mrf.mxu3  ;;  %v1528_v54 = vadd.f32 %v1527_v17, %v1486_v53 }
 0x1ca   : > { %v1667_v28 = vpop.f32.mrf.mxu0 }
 0x1cb   : > { %v1609_v44 = vadd.f32 %v1593_v19, %v1528_v54  ;;  %v1492_v29 = vpop.f32.mrf.mxu1 }
 0x1cd   : > { %v1683_v50 = vadd.f32 %v1667_v28, %v1609_v44  ;;  %2121 = vmatmul.f32.gmra.mxu2 %v3768_v38 }
 0x1d0   : > { %v1530_v20 = vpop.f32.mrf.mxu2 }
 0x1d1   : > { %v1596_v7 = vpop.f32.mrf.mxu3  ;;  %v1531_v42 = vadd.f32 %v1530_v20, %v1489_v4 }
 0x1d2   : > { %v1670_v2 = vpop.f32.mrf.mxu0 }
 0x1d3   : > { %v1610_v52 = vadd.f32 %v1596_v7, %v1531_v42  ;;  %v1495_v10 = vpop.f32.mrf.mxu1 }
 0x1d5   : > { %v1684_v26 = vadd.f32 %v1670_v2, %v1610_v52  ;;  %v4277_v52 = vld [vmem:[%s4361_s4] ss:$0 sm:$0xff] }
 0x1d8   : > { %v1533_v62 = vpop.f32.mrf.mxu2 }
 0x1d9   : > { %v1599_v63 = vpop.f32.mrf.mxu3  ;;  %v1534_v56 = vadd.f32 %v1533_v62, %v1492_v29 }
 0x1da   : > { %v1673_v60 = vpop.f32.mrf.mxu0 }
 0x1db   : > { %v1611_v58 = vadd.f32 %v1599_v63, %v1534_v56  ;;  %v1729_v37 = vpop.f32.mrf.mxu1 }
 0x1dc   : > { %v1753_v48 = vadd.f32 %v1729_v37, %v1679_v23 }
 0x1dd   : > { %v1685_v16 = vadd.f32 %v1673_v60, %v1611_v58 }
 0x1e0   : > { %v1536_v57 = vpop.f32.mrf.mxu2 }
 0x1e1   : > { %v1602_v47 = vpop.f32.mrf.mxu3  ;;  %v1537_v21 = vadd.f32 %v1536_v57, %v1495_v10 }
 0x1e2   : > { %v1676_v38 = vpop.f32.mrf.mxu0 }
 0x1e3   : > { %v1612_v1 = vadd.f32 %v1602_v47, %v1537_v21  ;;  %v1732_v36 = vpop.f32.mrf.mxu1 }
 0x1e4   : > { %v1754_v39 = vadd.f32 %v1732_v36, %v1680_v22 }
 0x1e5   : > { %v4245_v24 = vadd.f32 %v1676_v38, %v1612_v1 }
 0x1e8   : > { %v1803_v40 = vpop.f32.mrf.mxu2 }
 0x1e9   : > { %v1878_v6 = vpop.f32.mrf.mxu3  ;;  %v1827_v9 = vadd.f32 %v1803_v40, %v1753_v48 }
 0x1ea   : > { %v1952_v30 = vpop.f32.mrf.mxu0 }
 0x1eb   : > { %v1735_v12 = vpop.f32.mrf.mxu1  ;;  %v1902_v19 = vadd.f32 %v1878_v6, %v1827_v9 }
 0x1ec   : > { %v1755_v61 = vadd.f32 %v1735_v12, %v1681_v27 }
 0x1ed   : > { %v1976_v28 = vadd.f32 %v1952_v30, %v1902_v19 }
 0x1f0   : > { %v1806_v11 = vpop.f32.mrf.mxu2 }
 0x1f1   : > { %v1881_v25 = vpop.f32.mrf.mxu3  ;;  %v1828_v29 = vadd.f32 %v1806_v11, %v1754_v39 }
 0x1f2   : > { %v1955_v14 = vpop.f32.mrf.mxu0 }
 0x1f3   : > { %v1738_v32 = vpop.f32.mrf.mxu1  ;;  %v1903_v10 = vadd.f32 %v1881_v25, %v1828_v29 }
 0x1f4   : > { %v1756_v55 = vadd.f32 %v1738_v32, %v1682_v34 }
 0x1f5   : > { %v1977_v48 = vadd.f32 %v1955_v14, %v1903_v10 }
 0x1f8   : > { %v1809_v51 = vpop.f32.mrf.mxu2 }
 0x1f9   : > { %v1884_v46 = vpop.f32.mrf.mxu3  ;;  %v1829_v20 = vadd.f32 %v1809_v51, %v1755_v61 }
 0x1fa   : > { %v1958_v23 = vpop.f32.mrf.mxu0 }
 0x1fb   : > { %v1741_v59 = vpop.f32.mrf.mxu1  ;;  %v1904_v63 = vadd.f32 %v1884_v46, %v1829_v20 }
 0x1fc   : > { %v4247_v15 = vadd.f32 %v1741_v59, %v1683_v50  ;;  %v4270_v50 = vld [vmem:[%s4363_s6] ss:$0 sm:$0xff] }
 0x1fd   : > { %v1978_v21 = vadd.f32 %v1958_v23, %v1904_v63 }
 0x200   : > { %v1812_v49 = vpop.f32.mrf.mxu2 }
 0x201   : > { %v1887_v8 = vpop.f32.mrf.mxu3  ;;  %v1830_v1 = vadd.f32 %v1812_v49, %v1756_v55 }
 0x202   : > { %v4249_v13 = vpop.f32.mrf.mxu0 }
 0x203   : > { %v1744_v43 = vpop.f32.mrf.mxu1  ;;  %v1905_v61 = vadd.f32 %v1887_v8, %v1830_v1 }
 0x204   : > { %v4251_v22 = vadd.f32 %v1744_v43, %v1684_v26 }
 0x205   : > { %v1979_v49 = vadd.f32 %v4249_v13, %v1905_v61 }
 0x208   : > { %v4253_v5 = vpop.f32.mrf.mxu2 }
 0x209   : > { %v4259_v53 = vpop.f32.mrf.mxu3  ;;  %v1831_v43 = vadd.f32 %v4253_v5, %v4247_v15 }
 0x20a   : > { %v4255_v41 = vpop.f32.mrf.mxu0 }
 0x20b   : > { %v1747_v0 = vpop.f32.mrf.mxu1  ;;  %v1906_v19 = vadd.f32 %v4259_v53, %v1831_v43 }
 0x20c   : > { %v1759_v58 = vadd.f32 %v1747_v0, %v1685_v16 }
 0x20d   : > { %v1980_v20 = vadd.f32 %v4255_v41, %v1906_v19 }
 0x210   : > { %v4257_v31 = vpop.f32.mrf.mxu2 }
 0x211   : > { %v4263_v18 = vpop.f32.mrf.mxu3  ;;  %v1832_v53 = vadd.f32 %v4257_v31, %v4251_v22 }
 0x212   : > { %v4261_v27 = vpop.f32.mrf.mxu0 }
 0x213   : > { %v1750_v3 = vpop.f32.mrf.mxu1 }
 0x214   : > { %v1760_v14 = vadd.f32 %v1750_v3, %v4245_v24 }
 0x218   : > { %v1821_v35 = vpop.f32.mrf.mxu2 }
 0x219   : > { %v1896_v54 = vpop.f32.mrf.mxu3  ;;  %v1833_v57 = vadd.f32 %v1821_v35, %v1759_v58  ;;  %v1907_v58 = vadd.f32 %v4263_v18, %v1832_v53 }
 0x21a   : > { %v1970_v33 = vpop.f32.mrf.mxu0 }
 0x21b   : > { %v2032_v45 = vpop.f32.mrf.mxu1  ;;  %v1908_v30 = vadd.f32 %v1896_v54, %v1833_v57 }
 0x21c   : > { %v2052_v6 = vadd.f32 %v2032_v45, %v1978_v21 }
 0x21d   : > { %v1982_v23 = vadd.f32 %v1970_v33, %v1908_v30 }
 0x21e   : > { %v2064_v55 = vadd.f32 %v4277_v52, %v2052_v6 }
 0x220   : > { %v1824_v4 = vpop.f32.mrf.mxu2 }
 0x221   : > { %v1899_v56 = vpop.f32.mrf.mxu3  ;;  %v1834_v59 = vadd.f32 %v1824_v4, %v1760_v14 }
 0x222   : > { %v4265_v34 = vpop.f32.mrf.mxu0 }
 0x223   : > { %v2035_v17 = vpop.f32.mrf.mxu1  ;;  %v1909_v33 = vadd.f32 %v1899_v56, %v1834_v59 }
 0x224   : > { %v2053_v45 = vadd.f32 %v2035_v17, %v1979_v49 }
 0x225   : > { %v1983_v17 = vadd.f32 %v4265_v34, %v1909_v33 }
 0x226   : > { %v2065_v15 = vadd.f32 %v4277_v52, %v2053_v45 }
 0x228   : > { %v2107_v44 = vpop.f32.mrf.mxu2 }
 0x229   : > { %v2108_v26 = vadd.f32 %v4270_v50, %v2107_v44  ;;  %v2125_v11 = vpop.f32.mrf.mxu3 }
 0x22a   : > { %v2026_v7 = vpop.f32.mrf.mxu0  ;;  %v2126_v35 = vadd.f32 %v4270_v50, %v2125_v11 }
 0x22b   : > { %v4272_v42 = vpop.f32.mrf.mxu1  ;;  %v2050_v2 = vadd.f32 %v2026_v7, %v1976_v28 }
 0x22c   : > { %v2054_v63 = vadd.f32 %v4272_v42, %v1980_v20 }
 0x22d   : > { %v2062_v62 = vadd.f32 %v4277_v52, %v2050_v2 }
 0x22f   : > { %v2131_v60 = vadd.f32 %v2108_v26, %v2062_v62 }
 0x230   : > { %v2110_v37 = vpop.f32.mrf.mxu2 }
 0x231   : > { %vm2139_vm8 = vcmp.gt.f32.partialorder %v2131_v60, 0.0  ;;  %v2147_v47 = vmul.f32 0.2, %v2131_v60  ;;  %v2111_v16 = vadd.f32 %v4270_v50, %v2110_v37  ;;  %v2128_v28 = vpop.f32.mrf.mxu3 }
 0x232   : > { %v2029_v38 = vpop.f32.mrf.mxu0  ;;  %v2129_v62 = vadd.f32 %v4270_v50, %v2128_v28 }
 0x233   : > { %v4284_v36 = vpop.f32.mrf.mxu1  ;;  %v2155_v39 = vsel %vm2139_vm8, %v2131_v60, %v2147_v47  ;;  %v2051_v40 = vadd.f32 %v2029_v38, %v1977_v48  ;;  %v2066_v60 = vadd.f32 %v4277_v52, %v2054_v63  ;;  %v1981_v48 = vadd.f32 %v4261_v27, %v1907_v58 }
 0x234   : > { %2163 = vst [vmem:[%s4286_s23] sm:$0xff] %v2155_v39 }
 0x235   : > { %v2063_v12 = vadd.f32 %v4277_v52, %v2051_v40  ;;  %v2055_v18 = vadd.f32 %v4284_v36, %v1981_v48 }
 0x237   : > { %v2132_v32 = vadd.f32 %v2111_v16, %v2063_v12  ;;  %v2067_v39 = vadd.f32 %v4277_v52, %v2055_v18 }
 0x238   : > { %v2113_v25 = vpop.f32.mrf.mxu2 }
 0x239   : > { %v2114_v51 = vadd.f32 %v4270_v50, %v2113_v25  ;;  %vm2140_vm9 = vcmp.gt.f32.partialorder %v2132_v32, 0.0  ;;  %v2148_v46 = vmul.f32 0.2, %v2132_v32 }
 0x23b   : > { %v2133_v8 = vadd.f32 %v2114_v51, %v2064_v55  ;;  %v2044_v0 = vpop.f32.mrf.mxu1  ;;  %v2156_v24 = vsel %vm2140_vm9, %v2132_v32, %v2148_v46 }
 0x23c   : > { %v2056_v3 = vadd.f32 %v2044_v0, %v1982_v23  ;;  %2164 = vst [vmem:[%s4286_s23 + $0x8] sm:$0xff] %v2156_v24 }
 0x23d   : > { %vm2141_vm10 = vcmp.gt.f32.partialorder %v2133_v8, 0.0  ;;  %v2149_v9 = vmul.f32 0.2, %v2133_v8 }
 0x23e   : > { %v2068_v4 = vadd.f32 %v4277_v52, %v2056_v3 }
 0x23f   : > { %v2157_v54 = vsel %vm2141_vm10, %v2133_v8, %v2149_v9 }
 0x240   : > { %2165 = vst [vmem:[%s4286_s23 + $0x10] sm:$0xff] %v2157_v54  ;;  %v2116_v13 = vpop.f32.mrf.mxu2  ;;  %v2137_v44 = vadd.f32 %v2126_v35, %v2068_v4 }
 0x241   : > { %v2117_v5 = vadd.f32 %v4270_v50, %v2116_v13 }
 0x242   : > { %vm2145_vm11 = vcmp.gt.f32.partialorder %v2137_v44, 0.0  ;;  %v2153_v29 = vmul.f32 0.2, %v2137_v44 }
 0x243   : > { %v2134_v7 = vadd.f32 %v2117_v5, %v2065_v15  ;;  %v2047_v2 = vpop.f32.mrf.mxu1 }
 0x244   : > { %v2161_v10 = vsel %vm2145_vm11, %v2137_v44, %v2153_v29  ;;  %v2057_v26 = vadd.f32 %v2047_v2, %v1983_v17 }
 0x245   : > { %vm2142_vm12 = vcmp.gt.f32.partialorder %v2134_v7, 0.0  ;;  %v2150_v56 = vmul.f32 0.2, %v2134_v7  ;;  %2169 = vst [vmem:[%s4286_s23 + $0x30] sm:$0xff] %v2161_v10 }
 0x246   : > { %v2069_v34 = vadd.f32 %v4277_v52, %v2057_v26 }
 0x247   : > { %v2158_v41 = vsel %vm2142_vm12, %v2134_v7, %v2150_v56 }
 0x248   : > { %2166 = vst [vmem:[%s4286_s23 + $0x18] sm:$0xff] %v2158_v41  ;;  %v2119_v22 = vpop.f32.mrf.mxu2  ;;  %v2138_v31 = vadd.f32 %v2129_v62, %v2069_v34 }
 0x249   : > { %v2120_v37 = vadd.f32 %v4270_v50, %v2119_v22 }
 0x24a   : > { %vm2146_vm13 = vcmp.gt.f32.partialorder %v2138_v31, 0.0  ;;  %v2154_v42 = vmul.f32 0.2, %v2138_v31 }
 0x24b   : > { %v2135_v57 = vadd.f32 %v2120_v37, %v2066_v60 }
 0x24c   : > { %v2162_v47 = vsel %vm2146_vm13, %v2138_v31, %v2154_v42 }
 0x24d   : > { %vm2143_vm14 = vcmp.gt.f32.partialorder %v2135_v57, 0.0  ;;  %v2151_v21 = vmul.f32 0.2, %v2135_v57  ;;  %2170 = vst [vmem:[%s4286_s23 + $0x38] sm:$0xff] %v2162_v47 }
 0x24f   : > { %v2159_v1 = vsel %vm2143_vm14, %v2135_v57, %v2151_v21 }
 0x250   : > { %2167 = vst [vmem:[%s4286_s23 + $0x20] sm:$0xff] %v2159_v1  ;;  %v2122_v38 = vpop.f32.mrf.mxu2 }
 0x251   : > { %v2123_v27 = vadd.f32 %v4270_v50, %v2122_v38 }
 0x253   : > { %v2136_v36 = vadd.f32 %v2123_v27, %v2067_v39 }
 0x255   : > { %vm2144_vm15 = vcmp.gt.f32.partialorder %v2136_v36, 0.0  ;;  %v2152_v40 = vmul.f32 0.2, %v2136_v36 }
 0x257   : > { %v2160_v6 = vsel %vm2144_vm15, %v2136_v36, %v2152_v40 }
 0x258   : > { %2168 = vst [vmem:[%s4286_s23 + $0x28] sm:$0xff] %v2160_v6 }
 0x259   : > { %2788 = shalt.err (!%p2785_p8)
}
 0x25a   : > { %s2833_s21 = smov 128   ;;  %s2834_s23 = smov 8  }
 0x25b   : > { %2676 = dma.vmem_to_hbm [thread:$0]  (%p2913_p5), %s2185_s28, 1024, %s2187_s8, %s2172_s9, %s2833_s21, %s2833_s21, %s2834_s23  }
 0x25c PF: > { %p2688_p9 = scmp.ge.s32.totalorder %s2827_s27, 2  ;;  %s2201_s18 = sand.u32 1, %s2815_s24  }
 0x25d   : > { %s2202_s15 = scalar_lea.sflag [#allocation5], %s2201_s18 }
 0x25e   : > { %p2683_p10 = pnand %p2688_p9, %p2917_p6 }
 0x260   : > { %p2684_p11 = pneg %p2683_p10 }
 0x262   : > { %2810 = dma.done.wait (%p2684_p11), %s2202_s15, 1024  }
 0x263   : > { %2812 = vsyncadd (%p2684_p11), %s2202_s15, 4294966272  ;;  %p18_p12 = scmp.ge.s32.totalorder %s2900_s30, 4   ;;  %s4367_s24 = smov %s2819_s25 }
 0x264   : > { %s4368_s25 = smov %s2823_s26  ;;  %s4369_s26 = smov %s2911_s10 }
 0x265   : > { %s4370_s27 = smov %s2900_s30  ;;  %20 = sbr.rel (!%p18_p12) target bundleno = 4 (0x4), region = 234 }
 0x26a   :  { %2208 = vsyncpa [#allocation4], 1 }
 0x26b   :  { %2210 = vsyncpa [#allocation4 + $0x1], 1 }
 0x26c   :  { %2211 = vsyncpa [#allocation5], 1 }
 0x26d   :  { %2213 = vsyncpa [#allocation5 + $0x1], 1 }

</bundles_post_ra>
